<compile_context>
chip_gen: v6e
topology: v6e:2x2x1
jax: 0.10.0
libtpu: 0.0.40
codegen_flags: <defaults>
</compile_context>

<pallas_src>
import math

import jax
import jax.numpy as jnp
import numpy as np
from jax import lax
from jax.experimental import pallas as pl
from jax.experimental.pallas import tpu as pltpu

DIM_MODEL = 32                 # hidden width of the 1 -> dim -> 1 MLP
LANES = 128                    # lane tile (fast axis)
SUBLANES = 8                   # sublane tile
CHUNK_ROWS = 32                # rows per inner-loop step (4 f32 vregs of x)
N_ACC = 4                      # independent partial accumulators (break the serial add chain)
MAX_BLOCK_ROWS = 4096          # 4096*128*4B = 2 MiB per buffer; 2(in)+2(out) bufs = 8 MiB pipeline


def _round_up(x, n):
    return ((x + n - 1) // n) * n


def _num_tensorcores():
    """Best-effort TensorCores-per-chip query (2 on v7x, else 1). Never raises."""
    try:
        info = pltpu.get_tpu_info()
        for name in ("num_cores", "num_tensorcores", "tensorcores_per_chip",
                     "cores_per_chip", "core_count"):
            v = getattr(info, name, None)
            if isinstance(v, int) and v > 0:
                return max(1, min(2, v))
    except Exception:
        pass
    try:
        kind = jax.devices()[0].device_kind.lower()
        if "v7" in kind or "tpu7" in kind:
            return 2
    except Exception:
        pass
    return 1


def _mlp_rows(x, w1, b1, w2, b2, n_acc):
    """ReLU( w2 . ReLU(w1 * x + b1) + b2 ) applied elementwise to the tile x."""
    accs = [None] * n_acc
    for d in range(len(w1)):                      # static unrolled d-loop, pure VPU
        h = jnp.maximum(x * w1[d] + b1[d], 0.0)   # ReLU(Linear(1, dim)) unit d
        t = h * w2[d]                             # partial dot with Linear(dim, 1)
        k = d % n_acc
        accs[k] = t if accs[k] is None else accs[k] + t
    # tree-sum the independent partial accumulators
    while len(accs) > 1:
        nxt = [accs[i] + accs[i + 1] for i in range(0, len(accs) - 1, 2)]
        if len(accs) % 2:
            nxt.append(accs[-1])
        accs = nxt
    return jnp.maximum(accs[0] + b2, 0.0)


def spatial_encoding_kernel(w1_ref, b1_ref, w2_ref, b2_ref, x_ref, o_ref):
    """Per-element MLP(1 -> dim -> 1) with ReLU after each layer.

    w1_ref, b1_ref, w2_ref : SMEM f32[dim]
    b2_ref                 : SMEM f32[1]
    x_ref, o_ref           : VMEM f32[block_rows, LANES]
    """
    dim = w1_ref.shape[0]

    # ---- hoist every SMEM scalar read out of the per-chunk path (once/step) ----
    # NOTE(perf): verify in the bundle dump (grep -o vbroadcast/splat) that these
    # lower to scalar-operand VALU ops / one splat per grid step, not per chunk.
    w1 = [w1_ref[d] for d in range(dim)]
    b1 = [b1_ref[d] for d in range(dim)]
    w2 = [w2_ref[d] for d in range(dim)]
    b2 = b2_ref[0]

    block_rows = x_ref.shape[0]                  # static
    n_acc = min(N_ACC, dim)
    n_full = block_rows // CHUNK_ROWS            # full 32-row chunks
    rem = block_rows - n_full * CHUNK_ROWS       # static remainder (multiple of 8, or full array)

    if n_full > 0:
        def chunk_body(c, carry):
            r = pl.multiple_of(c * CHUNK_ROWS, CHUNK_ROWS)
            x = x_ref[pl.ds(r, CHUNK_ROWS), :]   # 4 vregs live
            o_ref[pl.ds(r, CHUNK_ROWS), :] = _mlp_rows(x, w1, b1, w2, b2, n_acc)
            return carry

        lax.fori_loop(0, n_full, chunk_body, 0,
                      unroll=True if n_full <= 4 else 2)

    if rem:                                      # static tail chunk (no dynamic masking needed)
        r0 = n_full * CHUNK_ROWS
        x = x_ref[pl.ds(r0, rem), :]
        o_ref[pl.ds(r0, rem), :] = _mlp_rows(x, w1, b1, w2, b2, n_acc)


def spatial_encoding(lap, w1, b1, w2, b2):
    """JAX wrapper reproducing SpatialEncoding.forward(lap).

    lap : f32[...], any shape.
    w1  : f32[dim]  (== torch fnn[0].weight[:, 0], Linear(1, dim))
    b1  : f32[dim]  (== torch fnn[0].bias)
    w2  : f32[dim]  (== torch fnn[2].weight[0, :], Linear(dim, 1))
    b2  : f32[1]    (== torch fnn[2].bias)
    returns f32[lap.shape + (1,)]
    """
    orig_shape = lap.shape
    flat = lap.reshape(-1).astype(jnp.float32)
    m = int(flat.shape[0])
    dim = int(w1.shape[0])

    # ---- lane-dense (rows, 128) view; avoid pad/slice HBM round trips ----
    if m % LANES == 0:
        padded = m                                # free reshape, no HBM copy
    else:
        # TODO(synk): drop this copy too via a masked in-kernel load/store of the sub-128 tail.
        padded = _round_up(m, SUBLANES * LANES)   # pad by < 1024 elements (one copy)
        flat = jnp.pad(flat, (0, padded - m))
    rows = padded // LANES
    x2d = flat.reshape(rows, LANES)

    # ---- static, generation-aware tiling decisions (pure Python math) ----
    num_tc = _num_tensorcores()
    grid_len = max(1, math.ceil(rows / MAX_BLOCK_ROWS))
    if num_tc > 1 and rows >= 2 * CHUNK_ROWS:
        # give both v7x TensorCores work and keep the grid even (balanced)
        grid_len = _round_up(max(grid_len, num_tc), num_tc)
    block_rows = _round_up(math.ceil(rows / grid_len), CHUNK_ROWS)
    block_rows = min(block_rows, _round_up(rows, SUBLANES))   # bound OOB overshoot to <8 rows
    if rows < SUBLANES:
        block_rows = rows                                     # full-dim block for tiny inputs
    grid_len = max(1, math.ceil(rows / block_rows))           # ragged row tail handled in-kernel

    flops = (5 * dim + 2) * padded
    bytes_accessed = 8 * padded + 4 * (3 * dim + 1)

    out2d = pl.pallas_call(
        spatial_encoding_kernel,
        out_shape=jax.ShapeDtypeStruct((rows, LANES), jnp.float32),
        grid_spec=pltpu.PrefetchScalarGridSpec(
            num_scalar_prefetch=0,
            grid=(grid_len,),
            in_specs=[
                pl.BlockSpec(memory_space=pltpu.MemorySpace.SMEM),      # w1
                pl.BlockSpec(memory_space=pltpu.MemorySpace.SMEM),      # b1
                pl.BlockSpec(memory_space=pltpu.MemorySpace.SMEM),      # w2
                pl.BlockSpec(memory_space=pltpu.MemorySpace.SMEM),      # b2
                pl.BlockSpec((block_rows, LANES), lambda i: (i, 0)),    # lap block
            ],
            out_specs=pl.BlockSpec((block_rows, LANES), lambda i: (i, 0)),
        ),
        compiler_params=pltpu.CompilerParams(
            dimension_semantics=("parallel",),
        ),
        cost_estimate=pl.CostEstimate(
            flops=int(flops), transcendentals=0, bytes_accessed=int(bytes_accessed)),
    )(w1.astype(jnp.float32), b1.astype(jnp.float32),
      w2.astype(jnp.float32), b2.astype(jnp.float32), x2d)

    if padded == m:
        return out2d.reshape(orig_shape + (1,))   # free reshape, no slice copy
    out_flat = out2d.reshape(-1)[:m]
    return out_flat.reshape(orig_shape + (1,))


def init_params(key, dim_model):
    """Deterministic init mimicking torch.nn.Linear defaults (U(-1/sqrt(fan_in), ...))."""
    k1, k2, k3, k4 = jax.random.split(key, 4)
    b = 1.0 / math.sqrt(1.0)            # Linear(1, dim): fan_in = 1
    w1 = jax.random.uniform(k1, (dim_model,), jnp.float32, -b, b)
    b1 = jax.random.uniform(k2, (dim_model,), jnp.float32, -b, b)
    b = 1.0 / math.sqrt(dim_model)      # Linear(dim, 1): fan_in = dim
    w2 = jax.random.uniform(k3, (dim_model,), jnp.float32, -b, b)
    b2 = jax.random.uniform(k4, (1,), jnp.float32, -b, b)
    return w1, b1, w2, b2


def reference(lap, w1, b1, w2, b2):
    """Pure-JAX reference of the PyTorch forward pass."""
    x = lap[..., None].astype(jnp.float32)                              # (..., 1)
    h = jnp.maximum(x * w1[None, :] + b1, 0.0)                          # (..., dim)
    y = jnp.maximum(jnp.sum(h * w2, axis=-1, keepdims=True) + b2, 0.0)  # (..., 1)
    return y


if __name__ == "__main__":
    key = jax.random.PRNGKey(0)
    k_lap, k_lap2, k_lap3, k_par = jax.random.split(key, 4)

    w1, b1, w2, b2 = init_params(k_par, DIM_MODEL)

    # Primary: m = 6400 = 50*128 -> zero-copy fast path, ragged row tail (50 rows,
    # 56-row block) handled by masked edge blocks; exercises full-chunk + remainder paths.
    lap = jax.random.normal(k_lap, (4, 40, 40), dtype=jnp.float32)
    out = jax.block_until_ready(spatial_encoding(lap, w1, b1, w2, b2))
    ref = reference(lap, w1, b1, w2, b2)
    assert out.shape == lap.shape + (1,), out.shape
    np.testing.assert_allclose(np.asarray(out), np.asarray(ref), rtol=1e-5, atol=1e-5)

    # Secondary: m = 2048 -> exact 16-row slab, single remainder-path block.
    lap2 = jax.random.normal(k_lap2, (2, 32, 32), dtype=jnp.float32)
    out2 = jax.block_until_ready(spatial_encoding(lap2, w1, b1, w2, b2))
    ref2 = reference(lap2, w1, b1, w2, b2)
    assert out2.shape == lap2.shape + (1,), out2.shape
    np.testing.assert_allclose(np.asarray(out2), np.asarray(ref2), rtol=1e-5, atol=1e-5)

    # Tertiary: m = 231 (not a multiple of 128) -> exercises the small-pad + slice path.
    lap3 = jax.random.normal(k_lap3, (3, 7, 11), dtype=jnp.float32)
    out3 = jax.block_until_ready(spatial_encoding(lap3, w1, b1, w2, b2))
    ref3 = reference(lap3, w1, b1, w2, b2)
    assert out3.shape == lap3.shape + (1,), out3.shape
    np.testing.assert_allclose(np.asarray(out3), np.asarray(ref3), rtol=1e-5, atol=1e-5)

    print("KERNEL_OK")
</pallas_src>

<mosaic_0001>
module attributes {stable_mosaic.version = 11 : i64} {
  func.func @spatial_encoding_kernel(%arg0: i32, %arg1: memref<32xf32, #tpu.memory_space<smem>>, %arg2: memref<32xf32, #tpu.memory_space<smem>>, %arg3: memref<32xf32, #tpu.memory_space<smem>>, %arg4: memref<1xf32, #tpu.memory_space<smem>>, %arg5: memref<56x128xf32, #tpu.memory_space<vmem>>, %arg6: memref<56x128xf32, #tpu.memory_space<vmem>>) attributes {dimension_semantics = [#tpu.dimension_semantics<parallel>], iteration_bounds = array<i64: 1>, scalar_prefetch = 0 : i64, scratch_operands = 0 : i64, tpu.core_type = #tpu.core_type<tc>, window_params = [{transform_indices = @transform_0, window_bounds = array<i64: 32>}, {transform_indices = @transform_1, window_bounds = array<i64: 32>}, {transform_indices = @transform_2, window_bounds = array<i64: 32>}, {transform_indices = @transform_3, window_bounds = array<i64: 1>}, {transform_indices = @transform_4, window_bounds = array<i64: 56, 128>}, {transform_indices = @transform_5, window_bounds = array<i64: 56, 128>}]} {
    %c0 = arith.constant 0 : index
    %0 = memref.load %arg1[%c0] : memref<32xf32, #tpu.memory_space<smem>>
    %c1 = arith.constant 1 : index
    %1 = memref.load %arg1[%c1] : memref<32xf32, #tpu.memory_space<smem>>
    %c2 = arith.constant 2 : index
    %2 = memref.load %arg1[%c2] : memref<32xf32, #tpu.memory_space<smem>>
    %c3 = arith.constant 3 : index
    %3 = memref.load %arg1[%c3] : memref<32xf32, #tpu.memory_space<smem>>
    %c4 = arith.constant 4 : index
    %4 = memref.load %arg1[%c4] : memref<32xf32, #tpu.memory_space<smem>>
    %c5 = arith.constant 5 : index
    %5 = memref.load %arg1[%c5] : memref<32xf32, #tpu.memory_space<smem>>
    %c6 = arith.constant 6 : index
    %6 = memref.load %arg1[%c6] : memref<32xf32, #tpu.memory_space<smem>>
    %c7 = arith.constant 7 : index
    %7 = memref.load %arg1[%c7] : memref<32xf32, #tpu.memory_space<smem>>
    %c8 = arith.constant 8 : index
    %8 = memref.load %arg1[%c8] : memref<32xf32, #tpu.memory_space<smem>>
    %c9 = arith.constant 9 : index
    %9 = memref.load %arg1[%c9] : memref<32xf32, #tpu.memory_space<smem>>
    %c10 = arith.constant 10 : index
    %10 = memref.load %arg1[%c10] : memref<32xf32, #tpu.memory_space<smem>>
    %c11 = arith.constant 11 : index
    %11 = memref.load %arg1[%c11] : memref<32xf32, #tpu.memory_space<smem>>
    %c12 = arith.constant 12 : index
    %12 = memref.load %arg1[%c12] : memref<32xf32, #tpu.memory_space<smem>>
    %c13 = arith.constant 13 : index
    %13 = memref.load %arg1[%c13] : memref<32xf32, #tpu.memory_space<smem>>
    %c14 = arith.constant 14 : index
    %14 = memref.load %arg1[%c14] : memref<32xf32, #tpu.memory_space<smem>>
    %c15 = arith.constant 15 : index
    %15 = memref.load %arg1[%c15] : memref<32xf32, #tpu.memory_space<smem>>
    %c16 = arith.constant 16 : index
    %16 = memref.load %arg1[%c16] : memref<32xf32, #tpu.memory_space<smem>>
    %c17 = arith.constant 17 : index
    %17 = memref.load %arg1[%c17] : memref<32xf32, #tpu.memory_space<smem>>
    %c18 = arith.constant 18 : index
    %18 = memref.load %arg1[%c18] : memref<32xf32, #tpu.memory_space<smem>>
    %c19 = arith.constant 19 : index
    %19 = memref.load %arg1[%c19] : memref<32xf32, #tpu.memory_space<smem>>
    %c20 = arith.constant 20 : index
    %20 = memref.load %arg1[%c20] : memref<32xf32, #tpu.memory_space<smem>>
    %c21 = arith.constant 21 : index
    %21 = memref.load %arg1[%c21] : memref<32xf32, #tpu.memory_space<smem>>
    %c22 = arith.constant 22 : index
    %22 = memref.load %arg1[%c22] : memref<32xf32, #tpu.memory_space<smem>>
    %c23 = arith.constant 23 : index
    %23 = memref.load %arg1[%c23] : memref<32xf32, #tpu.memory_space<smem>>
    %c24 = arith.constant 24 : index
    %24 = memref.load %arg1[%c24] : memref<32xf32, #tpu.memory_space<smem>>
    %c25 = arith.constant 25 : index
    %25 = memref.load %arg1[%c25] : memref<32xf32, #tpu.memory_space<smem>>
    %c26 = arith.constant 26 : index
    %26 = memref.load %arg1[%c26] : memref<32xf32, #tpu.memory_space<smem>>
    %c27 = arith.constant 27 : index
    %27 = memref.load %arg1[%c27] : memref<32xf32, #tpu.memory_space<smem>>
    %c28 = arith.constant 28 : index
    %28 = memref.load %arg1[%c28] : memref<32xf32, #tpu.memory_space<smem>>
    %c29 = arith.constant 29 : index
    %29 = memref.load %arg1[%c29] : memref<32xf32, #tpu.memory_space<smem>>
    %c30 = arith.constant 30 : index
    %30 = memref.load %arg1[%c30] : memref<32xf32, #tpu.memory_space<smem>>
    %c31 = arith.constant 31 : index
    %31 = memref.load %arg1[%c31] : memref<32xf32, #tpu.memory_space<smem>>
    %c0_0 = arith.constant 0 : index
    %32 = memref.load %arg2[%c0_0] : memref<32xf32, #tpu.memory_space<smem>>
    %c1_1 = arith.constant 1 : index
    %33 = memref.load %arg2[%c1_1] : memref<32xf32, #tpu.memory_space<smem>>
    %c2_2 = arith.constant 2 : index
    %34 = memref.load %arg2[%c2_2] : memref<32xf32, #tpu.memory_space<smem>>
    %c3_3 = arith.constant 3 : index
    %35 = memref.load %arg2[%c3_3] : memref<32xf32, #tpu.memory_space<smem>>
    %c4_4 = arith.constant 4 : index
    %36 = memref.load %arg2[%c4_4] : memref<32xf32, #tpu.memory_space<smem>>
    %c5_5 = arith.constant 5 : index
    %37 = memref.load %arg2[%c5_5] : memref<32xf32, #tpu.memory_space<smem>>
    %c6_6 = arith.constant 6 : index
    %38 = memref.load %arg2[%c6_6] : memref<32xf32, #tpu.memory_space<smem>>
    %c7_7 = arith.constant 7 : index
    %39 = memref.load %arg2[%c7_7] : memref<32xf32, #tpu.memory_space<smem>>
    %c8_8 = arith.constant 8 : index
    %40 = memref.load %arg2[%c8_8] : memref<32xf32, #tpu.memory_space<smem>>
    %c9_9 = arith.constant 9 : index
    %41 = memref.load %arg2[%c9_9] : memref<32xf32, #tpu.memory_space<smem>>
    %c10_10 = arith.constant 10 : index
    %42 = memref.load %arg2[%c10_10] : memref<32xf32, #tpu.memory_space<smem>>
    %c11_11 = arith.constant 11 : index
    %43 = memref.load %arg2[%c11_11] : memref<32xf32, #tpu.memory_space<smem>>
    %c12_12 = arith.constant 12 : index
    %44 = memref.load %arg2[%c12_12] : memref<32xf32, #tpu.memory_space<smem>>
    %c13_13 = arith.constant 13 : index
    %45 = memref.load %arg2[%c13_13] : memref<32xf32, #tpu.memory_space<smem>>
    %c14_14 = arith.constant 14 : index
    %46 = memref.load %arg2[%c14_14] : memref<32xf32, #tpu.memory_space<smem>>
    %c15_15 = arith.constant 15 : index
    %47 = memref.load %arg2[%c15_15] : memref<32xf32, #tpu.memory_space<smem>>
    %c16_16 = arith.constant 16 : index
    %48 = memref.load %arg2[%c16_16] : memref<32xf32, #tpu.memory_space<smem>>
    %c17_17 = arith.constant 17 : index
    %49 = memref.load %arg2[%c17_17] : memref<32xf32, #tpu.memory_space<smem>>
    %c18_18 = arith.constant 18 : index
    %50 = memref.load %arg2[%c18_18] : memref<32xf32, #tpu.memory_space<smem>>
    %c19_19 = arith.constant 19 : index
    %51 = memref.load %arg2[%c19_19] : memref<32xf32, #tpu.memory_space<smem>>
    %c20_20 = arith.constant 20 : index
    %52 = memref.load %arg2[%c20_20] : memref<32xf32, #tpu.memory_space<smem>>
    %c21_21 = arith.constant 21 : index
    %53 = memref.load %arg2[%c21_21] : memref<32xf32, #tpu.memory_space<smem>>
    %c22_22 = arith.constant 22 : index
    %54 = memref.load %arg2[%c22_22] : memref<32xf32, #tpu.memory_space<smem>>
    %c23_23 = arith.constant 23 : index
    %55 = memref.load %arg2[%c23_23] : memref<32xf32, #tpu.memory_space<smem>>
    %c24_24 = arith.constant 24 : index
    %56 = memref.load %arg2[%c24_24] : memref<32xf32, #tpu.memory_space<smem>>
    %c25_25 = arith.constant 25 : index
    %57 = memref.load %arg2[%c25_25] : memref<32xf32, #tpu.memory_space<smem>>
    %c26_26 = arith.constant 26 : index
    %58 = memref.load %arg2[%c26_26] : memref<32xf32, #tpu.memory_space<smem>>
    %c27_27 = arith.constant 27 : index
    %59 = memref.load %arg2[%c27_27] : memref<32xf32, #tpu.memory_space<smem>>
    %c28_28 = arith.constant 28 : index
    %60 = memref.load %arg2[%c28_28] : memref<32xf32, #tpu.memory_space<smem>>
    %c29_29 = arith.constant 29 : index
    %61 = memref.load %arg2[%c29_29] : memref<32xf32, #tpu.memory_space<smem>>
    %c30_30 = arith.constant 30 : index
    %62 = memref.load %arg2[%c30_30] : memref<32xf32, #tpu.memory_space<smem>>
    %c31_31 = arith.constant 31 : index
    %63 = memref.load %arg2[%c31_31] : memref<32xf32, #tpu.memory_space<smem>>
    %c0_32 = arith.constant 0 : index
    %64 = memref.load %arg3[%c0_32] : memref<32xf32, #tpu.memory_space<smem>>
    %c1_33 = arith.constant 1 : index
    %65 = memref.load %arg3[%c1_33] : memref<32xf32, #tpu.memory_space<smem>>
    %c2_34 = arith.constant 2 : index
    %66 = memref.load %arg3[%c2_34] : memref<32xf32, #tpu.memory_space<smem>>
    %c3_35 = arith.constant 3 : index
    %67 = memref.load %arg3[%c3_35] : memref<32xf32, #tpu.memory_space<smem>>
    %c4_36 = arith.constant 4 : index
    %68 = memref.load %arg3[%c4_36] : memref<32xf32, #tpu.memory_space<smem>>
    %c5_37 = arith.constant 5 : index
    %69 = memref.load %arg3[%c5_37] : memref<32xf32, #tpu.memory_space<smem>>
    %c6_38 = arith.constant 6 : index
    %70 = memref.load %arg3[%c6_38] : memref<32xf32, #tpu.memory_space<smem>>
    %c7_39 = arith.constant 7 : index
    %71 = memref.load %arg3[%c7_39] : memref<32xf32, #tpu.memory_space<smem>>
    %c8_40 = arith.constant 8 : index
    %72 = memref.load %arg3[%c8_40] : memref<32xf32, #tpu.memory_space<smem>>
    %c9_41 = arith.constant 9 : index
    %73 = memref.load %arg3[%c9_41] : memref<32xf32, #tpu.memory_space<smem>>
    %c10_42 = arith.constant 10 : index
    %74 = memref.load %arg3[%c10_42] : memref<32xf32, #tpu.memory_space<smem>>
    %c11_43 = arith.constant 11 : index
    %75 = memref.load %arg3[%c11_43] : memref<32xf32, #tpu.memory_space<smem>>
    %c12_44 = arith.constant 12 : index
    %76 = memref.load %arg3[%c12_44] : memref<32xf32, #tpu.memory_space<smem>>
    %c13_45 = arith.constant 13 : index
    %77 = memref.load %arg3[%c13_45] : memref<32xf32, #tpu.memory_space<smem>>
    %c14_46 = arith.constant 14 : index
    %78 = memref.load %arg3[%c14_46] : memref<32xf32, #tpu.memory_space<smem>>
    %c15_47 = arith.constant 15 : index
    %79 = memref.load %arg3[%c15_47] : memref<32xf32, #tpu.memory_space<smem>>
    %c16_48 = arith.constant 16 : index
    %80 = memref.load %arg3[%c16_48] : memref<32xf32, #tpu.memory_space<smem>>
    %c17_49 = arith.constant 17 : index
    %81 = memref.load %arg3[%c17_49] : memref<32xf32, #tpu.memory_space<smem>>
    %c18_50 = arith.constant 18 : index
    %82 = memref.load %arg3[%c18_50] : memref<32xf32, #tpu.memory_space<smem>>
    %c19_51 = arith.constant 19 : index
    %83 = memref.load %arg3[%c19_51] : memref<32xf32, #tpu.memory_space<smem>>
    %c20_52 = arith.constant 20 : index
    %84 = memref.load %arg3[%c20_52] : memref<32xf32, #tpu.memory_space<smem>>
    %c21_53 = arith.constant 21 : index
    %85 = memref.load %arg3[%c21_53] : memref<32xf32, #tpu.memory_space<smem>>
    %c22_54 = arith.constant 22 : index
    %86 = memref.load %arg3[%c22_54] : memref<32xf32, #tpu.memory_space<smem>>
    %c23_55 = arith.constant 23 : index
    %87 = memref.load %arg3[%c23_55] : memref<32xf32, #tpu.memory_space<smem>>
    %c24_56 = arith.constant 24 : index
    %88 = memref.load %arg3[%c24_56] : memref<32xf32, #tpu.memory_space<smem>>
    %c25_57 = arith.constant 25 : index
    %89 = memref.load %arg3[%c25_57] : memref<32xf32, #tpu.memory_space<smem>>
    %c26_58 = arith.constant 26 : index
    %90 = memref.load %arg3[%c26_58] : memref<32xf32, #tpu.memory_space<smem>>
    %c27_59 = arith.constant 27 : index
    %91 = memref.load %arg3[%c27_59] : memref<32xf32, #tpu.memory_space<smem>>
    %c28_60 = arith.constant 28 : index
    %92 = memref.load %arg3[%c28_60] : memref<32xf32, #tpu.memory_space<smem>>
    %c29_61 = arith.constant 29 : index
    %93 = memref.load %arg3[%c29_61] : memref<32xf32, #tpu.memory_space<smem>>
    %c30_62 = arith.constant 30 : index
    %94 = memref.load %arg3[%c30_62] : memref<32xf32, #tpu.memory_space<smem>>
    %c31_63 = arith.constant 31 : index
    %95 = memref.load %arg3[%c31_63] : memref<32xf32, #tpu.memory_space<smem>>
    %c0_64 = arith.constant 0 : index
    %96 = memref.load %arg4[%c0_64] : memref<1xf32, #tpu.memory_space<smem>>
    %c0_i32 = arith.constant 0 : i32
    %c32_i32 = arith.constant 32 : i32
    %97 = arith.muli %c0_i32, %c32_i32 : i32
    %98 = tpu.assume_multiple %97, 32 : i32
    %99 = arith.index_cast %98 : i32 to index
    %c0_65 = arith.constant 0 : index
    %100 = vector.load %arg5[%99, %c0_65] : memref<56x128xf32, #tpu.memory_space<vmem>>, vector<32x128xf32>
    %101 = vector.broadcast %0 : f32 to vector<32x128xf32>
    %102 = arith.mulf %100, %101 : vector<32x128xf32>
    %103 = vector.broadcast %32 : f32 to vector<32x128xf32>
    %104 = arith.addf %102, %103 : vector<32x128xf32>
    %cst = arith.constant 0.000000e+00 : f32
    %105 = vector.broadcast %cst : f32 to vector<32x128xf32>
    %106 = arith.maximumf %104, %105 : vector<32x128xf32>
    %107 = vector.broadcast %64 : f32 to vector<32x128xf32>
    %108 = arith.mulf %106, %107 : vector<32x128xf32>
    %109 = vector.broadcast %1 : f32 to vector<32x128xf32>
    %110 = arith.mulf %100, %109 : vector<32x128xf32>
    %111 = vector.broadcast %33 : f32 to vector<32x128xf32>
    %112 = arith.addf %110, %111 : vector<32x128xf32>
    %cst_66 = arith.constant 0.000000e+00 : f32
    %113 = vector.broadcast %cst_66 : f32 to vector<32x128xf32>
    %114 = arith.maximumf %112, %113 : vector<32x128xf32>
    %115 = vector.broadcast %65 : f32 to vector<32x128xf32>
    %116 = arith.mulf %114, %115 : vector<32x128xf32>
    %117 = vector.broadcast %2 : f32 to vector<32x128xf32>
    %118 = arith.mulf %100, %117 : vector<32x128xf32>
    %119 = vector.broadcast %34 : f32 to vector<32x128xf32>
    %120 = arith.addf %118, %119 : vector<32x128xf32>
    %cst_67 = arith.constant 0.000000e+00 : f32
    %121 = vector.broadcast %cst_67 : f32 to vector<32x128xf32>
    %122 = arith.maximumf %120, %121 : vector<32x128xf32>
    %123 = vector.broadcast %66 : f32 to vector<32x128xf32>
    %124 = arith.mulf %122, %123 : vector<32x128xf32>
    %125 = vector.broadcast %3 : f32 to vector<32x128xf32>
    %126 = arith.mulf %100, %125 : vector<32x128xf32>
    %127 = vector.broadcast %35 : f32 to vector<32x128xf32>
    %128 = arith.addf %126, %127 : vector<32x128xf32>
    %cst_68 = arith.constant 0.000000e+00 : f32
    %129 = vector.broadcast %cst_68 : f32 to vector<32x128xf32>
    %130 = arith.maximumf %128, %129 : vector<32x128xf32>
    %131 = vector.broadcast %67 : f32 to vector<32x128xf32>
    %132 = arith.mulf %130, %131 : vector<32x128xf32>
    %133 = vector.broadcast %4 : f32 to vector<32x128xf32>
    %134 = arith.mulf %100, %133 : vector<32x128xf32>
    %135 = vector.broadcast %36 : f32 to vector<32x128xf32>
    %136 = arith.addf %134, %135 : vector<32x128xf32>
    %cst_69 = arith.constant 0.000000e+00 : f32
    %137 = vector.broadcast %cst_69 : f32 to vector<32x128xf32>
    %138 = arith.maximumf %136, %137 : vector<32x128xf32>
    %139 = vector.broadcast %68 : f32 to vector<32x128xf32>
    %140 = arith.mulf %138, %139 : vector<32x128xf32>
    %141 = arith.addf %108, %140 : vector<32x128xf32>
    %142 = vector.broadcast %5 : f32 to vector<32x128xf32>
    %143 = arith.mulf %100, %142 : vector<32x128xf32>
    %144 = vector.broadcast %37 : f32 to vector<32x128xf32>
    %145 = arith.addf %143, %144 : vector<32x128xf32>
    %cst_70 = arith.constant 0.000000e+00 : f32
    %146 = vector.broadcast %cst_70 : f32 to vector<32x128xf32>
    %147 = arith.maximumf %145, %146 : vector<32x128xf32>
    %148 = vector.broadcast %69 : f32 to vector<32x128xf32>
    %149 = arith.mulf %147, %148 : vector<32x128xf32>
    %150 = arith.addf %116, %149 : vector<32x128xf32>
    %151 = vector.broadcast %6 : f32 to vector<32x128xf32>
    %152 = arith.mulf %100, %151 : vector<32x128xf32>
    %153 = vector.broadcast %38 : f32 to vector<32x128xf32>
    %154 = arith.addf %152, %153 : vector<32x128xf32>
    %cst_71 = arith.constant 0.000000e+00 : f32
    %155 = vector.broadcast %cst_71 : f32 to vector<32x128xf32>
    %156 = arith.maximumf %154, %155 : vector<32x128xf32>
    %157 = vector.broadcast %70 : f32 to vector<32x128xf32>
    %158 = arith.mulf %156, %157 : vector<32x128xf32>
    %159 = arith.addf %124, %158 : vector<32x128xf32>
    %160 = vector.broadcast %7 : f32 to vector<32x128xf32>
    %161 = arith.mulf %100, %160 : vector<32x128xf32>
    %162 = vector.broadcast %39 : f32 to vector<32x128xf32>
    %163 = arith.addf %161, %162 : vector<32x128xf32>
    %cst_72 = arith.constant 0.000000e+00 : f32
    %164 = vector.broadcast %cst_72 : f32 to vector<32x128xf32>
    %165 = arith.maximumf %163, %164 : vector<32x128xf32>
    %166 = vector.broadcast %71 : f32 to vector<32x128xf32>
    %167 = arith.mulf %165, %166 : vector<32x128xf32>
    %168 = arith.addf %132, %167 : vector<32x128xf32>
    %169 = vector.broadcast %8 : f32 to vector<32x128xf32>
    %170 = arith.mulf %100, %169 : vector<32x128xf32>
    %171 = vector.broadcast %40 : f32 to vector<32x128xf32>
    %172 = arith.addf %170, %171 : vector<32x128xf32>
    %cst_73 = arith.constant 0.000000e+00 : f32
    %173 = vector.broadcast %cst_73 : f32 to vector<32x128xf32>
    %174 = arith.maximumf %172, %173 : vector<32x128xf32>
    %175 = vector.broadcast %72 : f32 to vector<32x128xf32>
    %176 = arith.mulf %174, %175 : vector<32x128xf32>
    %177 = arith.addf %141, %176 : vector<32x128xf32>
    %178 = vector.broadcast %9 : f32 to vector<32x128xf32>
    %179 = arith.mulf %100, %178 : vector<32x128xf32>
    %180 = vector.broadcast %41 : f32 to vector<32x128xf32>
    %181 = arith.addf %179, %180 : vector<32x128xf32>
    %cst_74 = arith.constant 0.000000e+00 : f32
    %182 = vector.broadcast %cst_74 : f32 to vector<32x128xf32>
    %183 = arith.maximumf %181, %182 : vector<32x128xf32>
    %184 = vector.broadcast %73 : f32 to vector<32x128xf32>
    %185 = arith.mulf %183, %184 : vector<32x128xf32>
    %186 = arith.addf %150, %185 : vector<32x128xf32>
    %187 = vector.broadcast %10 : f32 to vector<32x128xf32>
    %188 = arith.mulf %100, %187 : vector<32x128xf32>
    %189 = vector.broadcast %42 : f32 to vector<32x128xf32>
    %190 = arith.addf %188, %189 : vector<32x128xf32>
    %cst_75 = arith.constant 0.000000e+00 : f32
    %191 = vector.broadcast %cst_75 : f32 to vector<32x128xf32>
    %192 = arith.maximumf %190, %191 : vector<32x128xf32>
    %193 = vector.broadcast %74 : f32 to vector<32x128xf32>
    %194 = arith.mulf %192, %193 : vector<32x128xf32>
    %195 = arith.addf %159, %194 : vector<32x128xf32>
    %196 = vector.broadcast %11 : f32 to vector<32x128xf32>
    %197 = arith.mulf %100, %196 : vector<32x128xf32>
    %198 = vector.broadcast %43 : f32 to vector<32x128xf32>
    %199 = arith.addf %197, %198 : vector<32x128xf32>
    %cst_76 = arith.constant 0.000000e+00 : f32
    %200 = vector.broadcast %cst_76 : f32 to vector<32x128xf32>
    %201 = arith.maximumf %199, %200 : vector<32x128xf32>
    %202 = vector.broadcast %75 : f32 to vector<32x128xf32>
    %203 = arith.mulf %201, %202 : vector<32x128xf32>
    %204 = arith.addf %168, %203 : vector<32x128xf32>
    %205 = vector.broadcast %12 : f32 to vector<32x128xf32>
    %206 = arith.mulf %100, %205 : vector<32x128xf32>
    %207 = vector.broadcast %44 : f32 to vector<32x128xf32>
    %208 = arith.addf %206, %207 : vector<32x128xf32>
    %cst_77 = arith.constant 0.000000e+00 : f32
    %209 = vector.broadcast %cst_77 : f32 to vector<32x128xf32>
    %210 = arith.maximumf %208, %209 : vector<32x128xf32>
    %211 = vector.broadcast %76 : f32 to vector<32x128xf32>
    %212 = arith.mulf %210, %211 : vector<32x128xf32>
    %213 = arith.addf %177, %212 : vector<32x128xf32>
    %214 = vector.broadcast %13 : f32 to vector<32x128xf32>
    %215 = arith.mulf %100, %214 : vector<32x128xf32>
    %216 = vector.broadcast %45 : f32 to vector<32x128xf32>
    %217 = arith.addf %215, %216 : vector<32x128xf32>
    %cst_78 = arith.constant 0.000000e+00 : f32
    %218 = vector.broadcast %cst_78 : f32 to vector<32x128xf32>
    %219 = arith.maximumf %217, %218 : vector<32x128xf32>
    %220 = vector.broadcast %77 : f32 to vector<32x128xf32>
    %221 = arith.mulf %219, %220 : vector<32x128xf32>
    %222 = arith.addf %186, %221 : vector<32x128xf32>
    %223 = vector.broadcast %14 : f32 to vector<32x128xf32>
    %224 = arith.mulf %100, %223 : vector<32x128xf32>
    %225 = vector.broadcast %46 : f32 to vector<32x128xf32>
    %226 = arith.addf %224, %225 : vector<32x128xf32>
    %cst_79 = arith.constant 0.000000e+00 : f32
    %227 = vector.broadcast %cst_79 : f32 to vector<32x128xf32>
    %228 = arith.maximumf %226, %227 : vector<32x128xf32>
    %229 = vector.broadcast %78 : f32 to vector<32x128xf32>
    %230 = arith.mulf %228, %229 : vector<32x128xf32>
    %231 = arith.addf %195, %230 : vector<32x128xf32>
    %232 = vector.broadcast %15 : f32 to vector<32x128xf32>
    %233 = arith.mulf %100, %232 : vector<32x128xf32>
    %234 = vector.broadcast %47 : f32 to vector<32x128xf32>
    %235 = arith.addf %233, %234 : vector<32x128xf32>
    %cst_80 = arith.constant 0.000000e+00 : f32
    %236 = vector.broadcast %cst_80 : f32 to vector<32x128xf32>
    %237 = arith.maximumf %235, %236 : vector<32x128xf32>
    %238 = vector.broadcast %79 : f32 to vector<32x128xf32>
    %239 = arith.mulf %237, %238 : vector<32x128xf32>
    %240 = arith.addf %204, %239 : vector<32x128xf32>
    %241 = vector.broadcast %16 : f32 to vector<32x128xf32>
    %242 = arith.mulf %100, %241 : vector<32x128xf32>
    %243 = vector.broadcast %48 : f32 to vector<32x128xf32>
    %244 = arith.addf %242, %243 : vector<32x128xf32>
    %cst_81 = arith.constant 0.000000e+00 : f32
    %245 = vector.broadcast %cst_81 : f32 to vector<32x128xf32>
    %246 = arith.maximumf %244, %245 : vector<32x128xf32>
    %247 = vector.broadcast %80 : f32 to vector<32x128xf32>
    %248 = arith.mulf %246, %247 : vector<32x128xf32>
    %249 = arith.addf %213, %248 : vector<32x128xf32>
    %250 = vector.broadcast %17 : f32 to vector<32x128xf32>
    %251 = arith.mulf %100, %250 : vector<32x128xf32>
    %252 = vector.broadcast %49 : f32 to vector<32x128xf32>
    %253 = arith.addf %251, %252 : vector<32x128xf32>
    %cst_82 = arith.constant 0.000000e+00 : f32
    %254 = vector.broadcast %cst_82 : f32 to vector<32x128xf32>
    %255 = arith.maximumf %253, %254 : vector<32x128xf32>
    %256 = vector.broadcast %81 : f32 to vector<32x128xf32>
    %257 = arith.mulf %255, %256 : vector<32x128xf32>
    %258 = arith.addf %222, %257 : vector<32x128xf32>
    %259 = vector.broadcast %18 : f32 to vector<32x128xf32>
    %260 = arith.mulf %100, %259 : vector<32x128xf32>
    %261 = vector.broadcast %50 : f32 to vector<32x128xf32>
    %262 = arith.addf %260, %261 : vector<32x128xf32>
    %cst_83 = arith.constant 0.000000e+00 : f32
    %263 = vector.broadcast %cst_83 : f32 to vector<32x128xf32>
    %264 = arith.maximumf %262, %263 : vector<32x128xf32>
    %265 = vector.broadcast %82 : f32 to vector<32x128xf32>
    %266 = arith.mulf %264, %265 : vector<32x128xf32>
    %267 = arith.addf %231, %266 : vector<32x128xf32>
    %268 = vector.broadcast %19 : f32 to vector<32x128xf32>
    %269 = arith.mulf %100, %268 : vector<32x128xf32>
    %270 = vector.broadcast %51 : f32 to vector<32x128xf32>
    %271 = arith.addf %269, %270 : vector<32x128xf32>
    %cst_84 = arith.constant 0.000000e+00 : f32
    %272 = vector.broadcast %cst_84 : f32 to vector<32x128xf32>
    %273 = arith.maximumf %271, %272 : vector<32x128xf32>
    %274 = vector.broadcast %83 : f32 to vector<32x128xf32>
    %275 = arith.mulf %273, %274 : vector<32x128xf32>
    %276 = arith.addf %240, %275 : vector<32x128xf32>
    %277 = vector.broadcast %20 : f32 to vector<32x128xf32>
    %278 = arith.mulf %100, %277 : vector<32x128xf32>
    %279 = vector.broadcast %52 : f32 to vector<32x128xf32>
    %280 = arith.addf %278, %279 : vector<32x128xf32>
    %cst_85 = arith.constant 0.000000e+00 : f32
    %281 = vector.broadcast %cst_85 : f32 to vector<32x128xf32>
    %282 = arith.maximumf %280, %281 : vector<32x128xf32>
    %283 = vector.broadcast %84 : f32 to vector<32x128xf32>
    %284 = arith.mulf %282, %283 : vector<32x128xf32>
    %285 = arith.addf %249, %284 : vector<32x128xf32>
    %286 = vector.broadcast %21 : f32 to vector<32x128xf32>
    %287 = arith.mulf %100, %286 : vector<32x128xf32>
    %288 = vector.broadcast %53 : f32 to vector<32x128xf32>
    %289 = arith.addf %287, %288 : vector<32x128xf32>
    %cst_86 = arith.constant 0.000000e+00 : f32
    %290 = vector.broadcast %cst_86 : f32 to vector<32x128xf32>
    %291 = arith.maximumf %289, %290 : vector<32x128xf32>
    %292 = vector.broadcast %85 : f32 to vector<32x128xf32>
    %293 = arith.mulf %291, %292 : vector<32x128xf32>
    %294 = arith.addf %258, %293 : vector<32x128xf32>
    %295 = vector.broadcast %22 : f32 to vector<32x128xf32>
    %296 = arith.mulf %100, %295 : vector<32x128xf32>
    %297 = vector.broadcast %54 : f32 to vector<32x128xf32>
    %298 = arith.addf %296, %297 : vector<32x128xf32>
    %cst_87 = arith.constant 0.000000e+00 : f32
    %299 = vector.broadcast %cst_87 : f32 to vector<32x128xf32>
    %300 = arith.maximumf %298, %299 : vector<32x128xf32>
    %301 = vector.broadcast %86 : f32 to vector<32x128xf32>
    %302 = arith.mulf %300, %301 : vector<32x128xf32>
    %303 = arith.addf %267, %302 : vector<32x128xf32>
    %304 = vector.broadcast %23 : f32 to vector<32x128xf32>
    %305 = arith.mulf %100, %304 : vector<32x128xf32>
    %306 = vector.broadcast %55 : f32 to vector<32x128xf32>
    %307 = arith.addf %305, %306 : vector<32x128xf32>
    %cst_88 = arith.constant 0.000000e+00 : f32
    %308 = vector.broadcast %cst_88 : f32 to vector<32x128xf32>
    %309 = arith.maximumf %307, %308 : vector<32x128xf32>
    %310 = vector.broadcast %87 : f32 to vector<32x128xf32>
    %311 = arith.mulf %309, %310 : vector<32x128xf32>
    %312 = arith.addf %276, %311 : vector<32x128xf32>
    %313 = vector.broadcast %24 : f32 to vector<32x128xf32>
    %314 = arith.mulf %100, %313 : vector<32x128xf32>
    %315 = vector.broadcast %56 : f32 to vector<32x128xf32>
    %316 = arith.addf %314, %315 : vector<32x128xf32>
    %cst_89 = arith.constant 0.000000e+00 : f32
    %317 = vector.broadcast %cst_89 : f32 to vector<32x128xf32>
    %318 = arith.maximumf %316, %317 : vector<32x128xf32>
    %319 = vector.broadcast %88 : f32 to vector<32x128xf32>
    %320 = arith.mulf %318, %319 : vector<32x128xf32>
    %321 = arith.addf %285, %320 : vector<32x128xf32>
    %322 = vector.broadcast %25 : f32 to vector<32x128xf32>
    %323 = arith.mulf %100, %322 : vector<32x128xf32>
    %324 = vector.broadcast %57 : f32 to vector<32x128xf32>
    %325 = arith.addf %323, %324 : vector<32x128xf32>
    %cst_90 = arith.constant 0.000000e+00 : f32
    %326 = vector.broadcast %cst_90 : f32 to vector<32x128xf32>
    %327 = arith.maximumf %325, %326 : vector<32x128xf32>
    %328 = vector.broadcast %89 : f32 to vector<32x128xf32>
    %329 = arith.mulf %327, %328 : vector<32x128xf32>
    %330 = arith.addf %294, %329 : vector<32x128xf32>
    %331 = vector.broadcast %26 : f32 to vector<32x128xf32>
    %332 = arith.mulf %100, %331 : vector<32x128xf32>
    %333 = vector.broadcast %58 : f32 to vector<32x128xf32>
    %334 = arith.addf %332, %333 : vector<32x128xf32>
    %cst_91 = arith.constant 0.000000e+00 : f32
    %335 = vector.broadcast %cst_91 : f32 to vector<32x128xf32>
    %336 = arith.maximumf %334, %335 : vector<32x128xf32>
    %337 = vector.broadcast %90 : f32 to vector<32x128xf32>
    %338 = arith.mulf %336, %337 : vector<32x128xf32>
    %339 = arith.addf %303, %338 : vector<32x128xf32>
    %340 = vector.broadcast %27 : f32 to vector<32x128xf32>
    %341 = arith.mulf %100, %340 : vector<32x128xf32>
    %342 = vector.broadcast %59 : f32 to vector<32x128xf32>
    %343 = arith.addf %341, %342 : vector<32x128xf32>
    %cst_92 = arith.constant 0.000000e+00 : f32
    %344 = vector.broadcast %cst_92 : f32 to vector<32x128xf32>
    %345 = arith.maximumf %343, %344 : vector<32x128xf32>
    %346 = vector.broadcast %91 : f32 to vector<32x128xf32>
    %347 = arith.mulf %345, %346 : vector<32x128xf32>
    %348 = arith.addf %312, %347 : vector<32x128xf32>
    %349 = vector.broadcast %28 : f32 to vector<32x128xf32>
    %350 = arith.mulf %100, %349 : vector<32x128xf32>
    %351 = vector.broadcast %60 : f32 to vector<32x128xf32>
    %352 = arith.addf %350, %351 : vector<32x128xf32>
    %cst_93 = arith.constant 0.000000e+00 : f32
    %353 = vector.broadcast %cst_93 : f32 to vector<32x128xf32>
    %354 = arith.maximumf %352, %353 : vector<32x128xf32>
    %355 = vector.broadcast %92 : f32 to vector<32x128xf32>
    %356 = arith.mulf %354, %355 : vector<32x128xf32>
    %357 = arith.addf %321, %356 : vector<32x128xf32>
    %358 = vector.broadcast %29 : f32 to vector<32x128xf32>
    %359 = arith.mulf %100, %358 : vector<32x128xf32>
    %360 = vector.broadcast %61 : f32 to vector<32x128xf32>
    %361 = arith.addf %359, %360 : vector<32x128xf32>
    %cst_94 = arith.constant 0.000000e+00 : f32
    %362 = vector.broadcast %cst_94 : f32 to vector<32x128xf32>
    %363 = arith.maximumf %361, %362 : vector<32x128xf32>
    %364 = vector.broadcast %93 : f32 to vector<32x128xf32>
    %365 = arith.mulf %363, %364 : vector<32x128xf32>
    %366 = arith.addf %330, %365 : vector<32x128xf32>
    %367 = vector.broadcast %30 : f32 to vector<32x128xf32>
    %368 = arith.mulf %100, %367 : vector<32x128xf32>
    %369 = vector.broadcast %62 : f32 to vector<32x128xf32>
    %370 = arith.addf %368, %369 : vector<32x128xf32>
    %cst_95 = arith.constant 0.000000e+00 : f32
    %371 = vector.broadcast %cst_95 : f32 to vector<32x128xf32>
    %372 = arith.maximumf %370, %371 : vector<32x128xf32>
    %373 = vector.broadcast %94 : f32 to vector<32x128xf32>
    %374 = arith.mulf %372, %373 : vector<32x128xf32>
    %375 = arith.addf %339, %374 : vector<32x128xf32>
    %376 = vector.broadcast %31 : f32 to vector<32x128xf32>
    %377 = arith.mulf %100, %376 : vector<32x128xf32>
    %378 = vector.broadcast %63 : f32 to vector<32x128xf32>
    %379 = arith.addf %377, %378 : vector<32x128xf32>
    %cst_96 = arith.constant 0.000000e+00 : f32
    %380 = vector.broadcast %cst_96 : f32 to vector<32x128xf32>
    %381 = arith.maximumf %379, %380 : vector<32x128xf32>
    %382 = vector.broadcast %95 : f32 to vector<32x128xf32>
    %383 = arith.mulf %381, %382 : vector<32x128xf32>
    %384 = arith.addf %348, %383 : vector<32x128xf32>
    %385 = arith.addf %357, %366 : vector<32x128xf32>
    %386 = arith.addf %375, %384 : vector<32x128xf32>
    %387 = arith.addf %385, %386 : vector<32x128xf32>
    %388 = vector.broadcast %96 : f32 to vector<32x128xf32>
    %389 = arith.addf %387, %388 : vector<32x128xf32>
    %cst_97 = arith.constant 0.000000e+00 : f32
    %390 = vector.broadcast %cst_97 : f32 to vector<32x128xf32>
    %391 = arith.maximumf %389, %390 : vector<32x128xf32>
    %392 = arith.index_cast %98 : i32 to index
    %c0_98 = arith.constant 0 : index
    %393 = vector.load %arg6[%392, %c0_98] : memref<56x128xf32, #tpu.memory_space<vmem>>, vector<32x128xf32>
    tpu.vector_store %arg6[%392, %c0_98], %391 {strides = array<i32>} : memref<56x128xf32, #tpu.memory_space<vmem>>, vector<32x128xf32>,
    %c1_i32 = arith.constant 1 : i32
    %c32 = arith.constant 32 : index
    %c0_99 = arith.constant 0 : index
    %394 = vector.load %arg5[%c32, %c0_99] : memref<56x128xf32, #tpu.memory_space<vmem>>, vector<24x128xf32>
    %395 = vector.broadcast %0 : f32 to vector<24x128xf32>
    %396 = arith.mulf %394, %395 : vector<24x128xf32>
    %397 = vector.broadcast %32 : f32 to vector<24x128xf32>
    %398 = arith.addf %396, %397 : vector<24x128xf32>
    %cst_100 = arith.constant 0.000000e+00 : f32
    %399 = vector.broadcast %cst_100 : f32 to vector<24x128xf32>
    %400 = arith.maximumf %398, %399 : vector<24x128xf32>
    %401 = vector.broadcast %64 : f32 to vector<24x128xf32>
    %402 = arith.mulf %400, %401 : vector<24x128xf32>
    %403 = vector.broadcast %1 : f32 to vector<24x128xf32>
    %404 = arith.mulf %394, %403 : vector<24x128xf32>
    %405 = vector.broadcast %33 : f32 to vector<24x128xf32>
    %406 = arith.addf %404, %405 : vector<24x128xf32>
    %cst_101 = arith.constant 0.000000e+00 : f32
    %407 = vector.broadcast %cst_101 : f32 to vector<24x128xf32>
    %408 = arith.maximumf %406, %407 : vector<24x128xf32>
    %409 = vector.broadcast %65 : f32 to vector<24x128xf32>
    %410 = arith.mulf %408, %409 : vector<24x128xf32>
    %411 = vector.broadcast %2 : f32 to vector<24x128xf32>
    %412 = arith.mulf %394, %411 : vector<24x128xf32>
    %413 = vector.broadcast %34 : f32 to vector<24x128xf32>
    %414 = arith.addf %412, %413 : vector<24x128xf32>
    %cst_102 = arith.constant 0.000000e+00 : f32
    %415 = vector.broadcast %cst_102 : f32 to vector<24x128xf32>
    %416 = arith.maximumf %414, %415 : vector<24x128xf32>
    %417 = vector.broadcast %66 : f32 to vector<24x128xf32>
    %418 = arith.mulf %416, %417 : vector<24x128xf32>
    %419 = vector.broadcast %3 : f32 to vector<24x128xf32>
    %420 = arith.mulf %394, %419 : vector<24x128xf32>
    %421 = vector.broadcast %35 : f32 to vector<24x128xf32>
    %422 = arith.addf %420, %421 : vector<24x128xf32>
    %cst_103 = arith.constant 0.000000e+00 : f32
    %423 = vector.broadcast %cst_103 : f32 to vector<24x128xf32>
    %424 = arith.maximumf %422, %423 : vector<24x128xf32>
    %425 = vector.broadcast %67 : f32 to vector<24x128xf32>
    %426 = arith.mulf %424, %425 : vector<24x128xf32>
    %427 = vector.broadcast %4 : f32 to vector<24x128xf32>
    %428 = arith.mulf %394, %427 : vector<24x128xf32>
    %429 = vector.broadcast %36 : f32 to vector<24x128xf32>
    %430 = arith.addf %428, %429 : vector<24x128xf32>
    %cst_104 = arith.constant 0.000000e+00 : f32
    %431 = vector.broadcast %cst_104 : f32 to vector<24x128xf32>
    %432 = arith.maximumf %430, %431 : vector<24x128xf32>
    %433 = vector.broadcast %68 : f32 to vector<24x128xf32>
    %434 = arith.mulf %432, %433 : vector<24x128xf32>
    %435 = arith.addf %402, %434 : vector<24x128xf32>
    %436 = vector.broadcast %5 : f32 to vector<24x128xf32>
    %437 = arith.mulf %394, %436 : vector<24x128xf32>
    %438 = vector.broadcast %37 : f32 to vector<24x128xf32>
    %439 = arith.addf %437, %438 : vector<24x128xf32>
    %cst_105 = arith.constant 0.000000e+00 : f32
    %440 = vector.broadcast %cst_105 : f32 to vector<24x128xf32>
    %441 = arith.maximumf %439, %440 : vector<24x128xf32>
    %442 = vector.broadcast %69 : f32 to vector<24x128xf32>
    %443 = arith.mulf %441, %442 : vector<24x128xf32>
    %444 = arith.addf %410, %443 : vector<24x128xf32>
    %445 = vector.broadcast %6 : f32 to vector<24x128xf32>
    %446 = arith.mulf %394, %445 : vector<24x128xf32>
    %447 = vector.broadcast %38 : f32 to vector<24x128xf32>
    %448 = arith.addf %446, %447 : vector<24x128xf32>
    %cst_106 = arith.constant 0.000000e+00 : f32
    %449 = vector.broadcast %cst_106 : f32 to vector<24x128xf32>
    %450 = arith.maximumf %448, %449 : vector<24x128xf32>
    %451 = vector.broadcast %70 : f32 to vector<24x128xf32>
    %452 = arith.mulf %450, %451 : vector<24x128xf32>
    %453 = arith.addf %418, %452 : vector<24x128xf32>
    %454 = vector.broadcast %7 : f32 to vector<24x128xf32>
    %455 = arith.mulf %394, %454 : vector<24x128xf32>
    %456 = vector.broadcast %39 : f32 to vector<24x128xf32>
    %457 = arith.addf %455, %456 : vector<24x128xf32>
    %cst_107 = arith.constant 0.000000e+00 : f32
    %458 = vector.broadcast %cst_107 : f32 to vector<24x128xf32>
    %459 = arith.maximumf %457, %458 : vector<24x128xf32>
    %460 = vector.broadcast %71 : f32 to vector<24x128xf32>
    %461 = arith.mulf %459, %460 : vector<24x128xf32>
    %462 = arith.addf %426, %461 : vector<24x128xf32>
    %463 = vector.broadcast %8 : f32 to vector<24x128xf32>
    %464 = arith.mulf %394, %463 : vector<24x128xf32>
    %465 = vector.broadcast %40 : f32 to vector<24x128xf32>
    %466 = arith.addf %464, %465 : vector<24x128xf32>
    %cst_108 = arith.constant 0.000000e+00 : f32
    %467 = vector.broadcast %cst_108 : f32 to vector<24x128xf32>
    %468 = arith.maximumf %466, %467 : vector<24x128xf32>
    %469 = vector.broadcast %72 : f32 to vector<24x128xf32>
    %470 = arith.mulf %468, %469 : vector<24x128xf32>
    %471 = arith.addf %435, %470 : vector<24x128xf32>
    %472 = vector.broadcast %9 : f32 to vector<24x128xf32>
    %473 = arith.mulf %394, %472 : vector<24x128xf32>
    %474 = vector.broadcast %41 : f32 to vector<24x128xf32>
    %475 = arith.addf %473, %474 : vector<24x128xf32>
    %cst_109 = arith.constant 0.000000e+00 : f32
    %476 = vector.broadcast %cst_109 : f32 to vector<24x128xf32>
    %477 = arith.maximumf %475, %476 : vector<24x128xf32>
    %478 = vector.broadcast %73 : f32 to vector<24x128xf32>
    %479 = arith.mulf %477, %478 : vector<24x128xf32>
    %480 = arith.addf %444, %479 : vector<24x128xf32>
    %481 = vector.broadcast %10 : f32 to vector<24x128xf32>
    %482 = arith.mulf %394, %481 : vector<24x128xf32>
    %483 = vector.broadcast %42 : f32 to vector<24x128xf32>
    %484 = arith.addf %482, %483 : vector<24x128xf32>
    %cst_110 = arith.constant 0.000000e+00 : f32
    %485 = vector.broadcast %cst_110 : f32 to vector<24x128xf32>
    %486 = arith.maximumf %484, %485 : vector<24x128xf32>
    %487 = vector.broadcast %74 : f32 to vector<24x128xf32>
    %488 = arith.mulf %486, %487 : vector<24x128xf32>
    %489 = arith.addf %453, %488 : vector<24x128xf32>
    %490 = vector.broadcast %11 : f32 to vector<24x128xf32>
    %491 = arith.mulf %394, %490 : vector<24x128xf32>
    %492 = vector.broadcast %43 : f32 to vector<24x128xf32>
    %493 = arith.addf %491, %492 : vector<24x128xf32>
    %cst_111 = arith.constant 0.000000e+00 : f32
    %494 = vector.broadcast %cst_111 : f32 to vector<24x128xf32>
    %495 = arith.maximumf %493, %494 : vector<24x128xf32>
    %496 = vector.broadcast %75 : f32 to vector<24x128xf32>
    %497 = arith.mulf %495, %496 : vector<24x128xf32>
    %498 = arith.addf %462, %497 : vector<24x128xf32>
    %499 = vector.broadcast %12 : f32 to vector<24x128xf32>
    %500 = arith.mulf %394, %499 : vector<24x128xf32>
    %501 = vector.broadcast %44 : f32 to vector<24x128xf32>
    %502 = arith.addf %500, %501 : vector<24x128xf32>
    %cst_112 = arith.constant 0.000000e+00 : f32
    %503 = vector.broadcast %cst_112 : f32 to vector<24x128xf32>
    %504 = arith.maximumf %502, %503 : vector<24x128xf32>
    %505 = vector.broadcast %76 : f32 to vector<24x128xf32>
    %506 = arith.mulf %504, %505 : vector<24x128xf32>
    %507 = arith.addf %471, %506 : vector<24x128xf32>
    %508 = vector.broadcast %13 : f32 to vector<24x128xf32>
    %509 = arith.mulf %394, %508 : vector<24x128xf32>
    %510 = vector.broadcast %45 : f32 to vector<24x128xf32>
    %511 = arith.addf %509, %510 : vector<24x128xf32>
    %cst_113 = arith.constant 0.000000e+00 : f32
    %512 = vector.broadcast %cst_113 : f32 to vector<24x128xf32>
    %513 = arith.maximumf %511, %512 : vector<24x128xf32>
    %514 = vector.broadcast %77 : f32 to vector<24x128xf32>
    %515 = arith.mulf %513, %514 : vector<24x128xf32>
    %516 = arith.addf %480, %515 : vector<24x128xf32>
    %517 = vector.broadcast %14 : f32 to vector<24x128xf32>
    %518 = arith.mulf %394, %517 : vector<24x128xf32>
    %519 = vector.broadcast %46 : f32 to vector<24x128xf32>
    %520 = arith.addf %518, %519 : vector<24x128xf32>
    %cst_114 = arith.constant 0.000000e+00 : f32
    %521 = vector.broadcast %cst_114 : f32 to vector<24x128xf32>
    %522 = arith.maximumf %520, %521 : vector<24x128xf32>
    %523 = vector.broadcast %78 : f32 to vector<24x128xf32>
    %524 = arith.mulf %522, %523 : vector<24x128xf32>
    %525 = arith.addf %489, %524 : vector<24x128xf32>
    %526 = vector.broadcast %15 : f32 to vector<24x128xf32>
    %527 = arith.mulf %394, %526 : vector<24x128xf32>
    %528 = vector.broadcast %47 : f32 to vector<24x128xf32>
    %529 = arith.addf %527, %528 : vector<24x128xf32>
    %cst_115 = arith.constant 0.000000e+00 : f32
    %530 = vector.broadcast %cst_115 : f32 to vector<24x128xf32>
    %531 = arith.maximumf %529, %530 : vector<24x128xf32>
    %532 = vector.broadcast %79 : f32 to vector<24x128xf32>
    %533 = arith.mulf %531, %532 : vector<24x128xf32>
    %534 = arith.addf %498, %533 : vector<24x128xf32>
    %535 = vector.broadcast %16 : f32 to vector<24x128xf32>
    %536 = arith.mulf %394, %535 : vector<24x128xf32>
    %537 = vector.broadcast %48 : f32 to vector<24x128xf32>
    %538 = arith.addf %536, %537 : vector<24x128xf32>
    %cst_116 = arith.constant 0.000000e+00 : f32
    %539 = vector.broadcast %cst_116 : f32 to vector<24x128xf32>
    %540 = arith.maximumf %538, %539 : vector<24x128xf32>
    %541 = vector.broadcast %80 : f32 to vector<24x128xf32>
    %542 = arith.mulf %540, %541 : vector<24x128xf32>
    %543 = arith.addf %507, %542 : vector<24x128xf32>
    %544 = vector.broadcast %17 : f32 to vector<24x128xf32>
    %545 = arith.mulf %394, %544 : vector<24x128xf32>
    %546 = vector.broadcast %49 : f32 to vector<24x128xf32>
    %547 = arith.addf %545, %546 : vector<24x128xf32>
    %cst_117 = arith.constant 0.000000e+00 : f32
    %548 = vector.broadcast %cst_117 : f32 to vector<24x128xf32>
    %549 = arith.maximumf %547, %548 : vector<24x128xf32>
    %550 = vector.broadcast %81 : f32 to vector<24x128xf32>
    %551 = arith.mulf %549, %550 : vector<24x128xf32>
    %552 = arith.addf %516, %551 : vector<24x128xf32>
    %553 = vector.broadcast %18 : f32 to vector<24x128xf32>
    %554 = arith.mulf %394, %553 : vector<24x128xf32>
    %555 = vector.broadcast %50 : f32 to vector<24x128xf32>
    %556 = arith.addf %554, %555 : vector<24x128xf32>
    %cst_118 = arith.constant 0.000000e+00 : f32
    %557 = vector.broadcast %cst_118 : f32 to vector<24x128xf32>
    %558 = arith.maximumf %556, %557 : vector<24x128xf32>
    %559 = vector.broadcast %82 : f32 to vector<24x128xf32>
    %560 = arith.mulf %558, %559 : vector<24x128xf32>
    %561 = arith.addf %525, %560 : vector<24x128xf32>
    %562 = vector.broadcast %19 : f32 to vector<24x128xf32>
    %563 = arith.mulf %394, %562 : vector<24x128xf32>
    %564 = vector.broadcast %51 : f32 to vector<24x128xf32>
    %565 = arith.addf %563, %564 : vector<24x128xf32>
    %cst_119 = arith.constant 0.000000e+00 : f32
    %566 = vector.broadcast %cst_119 : f32 to vector<24x128xf32>
    %567 = arith.maximumf %565, %566 : vector<24x128xf32>
    %568 = vector.broadcast %83 : f32 to vector<24x128xf32>
    %569 = arith.mulf %567, %568 : vector<24x128xf32>
    %570 = arith.addf %534, %569 : vector<24x128xf32>
    %571 = vector.broadcast %20 : f32 to vector<24x128xf32>
    %572 = arith.mulf %394, %571 : vector<24x128xf32>
    %573 = vector.broadcast %52 : f32 to vector<24x128xf32>
    %574 = arith.addf %572, %573 : vector<24x128xf32>
    %cst_120 = arith.constant 0.000000e+00 : f32
    %575 = vector.broadcast %cst_120 : f32 to vector<24x128xf32>
    %576 = arith.maximumf %574, %575 : vector<24x128xf32>
    %577 = vector.broadcast %84 : f32 to vector<24x128xf32>
    %578 = arith.mulf %576, %577 : vector<24x128xf32>
    %579 = arith.addf %543, %578 : vector<24x128xf32>
    %580 = vector.broadcast %21 : f32 to vector<24x128xf32>
    %581 = arith.mulf %394, %580 : vector<24x128xf32>
    %582 = vector.broadcast %53 : f32 to vector<24x128xf32>
    %583 = arith.addf %581, %582 : vector<24x128xf32>
    %cst_121 = arith.constant 0.000000e+00 : f32
    %584 = vector.broadcast %cst_121 : f32 to vector<24x128xf32>
    %585 = arith.maximumf %583, %584 : vector<24x128xf32>
    %586 = vector.broadcast %85 : f32 to vector<24x128xf32>
    %587 = arith.mulf %585, %586 : vector<24x128xf32>
    %588 = arith.addf %552, %587 : vector<24x128xf32>
    %589 = vector.broadcast %22 : f32 to vector<24x128xf32>
    %590 = arith.mulf %394, %589 : vector<24x128xf32>
    %591 = vector.broadcast %54 : f32 to vector<24x128xf32>
    %592 = arith.addf %590, %591 : vector<24x128xf32>
    %cst_122 = arith.constant 0.000000e+00 : f32
    %593 = vector.broadcast %cst_122 : f32 to vector<24x128xf32>
    %594 = arith.maximumf %592, %593 : vector<24x128xf32>
    %595 = vector.broadcast %86 : f32 to vector<24x128xf32>
    %596 = arith.mulf %594, %595 : vector<24x128xf32>
    %597 = arith.addf %561, %596 : vector<24x128xf32>
    %598 = vector.broadcast %23 : f32 to vector<24x128xf32>
    %599 = arith.mulf %394, %598 : vector<24x128xf32>
    %600 = vector.broadcast %55 : f32 to vector<24x128xf32>
    %601 = arith.addf %599, %600 : vector<24x128xf32>
    %cst_123 = arith.constant 0.000000e+00 : f32
    %602 = vector.broadcast %cst_123 : f32 to vector<24x128xf32>
    %603 = arith.maximumf %601, %602 : vector<24x128xf32>
    %604 = vector.broadcast %87 : f32 to vector<24x128xf32>
    %605 = arith.mulf %603, %604 : vector<24x128xf32>
    %606 = arith.addf %570, %605 : vector<24x128xf32>
    %607 = vector.broadcast %24 : f32 to vector<24x128xf32>
    %608 = arith.mulf %394, %607 : vector<24x128xf32>
    %609 = vector.broadcast %56 : f32 to vector<24x128xf32>
    %610 = arith.addf %608, %609 : vector<24x128xf32>
    %cst_124 = arith.constant 0.000000e+00 : f32
    %611 = vector.broadcast %cst_124 : f32 to vector<24x128xf32>
    %612 = arith.maximumf %610, %611 : vector<24x128xf32>
    %613 = vector.broadcast %88 : f32 to vector<24x128xf32>
    %614 = arith.mulf %612, %613 : vector<24x128xf32>
    %615 = arith.addf %579, %614 : vector<24x128xf32>
    %616 = vector.broadcast %25 : f32 to vector<24x128xf32>
    %617 = arith.mulf %394, %616 : vector<24x128xf32>
    %618 = vector.broadcast %57 : f32 to vector<24x128xf32>
    %619 = arith.addf %617, %618 : vector<24x128xf32>
    %cst_125 = arith.constant 0.000000e+00 : f32
    %620 = vector.broadcast %cst_125 : f32 to vector<24x128xf32>
    %621 = arith.maximumf %619, %620 : vector<24x128xf32>
    %622 = vector.broadcast %89 : f32 to vector<24x128xf32>
    %623 = arith.mulf %621, %622 : vector<24x128xf32>
    %624 = arith.addf %588, %623 : vector<24x128xf32>
    %625 = vector.broadcast %26 : f32 to vector<24x128xf32>
    %626 = arith.mulf %394, %625 : vector<24x128xf32>
    %627 = vector.broadcast %58 : f32 to vector<24x128xf32>
    %628 = arith.addf %626, %627 : vector<24x128xf32>
    %cst_126 = arith.constant 0.000000e+00 : f32
    %629 = vector.broadcast %cst_126 : f32 to vector<24x128xf32>
    %630 = arith.maximumf %628, %629 : vector<24x128xf32>
    %631 = vector.broadcast %90 : f32 to vector<24x128xf32>
    %632 = arith.mulf %630, %631 : vector<24x128xf32>
    %633 = arith.addf %597, %632 : vector<24x128xf32>
    %634 = vector.broadcast %27 : f32 to vector<24x128xf32>
    %635 = arith.mulf %394, %634 : vector<24x128xf32>
    %636 = vector.broadcast %59 : f32 to vector<24x128xf32>
    %637 = arith.addf %635, %636 : vector<24x128xf32>
    %cst_127 = arith.constant 0.000000e+00 : f32
    %638 = vector.broadcast %cst_127 : f32 to vector<24x128xf32>
    %639 = arith.maximumf %637, %638 : vector<24x128xf32>
    %640 = vector.broadcast %91 : f32 to vector<24x128xf32>
    %641 = arith.mulf %639, %640 : vector<24x128xf32>
    %642 = arith.addf %606, %641 : vector<24x128xf32>
    %643 = vector.broadcast %28 : f32 to vector<24x128xf32>
    %644 = arith.mulf %394, %643 : vector<24x128xf32>
    %645 = vector.broadcast %60 : f32 to vector<24x128xf32>
    %646 = arith.addf %644, %645 : vector<24x128xf32>
    %cst_128 = arith.constant 0.000000e+00 : f32
    %647 = vector.broadcast %cst_128 : f32 to vector<24x128xf32>
    %648 = arith.maximumf %646, %647 : vector<24x128xf32>
    %649 = vector.broadcast %92 : f32 to vector<24x128xf32>
    %650 = arith.mulf %648, %649 : vector<24x128xf32>
    %651 = arith.addf %615, %650 : vector<24x128xf32>
    %652 = vector.broadcast %29 : f32 to vector<24x128xf32>
    %653 = arith.mulf %394, %652 : vector<24x128xf32>
    %654 = vector.broadcast %61 : f32 to vector<24x128xf32>
    %655 = arith.addf %653, %654 : vector<24x128xf32>
    %cst_129 = arith.constant 0.000000e+00 : f32
    %656 = vector.broadcast %cst_129 : f32 to vector<24x128xf32>
    %657 = arith.maximumf %655, %656 : vector<24x128xf32>
    %658 = vector.broadcast %93 : f32 to vector<24x128xf32>
    %659 = arith.mulf %657, %658 : vector<24x128xf32>
    %660 = arith.addf %624, %659 : vector<24x128xf32>
    %661 = vector.broadcast %30 : f32 to vector<24x128xf32>
    %662 = arith.mulf %394, %661 : vector<24x128xf32>
    %663 = vector.broadcast %62 : f32 to vector<24x128xf32>
    %664 = arith.addf %662, %663 : vector<24x128xf32>
    %cst_130 = arith.constant 0.000000e+00 : f32
    %665 = vector.broadcast %cst_130 : f32 to vector<24x128xf32>
    %666 = arith.maximumf %664, %665 : vector<24x128xf32>
    %667 = vector.broadcast %94 : f32 to vector<24x128xf32>
    %668 = arith.mulf %666, %667 : vector<24x128xf32>
    %669 = arith.addf %633, %668 : vector<24x128xf32>
    %670 = vector.broadcast %31 : f32 to vector<24x128xf32>
    %671 = arith.mulf %394, %670 : vector<24x128xf32>
    %672 = vector.broadcast %63 : f32 to vector<24x128xf32>
    %673 = arith.addf %671, %672 : vector<24x128xf32>
    %cst_131 = arith.constant 0.000000e+00 : f32
    %674 = vector.broadcast %cst_131 : f32 to vector<24x128xf32>
    %675 = arith.maximumf %673, %674 : vector<24x128xf32>
    %676 = vector.broadcast %95 : f32 to vector<24x128xf32>
    %677 = arith.mulf %675, %676 : vector<24x128xf32>
    %678 = arith.addf %642, %677 : vector<24x128xf32>
    %679 = arith.addf %651, %660 : vector<24x128xf32>
    %680 = arith.addf %669, %678 : vector<24x128xf32>
    %681 = arith.addf %679, %680 : vector<24x128xf32>
    %682 = vector.broadcast %96 : f32 to vector<24x128xf32>
    %683 = arith.addf %681, %682 : vector<24x128xf32>
    %cst_132 = arith.constant 0.000000e+00 : f32
    %684 = vector.broadcast %cst_132 : f32 to vector<24x128xf32>
    %685 = arith.maximumf %683, %684 : vector<24x128xf32>
    %c32_133 = arith.constant 32 : index
    %c0_134 = arith.constant 0 : index
    %686 = vector.load %arg6[%c32_133, %c0_134] : memref<56x128xf32, #tpu.memory_space<vmem>>, vector<24x128xf32>
    tpu.vector_store %arg6[%c32_133, %c0_134], %685 {strides = array<i32>} : memref<56x128xf32, #tpu.memory_space<vmem>>, vector<24x128xf32>,
    return
  }
  func.func @transform_0(%arg0: i32) -> i32 {
    %c0_i32 = arith.constant 0 : i32
    %c0_i32_0 = arith.constant 0 : i32
    return %c0_i32 : i32
  }
  func.func @transform_1(%arg0: i32) -> i32 {
    %c0_i32 = arith.constant 0 : i32
    %c0_i32_0 = arith.constant 0 : i32
    return %c0_i32 : i32
  }
  func.func @transform_2(%arg0: i32) -> i32 {
    %c0_i32 = arith.constant 0 : i32
    %c0_i32_0 = arith.constant 0 : i32
    return %c0_i32 : i32
  }
  func.func @transform_3(%arg0: i32) -> i32 {
    %c0_i32 = arith.constant 0 : i32
    %c0_i32_0 = arith.constant 0 : i32
    return %c0_i32 : i32
  }
  func.func @transform_4(%arg0: i32) -> (i32, i32) {
    %c0_i32 = arith.constant 0 : i32
    %c0_i32_0 = arith.constant 0 : i32
    return %arg0, %c0_i32 : i32, i32
  }
  func.func @transform_5(%arg0: i32) -> (i32, i32) {
    %c0_i32 = arith.constant 0 : i32
    %c0_i32_0 = arith.constant 0 : i32
    return %arg0, %c0_i32 : i32, i32
  }
}

</mosaic_0001>

<bundles_post_ra>
// kernel: tpu_custom_call.1
= control target key start
LH: loop header
LB: loop body
LE: loop exit
PB: predicated region body
PF: predicated region fallthrough
CT: control target
= control target key end

     0   :  { %11 = vsyncpa [#allocation6], 0  ;;  %s3939_s0 = inlined_call_operand.vmem [shape: f32[32], index: 0, kind: input, shape index: {}]   ;;  %s3940_s1 = inlined_call_operand.vmem [shape: f32[32], index: 1, kind: input, shape index: {}]   ;;  %s3941_s2 = inlined_call_operand.vmem [shape: f32[32], index: 2, kind: input, shape index: {}]   ;;  %s3942_s3 = inlined_call_operand.<no memory space> [shape: f32[1], index: 3, kind: input, shape index: {}]   ;;  %s3943_s4 = inlined_call_operand.hbm [shape: f32[50,128], index: 4, kind: input, shape index: {}]   ;;  %s3944_s5 = inlined_call_operand.hbm [shape: f32[50,128], index: 5, kind: output, shape index: {}]  }
   0x1   :  { %12 = vsyncpa [#allocation8], 0 }
   0x2   :  { %13 = vsyncpa [#allocation4], 0  ;;  %s31_s20 = sshll.u32 %s3940_s1, 4  ;;  %s32_s20 = int_to_ptr.vmem [resolvable:$true] %s31_s20 }
   0x3   :  { %14 = vsyncpa [#allocation5], 0  ;;  %s21_s23 = sshll.u32 %s3939_s0, 4  ;;  %s1530_s24 = scalar_lea.vmem %s32_s20, 16  ;;  %s22_s23 = int_to_ptr.vmem [resolvable:$true] %s21_s23 }
   0x4   :  { %p1531_p0 = scmp.ne.s32.totalorder %s32_s20, %s1530_s24  ;;  %p1535_p1 = scmp.lt.s32.totalorder %s32_s20, %s32_s20 }
   0x5   :  { %p1536_p2 = scmp.lt.s32.totalorder %s1530_s24, %s1530_s24 }
   0x7   :  { %p1537_p3 = por %p1536_p2, %p1535_p1 }
   0x9   :  { %p1538_p4 = pnand %p1537_p3, %p1531_p0 }
   0xb   :  { %1541 = shalt.err (!%p1538_p4)
}
   0xc   :  { %s1614_s25 = smov [#allocation7]   ;;  %s1542_s26 = scalar_lea.vmem %s22_s23, 16 }
   0xd   :  { %34 = dma.vmem_to_smem %s32_s20, 16, %s1614_s25, [#allocation8]  }
   0xe   :  { %p1543_p5 = scmp.ne.s32.totalorder %s22_s23, %s1542_s26  ;;  %p1547_p6 = scmp.lt.s32.totalorder %s22_s23, %s22_s23 }
   0xf   :  { %p1548_p7 = scmp.lt.s32.totalorder %s1542_s26, %s1542_s26 }
  0x11   :  { %p1549_p8 = por %p1548_p7, %p1547_p6 }
  0x13   :  { %p1550_p9 = pnand %p1549_p8, %p1543_p5 }
  0x15   :  { %1553 = shalt.err (!%p1550_p9)
}
  0x16   :  { %s1615_s1 = smov [#allocation3]   ;;  %s41_s28 = sshll.u32 %s3941_s2, 4  ;;  %s42_s28 = int_to_ptr.vmem [resolvable:$true] %s41_s28 }
  0x17   :  { %24 = dma.vmem_to_smem %s22_s23, 16, %s1615_s1, [#allocation6]  }
  0x18   :  { %s1554_s29 = scalar_lea.vmem %s42_s28, 16  ;;  %p1559_p11 = scmp.lt.s32.totalorder %s42_s28, %s42_s28 }
  0x19   :  { %p1555_p10 = scmp.ne.s32.totalorder %s42_s28, %s1554_s29  ;;  %p1560_p12 = scmp.lt.s32.totalorder %s1554_s29, %s1554_s29 }
  0x1b   :  { %p1561_p13 = por %p1560_p12, %p1559_p11 }
  0x1d   :  { %p1562_p0 = pnand %p1561_p13, %p1555_p10 }
  0x1f   :  { %1565 = shalt.err (!%p1562_p0)
}
  0x20   :  { %s1616_s30 = smov [#allocation9]   ;;  %s1617_s6 = smov [#allocation10]  }
  0x21   :  { %44 = dma.vmem_to_smem %s42_s28, 16, %s1616_s30, [#allocation8]  }
  0x22   :  { %s52_s7 = sshll.u32 %s1617_s6, 4  ;;  %s53_s7 = int_to_ptr.vmem [resolvable:$true] %s52_s7 }
  0x23   :  { %s1574_s8 = scalar_lea.vmem %s53_s7, 896  ;;  %p1579_p2 = scmp.lt.s32.totalorder %s53_s7, %s53_s7 }
  0x24   :  { %p1575_p1 = scmp.ne.s32.totalorder %s53_s7, %s1574_s8  ;;  %p1580_p3 = scmp.lt.s32.totalorder %s1574_s8, %s1574_s8 }
  0x26   :  { %p1581_p4 = por %p1580_p3, %p1579_p2 }
  0x28   :  { %p1582_p5 = pnand %p1581_p4, %p1575_p1 }
  0x2a   :  { %1585 = shalt.err (!%p1582_p5)
}
  0x2b   :  { %s1618_s2 = smov 128   ;;  %s1619_s9 = smov 8  }
  0x2c   :  { %58 = dma.hbm_to_vmem [thread:$0]  %s3943_s4, 896, %s53_s7, [#allocation4], %s1618_s2, %s1618_s2, %s1619_s9  }
  0x2d   :  { %1606 = dma.done.wait [#allocation6], 16  }
  0x2e   :  { %1607 = vsyncadd [#allocation6], 4294967280 }
  0x2f   :  { %1608 = dma.done.wait [#allocation8], 32  }
  0x30   :  { %1609 = vsyncadd [#allocation8], 4294967264 }
  0x31   :  { %1610 = dma.done.wait [#allocation4], 896  }
  0x32   :  { %1611 = vsyncadd [#allocation4], 4294966400 }
  0x33   :  { %71 = sfence }
  0x34   :  { %s72_s12 = sld [smem:[#allocation3]]  ;;  %v1668_v0 = vld [vmem:[#allocation10] sm:$0xff]  ;;  %v1670_v1 = vld [vmem:[#allocation10 + $0x8] sm:$0xff]  ;;  %v1676_v3 = vld [vmem:[#allocation10 + $0x10] sm:$0xff] }
  0x35   :  { %s1426_s13 = sld [smem:[#allocation3 + $0x1]]  ;;  %v1678_v4 = vld [vmem:[#allocation10 + $0x18] sm:$0xff] }
  0x36   :  { %s1427_s14 = sld [smem:[#allocation3 + $0x2]] }
  0x37   :  { %s1428_s15 = sld [smem:[#allocation3 + $0x3]] }
  0x38   :  { %s1429_s16 = sld [smem:[#allocation3 + $0x4]] }
  0x39   :  { %s1430_s17 = sld [smem:[#allocation3 + $0x5]] }
  0x3a   :  { %s1666_s18 = sld [smem:[#allocation3 + $0x6]]  ;;  %v1672_v2 = vstv %s72_s12 }
  0x3b   :  { %4095 = vst [vmem:[#allocation16_spill] sm:$0xff] %v1672_v2  ;;  %s1674_s4 = sld [smem:[#allocation3 + $0x7]]  ;;  %v1682_v5 = vstv %s1426_s13  ;;  %v1688_v6 = vmul.f32 %v1672_v2, %v1668_v0  ;;  %v1692_v7 = vmul.f32 %v1672_v2, %v1670_v1  ;;  %v1698_v9 = vmul.f32 %v1672_v2, %v1676_v3 }
  0x3c   :  { %s1680_s19 = sld [smem:[#allocation3 + $0x8]]  ;;  %4096 = vst [vmem:[#allocation17_spill] sm:$0xff] %v1682_v5  ;;  %v1694_v8 = vstv %s1427_s14  ;;  %v1702_v10 = vmul.f32 %v1672_v2, %v1678_v4  ;;  %v1706_v11 = vmul.f32 %v1682_v5, %v1668_v0  ;;  %v1710_v12 = vmul.f32 %v1682_v5, %v1670_v1 }
  0x3d   :  { %s1684_s20 = sld [smem:[#allocation3 + $0x9]]  ;;  %4097 = vst [vmem:[#allocation18_spill] sm:$0xff] %v1694_v8  ;;  %v1716_v13 = vmul.f32 %v1682_v5, %v1676_v3  ;;  %v1720_v14 = vmul.f32 %v1682_v5, %v1678_v4  ;;  %v1722_v15 = vstv %s1428_s15  ;;  %v1730_v17 = vmul.f32 %v1694_v8, %v1668_v0 }
  0x3e   :  { %s1712_s21 = sld [smem:[#allocation3 + $0xa]]  ;;  %4098 = vst [vmem:[#allocation19_spill] sm:$0xff] %v1722_v15  ;;  %v1724_v16 = vstv %s1429_s16  ;;  %v1734_v18 = vmul.f32 %v1694_v8, %v1670_v1  ;;  %v1738_v19 = vmul.f32 %v1694_v8, %v1676_v3  ;;  %v1746_v21 = vmul.f32 %v1694_v8, %v1678_v4 }
  0x3f   :  { %4099 = vst [vmem:[#allocation20_spill] sm:$0xff] %v1724_v16  ;;  %s1726_s22 = sld [smem:[#allocation3 + $0xb]]  ;;  %v1740_v20 = vstv %s1430_s17  ;;  %v1750_v22 = vmul.f32 %v1722_v15, %v1668_v0  ;;  %v1754_v23 = vmul.f32 %v1722_v15, %v1670_v1  ;;  %v1758_v24 = vmul.f32 %v1722_v15, %v1676_v3 }
  0x40   :  { %4100 = vst [vmem:[#allocation21_spill] sm:$0xff] %v1740_v20  ;;  %s1742_s23 = sld [smem:[#allocation3 + $0xc]]  ;;  %v1764_v25 = vmul.f32 %v1722_v15, %v1678_v4  ;;  %v1768_v26 = vmul.f32 %v1724_v16, %v1668_v0  ;;  %v1772_v27 = vmul.f32 %v1724_v16, %v1670_v1  ;;  %v1776_v28 = vmul.f32 %v1724_v16, %v1676_v3 }
  0x41   :  { %s1760_s24 = sld [smem:[#allocation3 + $0xd]]  ;;  %v1780_v29 = vmul.f32 %v1724_v16, %v1678_v4  ;;  %v1784_v30 = vmul.f32 %v1740_v20, %v1668_v0  ;;  %v1787_v31 = vstv %s1666_s18  ;;  %v1790_v32 = vstv %s1674_s4 }
  0x42   :  { %4101 = vst [vmem:[#allocation22_spill] sm:$0xff] %v1787_v31  ;;  %4102 = vst [vmem:[#allocation23_spill] sm:$0xff] %v1790_v32  ;;  %s1792_s25 = sld [smem:[#allocation3 + $0xe]]  ;;  %v1796_v33 = vmul.f32 %v1740_v20, %v1670_v1  ;;  %v1800_v34 = vmul.f32 %v1740_v20, %v1676_v3  ;;  %v1804_v35 = vmul.f32 %v1740_v20, %v1678_v4  ;;  %v1807_v36 = vstv %s1680_s19 }
  0x43   :  { %4103 = vst [vmem:[#allocation24_spill] sm:$0xff] %v1807_v36  ;;  %s1809_s26 = sld [smem:[#allocation3 + $0xf]]  ;;  %v1813_v37 = vmul.f32 %v1787_v31, %v1668_v0  ;;  %v1817_v38 = vmul.f32 %v1787_v31, %v1670_v1  ;;  %v1821_v39 = vmul.f32 %v1787_v31, %v1676_v3  ;;  %v1824_v40 = vstv %s1684_s20 }
  0x44   :  { %4104 = vst [vmem:[#allocation25_spill] sm:$0xff] %v1824_v40  ;;  %s1826_s1 = sld [smem:[#allocation3 + $0x10]]  ;;  %v1830_v41 = vmul.f32 %v1787_v31, %v1678_v4  ;;  %v1834_v42 = vmul.f32 %v1790_v32, %v1668_v0  ;;  %v1838_v43 = vmul.f32 %v1790_v32, %v1670_v1  ;;  %v1842_v44 = vmul.f32 %v1790_v32, %v1676_v3 }
  0x45   :  { %s1844_s0 = sld [smem:[#allocation3 + $0x11]]  ;;  %v1848_v45 = vmul.f32 %v1790_v32, %v1678_v4  ;;  %v1852_v46 = vmul.f32 %v1807_v36, %v1668_v0  ;;  %v1856_v47 = vmul.f32 %v1807_v36, %v1670_v1  ;;  %v1860_v48 = vmul.f32 %v1807_v36, %v1676_v3 }
  0x46   :  { %v1864_v49 = vmul.f32 %v1807_v36, %v1678_v4  ;;  %v1868_v50 = vmul.f32 %v1824_v40, %v1668_v0  ;;  %v1871_v51 = vstv %s1712_s21  ;;  %v1874_v52 = vstv %s1726_s22  ;;  %s1876_s27 = sld [smem:[#allocation3 + $0x12]] }
  0x47   :  { %4105 = vst [vmem:[#allocation26_spill] sm:$0xff] %v1871_v51  ;;  %4106 = vst [vmem:[#allocation27_spill] sm:$0xff] %v1874_v52  ;;  %v1880_v53 = vmul.f32 %v1824_v40, %v1670_v1  ;;  %v1884_v54 = vmul.f32 %v1824_v40, %v1676_v3  ;;  %v1888_v55 = vmul.f32 %v1824_v40, %v1678_v4  ;;  %v1891_v56 = vstv %s1742_s23  ;;  %s1893_s28 = sld [smem:[#allocation3 + $0x13]] }
  0x48   :  { %4107 = vst [vmem:[#allocation28_spill] sm:$0xff] %v1891_v56  ;;  %v1897_v57 = vmul.f32 %v1871_v51, %v1668_v0  ;;  %v1901_v58 = vmul.f32 %v1871_v51, %v1670_v1  ;;  %v1905_v59 = vmul.f32 %v1871_v51, %v1676_v3  ;;  %v1908_v60 = vstv %s1760_s24  ;;  %s1910_s29 = sld [smem:[#allocation3 + $0x14]] }
  0x49   :  { %4108 = vst [vmem:[#allocation29_spill] sm:$0xff] %v1908_v60  ;;  %v1914_v61 = vmul.f32 %v1871_v51, %v1678_v4  ;;  %v1918_v62 = vmul.f32 %v1874_v52, %v1668_v0  ;;  %v1922_v63 = vmul.f32 %v1874_v52, %v1670_v1  ;;  %v1926_v40 = vmul.f32 %v1874_v52, %v1676_v3  ;;  %s1928_s30 = sld [smem:[#allocation3 + $0x15]] }
  0x4a   :  { %v1932_v36 = vmul.f32 %v1874_v52, %v1678_v4  ;;  %v1936_v51 = vmul.f32 %v1891_v56, %v1668_v0  ;;  %v1940_v32 = vmul.f32 %v1891_v56, %v1670_v1  ;;  %v1944_v31 = vmul.f32 %v1891_v56, %v1676_v3  ;;  %s1960_s6 = sld [smem:[#allocation3 + $0x16]] }
  0x4b   :  { %v1948_v20 = vmul.f32 %v1891_v56, %v1678_v4  ;;  %v1952_v52 = vmul.f32 %v1908_v60, %v1668_v0  ;;  %v1955_v16 = vstv %s1792_s25  ;;  %v1958_v15 = vstv %s1809_s26  ;;  %s1977_s7 = sld [smem:[#allocation3 + $0x17]] }
  0x4c   :  { %4109 = vst [vmem:[#allocation30_spill] sm:$0xff] %v1944_v31  ;;  %4112 = vst [vmem:[#allocation33_spill] sm:$0xff] %v1955_v16  ;;  %v1964_v8 = vmul.f32 %v1908_v60, %v1670_v1  ;;  %v1968_v5 = vmul.f32 %v1908_v60, %v1676_v3  ;;  %v1972_v56 = vmul.f32 %v1908_v60, %v1678_v4  ;;  %v1975_v2 = vstv %s1826_s1  ;;  %s1994_s8 = sld [smem:[#allocation3 + $0x18]] }
  0x4d   :  { %4110 = vst [vmem:[#allocation31_spill] sm:$0xff] %v1948_v20  ;;  %4111 = vst [vmem:[#allocation32_spill] sm:$0xff] %v1952_v52  ;;  %v1981_v52 = vmul.f32 %v1955_v16, %v1668_v0  ;;  %v1992_v60 = vstv %s1844_s0  ;;  %s2012_s10 = sld [smem:[#allocation3 + $0x19]]  ;;  %v2016_v20 = vmul.f32 %v1958_v15, %v1678_v4 }
  0x4e   :  { %4113 = vst [vmem:[#allocation34_spill] sm:$0xff] %v1958_v15  ;;  %4114 = vst [vmem:[#allocation35_spill] sm:$0xff] %v1964_v8  ;;  %v1985_v8 = vmul.f32 %v1955_v16, %v1670_v1  ;;  %s104_s11 = sld [smem:[#allocation7]] }
  0x4f   :  { %4115 = vst [vmem:[#allocation36_spill] sm:$0xff] %v1968_v5  ;;  %4116 = vst [vmem:[#allocation37_spill] sm:$0xff] %v1972_v56  ;;  %v1989_v5 = vmul.f32 %v1955_v16, %v1676_v3  ;;  %v1998_v56 = vmul.f32 %v1955_v16, %v1678_v4  ;;  %v2020_v16 = vmul.f32 %v1975_v2, %v1668_v0  ;;  %s2074_s12 = sld [smem:[#allocation7 + $0x1]] }
  0x50   :  { %4117 = vst [vmem:[#allocation38_spill] sm:$0xff] %v1975_v2  ;;  %4118 = vst [vmem:[#allocation39_spill] sm:$0xff] %v1981_v52  ;;  %v2002_v52 = vmul.f32 %v1958_v15, %v1668_v0  ;;  %s2092_s13 = sld [smem:[#allocation7 + $0x2]] }
  0x51   :  { %4119 = vst [vmem:[#allocation40_spill] sm:$0xff] %v1985_v8  ;;  %4120 = vst [vmem:[#allocation41_spill] sm:$0xff] %v1989_v5  ;;  %v2006_v8 = vmul.f32 %v1958_v15, %v1670_v1  ;;  %v2010_v5 = vmul.f32 %v1958_v15, %v1676_v3  ;;  %v2036_v15 = vmul.f32 %v1992_v60, %v1668_v0  ;;  %s2139_s14 = sld [smem:[#allocation7 + $0x3]] }
  0x52   :  { %4121 = vst [vmem:[#allocation42_spill] sm:$0xff] %v1992_v60  ;;  %4122 = vst [vmem:[#allocation43_spill] sm:$0xff] %v1998_v56  ;;  %v2042_v56 = vstv %s1893_s28  ;;  %s2156_s15 = sld [smem:[#allocation7 + $0x4]] }
  0x53   :  { %4123 = vst [vmem:[#allocation44_spill] sm:$0xff] %v2002_v52  ;;  %4124 = vst [vmem:[#allocation45_spill] sm:$0xff] %v2006_v8  ;;  %v2024_v52 = vmul.f32 %v1975_v2, %v1670_v1  ;;  %v2028_v8 = vmul.f32 %v1975_v2, %v1676_v3  ;;  %s2188_s16 = sld [smem:[#allocation7 + $0x5]] }
  0x54   :  { %4125 = vst [vmem:[#allocation46_spill] sm:$0xff] %v2010_v5  ;;  %4126 = vst [vmem:[#allocation47_spill] sm:$0xff] %v2016_v20  ;;  %v2032_v5 = vmul.f32 %v1975_v2, %v1678_v4  ;;  %v2039_v20 = vstv %s1876_s27  ;;  %v2054_v2 = vmul.f32 %v1992_v60, %v1678_v4  ;;  %s2204_s17 = sld [smem:[#allocation7 + $0x6]] }
  0x55   :  { %4127 = vst [vmem:[#allocation48_spill] sm:$0xff] %v2020_v16  ;;  %4128 = vst [vmem:[#allocation49_spill] sm:$0xff] %v2024_v52  ;;  %v2046_v16 = vmul.f32 %v1992_v60, %v1670_v1  ;;  %v2050_v52 = vmul.f32 %v1992_v60, %v1676_v3  ;;  %v2078_v60 = vmul.f32 %v2039_v20, %v1678_v4  ;;  %s2265_s18 = sld [smem:[#allocation7 + $0x7]] }
  0x56   :  { %4129 = vst [vmem:[#allocation50_spill] sm:$0xff] %v2028_v8  ;;  %4130 = vst [vmem:[#allocation51_spill] sm:$0xff] %v2032_v5  ;;  %v2057_v5 = vstv %s1910_s29  ;;  %v2065_v8 = vmul.f32 %v2039_v20, %v1670_v1  ;;  %s2275_s4 = sld [smem:[#allocation7 + $0x8]] }
  0x57   :  { %4131 = vst [vmem:[#allocation52_spill] sm:$0xff] %v2036_v15  ;;  %4132 = vst [vmem:[#allocation53_spill] sm:$0xff] %v2039_v20  ;;  %v2061_v15 = vmul.f32 %v2039_v20, %v1668_v0  ;;  %s2290_s19 = sld [smem:[#allocation7 + $0x9]] }
  0x58   :  { %4133 = vst [vmem:[#allocation54_spill] sm:$0xff] %v2042_v56  ;;  %4134 = vst [vmem:[#allocation55_spill] sm:$0xff] %v2046_v16  ;;  %v2072_v16 = vstv %s1928_s30  ;;  %s2323_s20 = sld [smem:[#allocation7 + $0xa]] }
  0x59   :  { %4135 = vst [vmem:[#allocation56_spill] sm:$0xff] %v2050_v52  ;;  %4136 = vst [vmem:[#allocation57_spill] sm:$0xff] %v2054_v2  ;;  %v2069_v52 = vmul.f32 %v2039_v20, %v1676_v3  ;;  %v2096_v2 = vmul.f32 %v2042_v56, %v1678_v4  ;;  %v2100_v20 = vmul.f32 %v2057_v5, %v1668_v0  ;;  %s2358_s21 = sld [smem:[#allocation7 + $0xb]] }
  0x5a   :  { %4137 = vst [vmem:[#allocation58_spill] sm:$0xff] %v2057_v5  ;;  %4138 = vst [vmem:[#allocation59_spill] sm:$0xff] %v2061_v15  ;;  %v2082_v15 = vmul.f32 %v2042_v56, %v1668_v0  ;;  %s2367_s22 = sld [smem:[#allocation7 + $0xc]] }
  0x5b   :  { %4139 = vst [vmem:[#allocation60_spill] sm:$0xff] %v2065_v8  ;;  %4140 = vst [vmem:[#allocation61_spill] sm:$0xff] %v2069_v52  ;;  %v2086_v8 = vmul.f32 %v2042_v56, %v1670_v1  ;;  %v2090_v52 = vmul.f32 %v2042_v56, %v1676_v3  ;;  %v2116_v56 = vmul.f32 %v2072_v16, %v1668_v0  ;;  %s2377_s23 = sld [smem:[#allocation7 + $0xd]] }
  0x5c   :  { %4141 = vst [vmem:[#allocation62_spill] sm:$0xff] %v2072_v16  ;;  %4142 = vst [vmem:[#allocation63_spill] sm:$0xff] %v2078_v60  ;;  %v2122_v60 = vstv %s1977_s7  ;;  %s2423_s24 = sld [smem:[#allocation7 + $0xe]] }
  0x5d   :  { %4143 = vst [vmem:[#allocation64_spill] sm:$0xff] %v2082_v15  ;;  %4144 = vst [vmem:[#allocation65_spill] sm:$0xff] %v2086_v8  ;;  %v2104_v15 = vmul.f32 %v2057_v5, %v1670_v1  ;;  %v2108_v8 = vmul.f32 %v2057_v5, %v1676_v3  ;;  %s136_s25 = sld [smem:[#allocation9]] }
  0x5e   :  { %4145 = vst [vmem:[#allocation66_spill] sm:$0xff] %v2090_v52  ;;  %4146 = vst [vmem:[#allocation67_spill] sm:$0xff] %v2096_v2  ;;  %v2112_v52 = vmul.f32 %v2057_v5, %v1678_v4  ;;  %v2119_v2 = vstv %s1960_s6  ;;  %v2134_v5 = vmul.f32 %v2072_v16, %v1678_v4  ;;  %s2475_s26 = sld [smem:[#allocation9 + $0x1]] }
  0x5f   :  { %4147 = vst [vmem:[#allocation68_spill] sm:$0xff] %v2100_v20  ;;  %4148 = vst [vmem:[#allocation69_spill] sm:$0xff] %v2104_v15  ;;  %v2126_v20 = vmul.f32 %v2072_v16, %v1670_v1  ;;  %v2130_v15 = vmul.f32 %v2072_v16, %v1676_v3  ;;  %v2154_v16 = vstv %s2012_s10  ;;  %s2493_s1 = sld [smem:[#allocation9 + $0x2]] }
  0x60   :  { %4149 = vst [vmem:[#allocation70_spill] sm:$0xff] %v2108_v8  ;;  %4150 = vst [vmem:[#allocation71_spill] sm:$0xff] %v2112_v52  ;;  %v2137_v52 = vstv %s1994_s8  ;;  %v2162_v8 = vmul.f32 %v2119_v2, %v1678_v4  ;;  %s2511_s0 = sld [smem:[#allocation9 + $0x3]] }
  0x61   :  { %4151 = vst [vmem:[#allocation72_spill] sm:$0xff] %v2116_v56  ;;  %4152 = vst [vmem:[#allocation73_spill] sm:$0xff] %v2119_v2  ;;  %v2143_v56 = vmul.f32 %v2119_v2, %v1668_v0  ;;  %s2517_s27 = sld [smem:[#allocation9 + $0x4]] }
  0x62   :  { %4153 = vst [vmem:[#allocation74_spill] sm:$0xff] %v2122_v60  ;;  %4154 = vst [vmem:[#allocation75_spill] sm:$0xff] %v2126_v20  ;;  %v2147_v20 = vmul.f32 %v2119_v2, %v1670_v1  ;;  %s2525_s28 = sld [smem:[#allocation9 + $0x5]] }
  0x63   :  { %4155 = vst [vmem:[#allocation76_spill] sm:$0xff] %v2130_v15  ;;  %4156 = vst [vmem:[#allocation77_spill] sm:$0xff] %v2134_v5  ;;  %v2151_v15 = vmul.f32 %v2119_v2, %v1676_v3  ;;  %v2158_v5 = vstv %s104_s11  ;;  %v2182_v2 = vmul.f32 %v2122_v60, %v1676_v3  ;;  %s2558_s29 = sld [smem:[#allocation9 + $0x6]] }
  0x64   :  { %4157 = vst [vmem:[#allocation78_spill] sm:$0xff] %v2137_v52  ;;  %4158 = vst [vmem:[#allocation79_spill] sm:$0xff] %v2143_v56  ;;  %v2166_v56 = vmul.f32 %v2122_v60, %v1668_v0  ;;  %v2178_v31 = vadd.f32 %v2158_v5, %v1692_v7  ;;  %v2199_v7 = vstv %s2074_s12  ;;  %s2573_s30 = sld [smem:[#allocation9 + $0x7]] }
  0x65   :  { %4159 = vst [vmem:[#allocation80_spill] sm:$0xff] %v2147_v20  ;;  %4160 = vst [vmem:[#allocation81_spill] sm:$0xff] %v2151_v15  ;;  %v2170_v20 = vmul.f32 %v2122_v60, %v1670_v1  ;;  %v2174_v15 = vadd.f32 %v2158_v5, %v1688_v6  ;;  %v2196_v6 = vadd.f32 %v2158_v5, %v1702_v10  ;;  %s2595_s6 = sld [smem:[#allocation9 + $0x8]] }
  0x66   :  { %4161 = vst [vmem:[#allocation82_spill] sm:$0xff] %v2154_v16  ;;  %4162 = vst [vmem:[#allocation83_spill] sm:$0xff] %v2158_v5  ;;  %v2220_v10 = vmul.f32 %v2137_v52, %v1678_v4  ;;  %s2609_s7 = sld [smem:[#allocation9 + $0x9]] }
  0x67   :  { %4163 = vst [vmem:[#allocation84_spill] sm:$0xff] %v2162_v8  ;;  %4164 = vst [vmem:[#allocation85_spill] sm:$0xff] %v2166_v56  ;;  %v2186_v8 = vmul.f32 %v2122_v60, %v1678_v4  ;;  %v2202_v56 = vstv %s2092_s13  ;;  %v2208_v60 = vmul.f32 %v2137_v52, %v1668_v0  ;;  %s2660_s8 = sld [smem:[#allocation9 + $0xa]] }
  0x68   :  { %4165 = vst [vmem:[#allocation86_spill] sm:$0xff] %v2170_v20  ;;  %4166 = vst [vmem:[#allocation87_spill] sm:$0xff] %v2182_v2  ;;  %v2192_v20 = vadd.f32 %v2158_v5, %v1698_v9  ;;  %v2216_v9 = vmul.f32 %v2137_v52, %v1676_v3  ;;  %v2224_v5 = vadd.f32 %v2199_v7, %v1706_v11  ;;  %s2668_s10 = sld [smem:[#allocation9 + $0xb]] }
  0x69   :  { %4167 = vst [vmem:[#allocation88_spill] sm:$0xff] %v2186_v8  ;;  %4168 = vst [vmem:[#allocation89_spill] sm:$0xff] %v2199_v7  ;;  %v2212_v8 = vmul.f32 %v2137_v52, %v1670_v1  ;;  %v2228_v2 = vadd.f32 %v2199_v7, %v1710_v12  ;;  %v2232_v1 = vadd.f32 %v2199_v7, %v1716_v13  ;;  %v2273_v52 = vstv %s2156_s15  ;;  %s2691_s11 = sld [smem:[#allocation9 + $0xc]] }
  0x6a   :  { %4169 = vst [vmem:[#allocation90_spill] sm:$0xff] %v2202_v56  ;;  %4170 = vst [vmem:[#allocation91_spill] sm:$0xff] %v2208_v60  ;;  %v2236_v3 = vadd.f32 %v2199_v7, %v1720_v14  ;;  %v2241_v11 = vadd.f32 %v2202_v56, %v1730_v17  ;;  %v2245_v12 = vadd.f32 %v2202_v56, %v1734_v18  ;;  %v4196_v60 = vld [vmem:[#allocation35_spill] sm:$0xff]  ;;  %s2717_s12 = sld [smem:[#allocation9 + $0xd]] }
  0x6b   :  { %4171 = vst [vmem:[#allocation92_spill] sm:$0xff] %v2212_v8  ;;  %4172 = vst [vmem:[#allocation93_spill] sm:$0xff] %v2216_v9  ;;  %v2249_v13 = vmul.f32 %v2154_v16, %v1668_v0  ;;  %v2256_v4 = vadd.f32 %v2202_v56, %v1738_v19  ;;  %v2263_v0 = vadd.f32 %v2202_v56, %v1746_v21  ;;  %v2270_v19 = vstv %s2139_s14  ;;  %s2728_s13 = sld [smem:[#allocation7 + $0xf]] }
  0x6c   :  { %4173 = vst [vmem:[#allocation94_spill] sm:$0xff] %v2220_v10  ;;  %4175 = vst [vmem:[#allocation96_spill] sm:$0xff] %v2270_v19  ;;  %v2280_v10 = vadd.f32 %v2270_v19, %v1750_v22  ;;  %v2284_v21 = vadd.f32 %v2270_v19, %v1754_v23  ;;  %v2288_v7 = vadd.f32 %v2270_v19, %v1758_v24  ;;  %v2305_v23 = vstv %s2188_s16  ;;  %s2736_s14 = sld [smem:[#allocation9 + $0xe]] }
  0x6d   :  { %4174 = vst [vmem:[#allocation95_spill] sm:$0xff] %v2249_v13  ;;  %4176 = vst [vmem:[#allocation97_spill] sm:$0xff] %v2273_v52  ;;  %v2294_v14 = vadd.f32 %v2270_v19, %v1764_v25  ;;  %v2298_v18 = vadd.f32 %v2273_v52, %v1768_v26  ;;  %v2302_v22 = vadd.f32 %v2273_v52, %v1772_v27  ;;  %v2317_v19 = vstv %s2204_s17  ;;  %s2766_s15 = sld [smem:[#allocation7 + $0x10]] }
  0x6e   :  { %4177 = vst [vmem:[#allocation98_spill] sm:$0xff] %v2305_v23  ;;  %v2310_v24 = vadd.f32 %v2273_v52, %v1776_v28  ;;  %v2314_v25 = vadd.f32 %v2273_v52, %v1780_v29  ;;  %4178 = vst [vmem:[#allocation99_spill] sm:$0xff] %v2317_v19  ;;  %v2327_v28 = vadd.f32 %v2305_v23, %v1784_v30  ;;  %v2392_v26 = vstv %s2290_s19  ;;  %s2777_s16 = sld [smem:[#allocation7 + $0x11]] }
  0x6f   :  { %v2331_v29 = vadd.f32 %v2305_v23, %v1796_v33  ;;  %v2335_v17 = vadd.f32 %v2305_v23, %v1800_v34  ;;  %v2339_v56 = vadd.f32 %v2305_v23, %v1804_v35  ;;  %v2346_v33 = vadd.f32 %v2317_v19, %v1813_v37  ;;  %4181 = vst [vmem:[#allocation102_spill] sm:$0xff] %v2392_v26  ;;  %s2791_s17 = sld [smem:[#allocation9 + $0xf]] }
  0x70   :  { %v2352_v35 = vadd.f32 %v2317_v19, %v1817_v38  ;;  %v2356_v13 = vadd.f32 %v2317_v19, %v1821_v39  ;;  %v2365_v34 = vadd.f32 %v2317_v19, %v1830_v41  ;;  %v2372_v39 = vstv %s2265_s18  ;;  %s2799_s18 = sld [smem:[#allocation9 + $0x10]] }
  0x71   :  { %4179 = vst [vmem:[#allocation100_spill] sm:$0xff] %v2372_v39  ;;  %v2375_v23 = vstv %s2275_s4  ;;  %v2381_v27 = vadd.f32 %v2372_v39, %v1834_v42  ;;  %v2385_v41 = vadd.f32 %v2372_v39, %v1838_v43  ;;  %v2389_v38 = vadd.f32 %v2372_v39, %v1842_v44  ;;  %s2847_s4 = sld [smem:[#allocation7 + $0x12]] }
  0x72   :  { %4180 = vst [vmem:[#allocation101_spill] sm:$0xff] %v2375_v23  ;;  %v2396_v37 = vadd.f32 %v2372_v39, %v1848_v45  ;;  %v2400_v30 = vadd.f32 %v2375_v23, %v1852_v46  ;;  %v2404_v42 = vadd.f32 %v2375_v23, %v1856_v47  ;;  %v2408_v43 = vadd.f32 %v2375_v23, %v1860_v48  ;;  %s2849_s19 = sld [smem:[#allocation7 + $0x13]] }
  0x73   :  { %v2415_v45 = vadd.f32 %v2375_v23, %v1864_v49  ;;  %v2421_v9 = vstv %s2323_s20  ;;  %v2427_v48 = vadd.f32 %v2392_v26, %v1868_v50  ;;  %v2431_v52 = vadd.f32 %v2392_v26, %v1880_v53  ;;  %v4193_v23 = vld [vmem:[#allocation32_spill] sm:$0xff]  ;;  %s2860_s20 = sld [smem:[#allocation9 + $0x11]] }
  0x74   :  { %4182 = vst [vmem:[#allocation103_spill] sm:$0xff] %v2421_v9  ;;  %v2435_v49 = vadd.f32 %v2392_v26, %v1884_v54  ;;  %v2439_v47 = vadd.f32 %v2392_v26, %v1888_v55  ;;  %v2448_v54 = vadd.f32 %v2421_v9, %v1897_v57  ;;  %v2452_v55 = vadd.f32 %v2421_v9, %v1901_v58 }
  0x75   :  { %v2456_v39 = vadd.f32 %v2421_v9, %v1905_v59  ;;  %v2463_v19 = vadd.f32 %v2421_v9, %v1914_v61  ;;  %v2467_v44 = vstv %s2358_s21  ;;  %v2470_v58 = vstv %s2367_s22  ;;  %s2872_s21 = sld [smem:[#allocation9 + $0x12]] }
  0x76   :  { %4183 = vst [vmem:[#allocation104_spill] sm:$0xff] %v2467_v44  ;;  %4184 = vst [vmem:[#allocation105_spill] sm:$0xff] %v2470_v58  ;;  %v2473_v26 = vstv %s2377_s23  ;;  %v2479_v59 = vadd.f32 %v2467_v44, %v1918_v62  ;;  %v2483_v53 = vadd.f32 %v2467_v44, %v1922_v63  ;;  %v2487_v61 = vadd.f32 %v2467_v44, %v1926_v40  ;;  %v4189_v63 = vld [vmem:[#allocation30_spill] sm:$0xff]  ;;  %v4191_v40 = vld [vmem:[#allocation31_spill] sm:$0xff]  ;;  %s2912_s22 = sld [smem:[#allocation7 + $0x14]] }
  0x77   :  { %4185 = vst [vmem:[#allocation106_spill] sm:$0xff] %v2473_v26  ;;  %v2491_v57 = vadd.f32 %v2467_v44, %v1932_v36  ;;  %v2497_v46 = vadd.f32 %v2470_v58, %v1936_v51  ;;  %v2501_v62 = vadd.f32 %v2470_v58, %v1940_v32  ;;  %v2505_v50 = vadd.f32 %v2470_v58, %v4189_v63  ;;  %v4198_v36 = vld [vmem:[#allocation36_spill] sm:$0xff]  ;;  %v4199_v51 = vld [vmem:[#allocation37_spill] sm:$0xff]  ;;  %s2914_s23 = sld [smem:[#allocation7 + $0x15]] }
  0x78   :  { %v2509_v9 = vadd.f32 %v2470_v58, %v4191_v40  ;;  %v2523_v40 = vstv %s2423_s24  ;;  %v2532_v58 = vadd.f32 %v2473_v26, %v4193_v23  ;;  %v2534_v32 = vstv %s136_s25  ;;  %v4200_v23 = vld [vmem:[#allocation39_spill] sm:$0xff]  ;;  %s2926_s24 = sld [smem:[#allocation9 + $0x13]] }
  0x79   :  { %4186 = vst [vmem:[#allocation107_spill] sm:$0xff] %v2491_v57  ;;  %4187 = vst [vmem:[#allocation108_spill] sm:$0xff] %v2497_v46  ;;  %v2540_v16 = vadd.f32 %v2473_v26, %v4196_v60  ;;  %v2544_v44 = vadd.f32 %v2473_v26, %v4198_v36  ;;  %v2552_v46 = vadd.f32 %v2523_v40, %v4200_v23  ;;  %v4202_v57 = vld [vmem:[#allocation40_spill] sm:$0xff]  ;;  %v4204_v60 = vmax.f32 %v2174_v15, 0.0  ;;  %v4207_v23 = vld [vmem:[#allocation41_spill] sm:$0xff]  ;;  %s2940_s25 = sld [smem:[#allocation9 + $0x14]] }
  0x7a   :  { %4188 = vst [vmem:[#allocation109_spill] sm:$0xff] %v2501_v62  ;;  %4190 = vst [vmem:[#allocation30_spill] sm:$0xff] %v2505_v50  ;;  %v2548_v62 = vadd.f32 %v2473_v26, %v4199_v51  ;;  %v2556_v8 = vadd.f32 %v2523_v40, %v4202_v57  ;;  %v4205_v63 = vmax.f32 %v2178_v31, 0.0  ;;  %v2567_v26 = vstv %s2475_s26  ;;  %s2980_s26 = sld [smem:[#allocation7 + $0x16]] }
  0x7b   :  { %4192 = vst [vmem:[#allocation31_spill] sm:$0xff] %v2509_v9  ;;  %4194 = vst [vmem:[#allocation32_spill] sm:$0xff] %v2532_v58  ;;  %v188_v36 = vmul.f32 %v2534_v32, %v4204_v60  ;;  %v4209_v57 = vmax.f32 %v2192_v20, 0.0  ;;  %v4210_v60 = vmax.f32 %v2196_v6, 0.0  ;;  %v4211_v9 = vmax.f32 %v2224_v5, 0.0 }
  0x7c   :  { %4195 = vst [vmem:[#allocation110_spill] sm:$0xff] %v2534_v32  ;;  %4197 = vst [vmem:[#allocation35_spill] sm:$0xff] %v2540_v16  ;;  %v189_v51 = vmul.f32 %v2534_v32, %v4205_v63  ;;  %v4213_v20 = vmax.f32 %v2232_v1, 0.0  ;;  %v2604_v5 = vstv %s2517_s27  ;;  %v4219_v6 = vmax.f32 %v2263_v0, 0.0  ;;  %s3008_s27 = sld [smem:[#allocation9 + $0x16]] }
  0x7d   :  { %4201 = vst [vmem:[#allocation36_spill] sm:$0xff] %v2552_v46  ;;  %4203 = vst [vmem:[#allocation37_spill] sm:$0xff] %v2556_v8  ;;  %v2571_v46 = vadd.f32 %v2523_v40, %v4207_v23  ;;  %v190_v15 = vmul.f32 %v2534_v32, %v4209_v57  ;;  %v191_v31 = vmul.f32 %v2534_v32, %v4210_v60  ;;  %v2582_v8 = vstv %s2493_s1  ;;  %s2982_s1 = sld [smem:[#allocation7 + $0x17]] }
  0x7e   :  { %4206 = vst [vmem:[#allocation39_spill] sm:$0xff] %v2567_v26  ;;  %v207_v50 = vmul.f32 %v2567_v26, %v4211_v9  ;;  %v4212_v23 = vmax.f32 %v2228_v2, 0.0  ;;  %v209_v57 = vmul.f32 %v2567_v26, %v4213_v20  ;;  %v4214_v60 = vmax.f32 %v2236_v3, 0.0  ;;  %4215 = vst [vmem:[#allocation41_spill] sm:$0xff] %v2604_v5 }
  0x7f   :  { %4208 = vst [vmem:[#allocation40_spill] sm:$0xff] %v2571_v46  ;;  %v2601_v32 = vstv %s2511_s0  ;;  %v2607_v9 = vstv %s2525_s28  ;;  %v4216_v2 = vmax.f32 %v2241_v11, 0.0  ;;  %v4218_v3 = vmax.f32 %v2256_v4, 0.0  ;;  %s2994_s0 = sld [smem:[#allocation9 + $0x15]] }
  0x80   :  { %v208_v46 = vmul.f32 %v2567_v26, %v4212_v23  ;;  %v210_v63 = vmul.f32 %v2567_v26, %v4214_v60  ;;  %v4217_v23 = vmax.f32 %v2245_v12, 0.0  ;;  %v229_v26 = vmul.f32 %v2582_v8, %v4219_v6  ;;  %s3048_s28 = sld [smem:[#allocation7 + $0x18]] }
  0x81   :  { %v226_v1 = vmul.f32 %v2582_v8, %v4216_v2  ;;  %v228_v60 = vmul.f32 %v2582_v8, %v4218_v3  ;;  %v4220_v16 = vmax.f32 %v2298_v18, 0.0  ;;  %v4221_v11 = vmax.f32 %v2302_v22, 0.0 }
  0x82   :  { %v227_v20 = vmul.f32 %v2582_v8, %v4217_v23  ;;  %v4222_v12 = vmax.f32 %v2310_v24, 0.0  ;;  %v4223_v4 = vmax.f32 %v2314_v25, 0.0  ;;  %v4224_v0 = vmax.f32 %v2280_v10, 0.0 }
  0x83   :  { %v264_v58 = vmul.f32 %v2604_v5, %v4220_v16  ;;  %v265_v2 = vmul.f32 %v2604_v5, %v4221_v11  ;;  %v4225_v18 = vmax.f32 %v2327_v28, 0.0  ;;  %v4226_v22 = vmax.f32 %v2331_v29, 0.0 }
  0x84   :  { %v266_v23 = vmul.f32 %v2604_v5, %v4222_v12  ;;  %v267_v3 = vmul.f32 %v2604_v5, %v4223_v4  ;;  %v245_v6 = vmul.f32 %v2601_v32, %v4224_v0  ;;  %v4227_v25 = vmax.f32 %v2284_v21, 0.0 }
  0x85   :  { %v287_v16 = vmul.f32 %v2607_v9, %v4225_v18  ;;  %v288_v24 = vmul.f32 %v2607_v9, %v4226_v22  ;;  %v4228_v10 = vmax.f32 %v2288_v7, 0.0  ;;  %v4229_v0 = vmax.f32 %v2294_v14, 0.0 }
  0x86   :  { %v246_v12 = vmul.f32 %v2601_v32, %v4227_v25  ;;  %v4230_v18 = vmax.f32 %v2335_v17, 0.0  ;;  %v268_v5 = vadd.f32 %v264_v58, %v188_v36  ;;  %v269_v22 = vadd.f32 %v265_v2, %v189_v51 }
  0x87   :  { %v247_v4 = vmul.f32 %v2601_v32, %v4228_v10  ;;  %v248_v28 = vmul.f32 %v2601_v32, %v4229_v0  ;;  %v270_v11 = vadd.f32 %v266_v23, %v190_v15  ;;  %v4231_v21 = vmax.f32 %v2339_v56, 0.0 }
  0x88   :  { %v289_v29 = vmul.f32 %v2607_v9, %v4230_v18  ;;  %v271_v7 = vadd.f32 %v267_v3, %v191_v31  ;;  %v291_v10 = vadd.f32 %v287_v16, %v207_v50  ;;  %v2663_v14 = vstv %s2558_s29  ;;  %s3060_s29 = sld [smem:[#allocation9 + $0x17]] }
  0x89   :  { %v290_v25 = vmul.f32 %v2607_v9, %v4231_v21  ;;  %v2666_v0 = vstv %s2573_s30  ;;  %v292_v17 = vadd.f32 %v288_v24, %v208_v46  ;;  %v4232_v58 = vmax.f32 %v2346_v33, 0.0  ;;  %s3074_s30 = sld [smem:[#allocation9 + $0x18]] }
  0x8a   :  { %v4233_v56 = vmax.f32 %v2352_v35, 0.0  ;;  %v4234_v15 = vmax.f32 %v2356_v13, 0.0  ;;  %v4235_v31 = vmax.f32 %v2365_v34, 0.0  ;;  %v4236_v23 = vmax.f32 %v2381_v27, 0.0 }
  0x8b   :  { %v310_v36 = vmul.f32 %v2663_v14, %v4232_v58  ;;  %v4237_v33 = vmax.f32 %v2385_v41, 0.0  ;;  %v2689_v16 = vstv %s2595_s6  ;;  %v293_v35 = vadd.f32 %v289_v29, %v209_v57  ;;  %s3096_s6 = sld [smem:[#allocation7 + $0x19]] }
  0x8c   :  { %v311_v51 = vmul.f32 %v2663_v14, %v4233_v56  ;;  %v312_v50 = vmul.f32 %v2663_v14, %v4234_v15  ;;  %v313_v2 = vmul.f32 %v2663_v14, %v4235_v31  ;;  %v333_v46 = vmul.f32 %v2666_v0, %v4236_v23 }
  0x8d   :  { %v334_v3 = vmul.f32 %v2666_v0, %v4237_v33  ;;  %v4238_v13 = vmax.f32 %v2389_v38, 0.0  ;;  %v4239_v34 = vmax.f32 %v2396_v37, 0.0  ;;  %v2700_v27 = vstv %s2609_s7  ;;  %s3116_s7 = sld [smem:[#allocation3 + $0x1a]] }
  0x8e   :  { %v294_v21 = vadd.f32 %v290_v25, %v210_v63  ;;  %v314_v58 = vadd.f32 %v310_v36, %v226_v1  ;;  %v315_v41 = vadd.f32 %v311_v51, %v227_v20  ;;  %v316_v56 = vadd.f32 %v312_v50, %v228_v60 }
  0x8f   :  { %v335_v24 = vmul.f32 %v2666_v0, %v4238_v13  ;;  %v336_v18 = vmul.f32 %v2666_v0, %v4239_v34  ;;  %v4240_v15 = vmax.f32 %v2400_v30, 0.0  ;;  %v4241_v57 = vmax.f32 %v2404_v42, 0.0 }
  0x90   :  { %v4242_v29 = vmax.f32 %v2408_v43, 0.0  ;;  %v4243_v23 = vmax.f32 %v2415_v45, 0.0  ;;  %v317_v63 = vadd.f32 %v313_v2, %v229_v26  ;;  %v337_v1 = vadd.f32 %v333_v46, %v245_v6 }
  0x91   :  { %v356_v31 = vmul.f32 %v2689_v16, %v4240_v15  ;;  %v357_v38 = vmul.f32 %v2689_v16, %v4241_v57  ;;  %v338_v20 = vadd.f32 %v334_v3, %v246_v12  ;;  %v4244_v30 = vmax.f32 %v2427_v48, 0.0 }
  0x92   :  { %v358_v37 = vmul.f32 %v2689_v16, %v4242_v29  ;;  %v359_v33 = vmul.f32 %v2689_v16, %v4243_v23  ;;  %v339_v42 = vadd.f32 %v335_v24, %v247_v4  ;;  %v340_v25 = vadd.f32 %v336_v18, %v248_v28 }
  0x93   :  { %v379_v60 = vmul.f32 %v2700_v27, %v4244_v30  ;;  %v4245_v43 = vmax.f32 %v2431_v52, 0.0  ;;  %v4246_v45 = vmax.f32 %v2435_v49, 0.0  ;;  %v360_v51 = vadd.f32 %v356_v31, %v268_v5 }
  0x94   :  { %v361_v6 = vadd.f32 %v357_v38, %v269_v22  ;;  %v362_v12 = vadd.f32 %v358_v37, %v270_v11  ;;  %v4247_v48 = vmax.f32 %v2439_v47, 0.0  ;;  %v363_v4 = vadd.f32 %v359_v33, %v271_v7  ;;  %v4255_v38 = vld [vmem:[#allocation107_spill] sm:$0xff] }
  0x95   :  { %v380_v36 = vmul.f32 %v2700_v27, %v4245_v43  ;;  %v381_v26 = vmul.f32 %v2700_v27, %v4246_v45  ;;  %v383_v28 = vadd.f32 %v379_v60, %v291_v10  ;;  %v2731_v2 = vstv %s2660_s8  ;;  %v4263_v60 = vld [vmem:[#allocation31_spill] sm:$0xff]  ;;  %s3128_s8 = sld [smem:[#allocation9 + $0x19]] }
  0x96   :  { %v382_v50 = vmul.f32 %v2700_v27, %v4247_v48  ;;  %v2734_v52 = vstv %s2668_s10  ;;  %v4248_v49 = vmax.f32 %v2448_v54, 0.0  ;;  %v4249_v11 = vmax.f32 %v2452_v55, 0.0  ;;  %v4265_v45 = vld [vmem:[#allocation43_spill] sm:$0xff]  ;;  %v4266_v48 = vld [vmem:[#allocation36_spill] sm:$0xff]  ;;  %s3143_s10 = sld [smem:[#allocation3 + $0x1b]] }
  0x97   :  { %v4250_v22 = vmax.f32 %v2456_v39, 0.0  ;;  %v4251_v7 = vmax.f32 %v2463_v19, 0.0  ;;  %v384_v3 = vadd.f32 %v380_v36, %v292_v17  ;;  %v4252_v13 = vmax.f32 %v2479_v59, 0.0 }
  0x98   :  { %v402_v5 = vmul.f32 %v2731_v2, %v4248_v49  ;;  %v403_v47 = vmul.f32 %v2731_v2, %v4249_v11  ;;  %v4253_v54 = vmax.f32 %v2483_v53, 0.0  ;;  %v2757_v55 = vstv %s2691_s11  ;;  %v4267_v49 = vld [vmem:[#allocation37_spill] sm:$0xff]  ;;  %s3153_s11 = sld [smem:[#allocation7 + $0x1a]] }
  0x99   :  { %v404_v46 = vmul.f32 %v2731_v2, %v4250_v22  ;;  %v405_v10 = vmul.f32 %v2731_v2, %v4251_v7  ;;  %v425_v24 = vmul.f32 %v2734_v52, %v4252_v13  ;;  %v385_v18 = vadd.f32 %v381_v26, %v293_v35  ;;  %v4270_v7 = vld [vmem:[#allocation35_spill] sm:$0xff] }
  0x9a   :  { %v426_v34 = vmul.f32 %v2734_v52, %v4253_v54  ;;  %v386_v15 = vadd.f32 %v382_v50, %v294_v21  ;;  %v4254_v39 = vmax.f32 %v2487_v61, 0.0  ;;  %v469_v31 = vmax.f32 %v2548_v62, 0.0  ;;  %v4257_v61 = vld [vmem:[#allocation108_spill] sm:$0xff]  ;;  %v4259_v62 = vld [vmem:[#allocation109_spill] sm:$0xff] }
  0x9b   :  { %v406_v17 = vadd.f32 %v402_v5, %v314_v58  ;;  %v407_v57 = vadd.f32 %v403_v47, %v315_v41  ;;  %v408_v59 = vadd.f32 %v404_v46, %v316_v56  ;;  %v4256_v29 = vmax.f32 %v4255_v38, 0.0  ;;  %v4261_v56 = vld [vmem:[#allocation30_spill] sm:$0xff]  ;;  %v4268_v47 = vld [vmem:[#allocation32_spill] sm:$0xff] }
  0x9c   :  { %v427_v19 = vmul.f32 %v2734_v52, %v4254_v39  ;;  %v2768_v37 = vadd.f32 %v405_v10, %v317_v63  ;;  %v2770_v35 = vadd.f32 %v425_v24, %v337_v1  ;;  %v2772_v21 = vadd.f32 %v426_v34, %v338_v20  ;;  %v4273_v34 = vld [vmem:[#allocation40_spill] sm:$0xff] }
  0x9d   :  { %v428_v53 = vmul.f32 %v2734_v52, %v4256_v29  ;;  %v4258_v23 = vmax.f32 %v4257_v61, 0.0  ;;  %v4260_v58 = vmax.f32 %v4259_v62, 0.0  ;;  %v4262_v30 = vmax.f32 %v4261_v56, 0.0 }
  0x9e   :  { %v4264_v1 = vmax.f32 %v4263_v60, 0.0  ;;  %v2789_v43 = vstv %s2717_s12  ;;  %v2793_v36 = vadd.f32 %v427_v19, %v339_v42  ;;  %v488_v26 = vadd.f32 %v2523_v40, %v4265_v45  ;;  %s3159_s12 = sld [smem:[#allocation9 + $0x1a]] }
  0x9f   :  { %v448_v33 = vmul.f32 %v2757_v55, %v4258_v23  ;;  %v449_v41 = vmul.f32 %v2757_v55, %v4260_v58  ;;  %v450_v63 = vmul.f32 %v2757_v55, %v4262_v30  ;;  %v489_v50 = vmax.f32 %v4266_v48, 0.0  ;;  %v4274_v58 = vld [vmem:[#allocation44_spill] sm:$0xff]  ;;  %v4275_v30 = vld [vmem:[#allocation45_spill] sm:$0xff] }
  0xa0   :  { %v451_v20 = vmul.f32 %v2757_v55, %v4264_v1  ;;  %v490_v5 = vmax.f32 %v4267_v49, 0.0  ;;  %v2801_v11 = vadd.f32 %v428_v53, %v340_v25  ;;  %v4269_v22 = vmax.f32 %v4268_v47, 0.0 }
  0xa1   :  { %v4271_v10 = vmax.f32 %v4270_v7, 0.0  ;;  %v4272_v13 = vmax.f32 %v2544_v44, 0.0  ;;  %v474_v54 = vmul.f32 %v2789_v43, %v469_v31  ;;  %v491_v39 = vmax.f32 %v4273_v34, 0.0 }
  0xa2   :  { %v471_v46 = vmul.f32 %v2789_v43, %v4269_v22  ;;  %v2815_v19 = vstv %s2736_s14  ;;  %v2818_v25 = vstv %s2728_s13  ;;  %v2820_v38 = vadd.f32 %v448_v33, %v360_v51  ;;  %v4278_v22 = vld [vmem:[#allocation48_spill] sm:$0xff]  ;;  %s3179_s13 = sld [smem:[#allocation3 + $0x1c]] }
  0xa3   :  { %v472_v42 = vmul.f32 %v2789_v43, %v4271_v10  ;;  %v473_v24 = vmul.f32 %v2789_v43, %v4272_v13  ;;  %v2822_v29 = vadd.f32 %v449_v41, %v361_v6  ;;  %v2824_v53 = vadd.f32 %v450_v63, %v362_v12  ;;  %v4276_v6 = vld [vmem:[#allocation46_spill] sm:$0xff]  ;;  %v4281_v13 = vld [vmem:[#allocation51_spill] sm:$0xff]  ;;  %s3186_s14 = sld [smem:[#allocation7 + $0x1b]] }
  0xa4   :  { %v2826_v61 = vadd.f32 %v451_v20, %v363_v4  ;;  %v492_v23 = vmax.f32 %v488_v26, 0.0  ;;  %v494_v44 = vmul.f32 %v2815_v19, %v489_v50  ;;  %v495_v62 = vmul.f32 %v2815_v19, %v490_v5  ;;  %v4277_v4 = vld [vmem:[#allocation47_spill] sm:$0xff]  ;;  %v4280_v10 = vld [vmem:[#allocation50_spill] sm:$0xff] }
  0xa5   :  { %v496_v31 = vmul.f32 %v2815_v19, %v491_v39  ;;  %v508_v56 = vadd.f32 %v2818_v25, %v4274_v58  ;;  %v509_v51 = vadd.f32 %v2818_v25, %v4275_v30  ;;  %v510_v12 = vadd.f32 %v2818_v25, %v4276_v6 }
  0xa6   :  { %v511_v33 = vadd.f32 %v2818_v25, %v4277_v4  ;;  %v2839_v41 = vadd.f32 %v471_v46, %v383_v28  ;;  %v2841_v63 = vadd.f32 %v472_v42, %v384_v3  ;;  %v2843_v60 = vadd.f32 %v473_v24, %v385_v18  ;;  %v4279_v46 = vld [vmem:[#allocation49_spill] sm:$0xff] }
  0xa7   :  { %v2845_v1 = vadd.f32 %v474_v54, %v386_v15  ;;  %v512_v20 = vmax.f32 %v508_v56, 0.0  ;;  %v513_v45 = vmax.f32 %v509_v51, 0.0  ;;  %v514_v26 = vmax.f32 %v510_v12, 0.0  ;;  %v4283_v56 = vld [vmem:[#allocation55_spill] sm:$0xff]  ;;  %v4284_v51 = vld [vmem:[#allocation56_spill] sm:$0xff]  ;;  %v4285_v12 = vld [vmem:[#allocation57_spill] sm:$0xff] }
  0xa8   :  { %v515_v48 = vmax.f32 %v511_v33, 0.0  ;;  %v497_v50 = vmul.f32 %v2815_v19, %v492_v23  ;;  %v2852_v28 = vadd.f32 %v494_v44, %v406_v17  ;;  %v2855_v3 = vstv %s2791_s17  ;;  %s3266_s17 = sld [smem:[#allocation3 + $0x1d]] }
  0xa9   :  { %v2858_v49 = vstv %s2766_s15  ;;  %v2862_v18 = vadd.f32 %v495_v62, %v407_v57  ;;  %v2864_v15 = vadd.f32 %v496_v31, %v408_v59  ;;  %v2867_v5 = vstv %s2799_s18  ;;  %v4282_v31 = vld [vmem:[#allocation52_spill] sm:$0xff]  ;;  %s3200_s15 = sld [smem:[#allocation7 + $0x1c]] }
  0xaa   :  { %v2870_v47 = vstv %s2777_s16  ;;  %v531_v17 = vadd.f32 %v2858_v49, %v4278_v22  ;;  %v532_v7 = vadd.f32 %v2858_v49, %v4279_v46  ;;  %v533_v42 = vadd.f32 %v2858_v49, %v4280_v10  ;;  %s3205_s16 = sld [smem:[#allocation9 + $0x1b]] }
  0xab   :  { %v534_v57 = vadd.f32 %v2858_v49, %v4281_v13  ;;  %v517_v59 = vmul.f32 %v2855_v3, %v512_v20  ;;  %v518_v24 = vmul.f32 %v2855_v3, %v513_v45  ;;  %v519_v54 = vmul.f32 %v2855_v3, %v514_v26  ;;  %s3280_s18 = sld [smem:[#allocation9 + $0x1c]] }
  0xac   :  { %v520_v34 = vmul.f32 %v2855_v3, %v515_v48  ;;  %v535_v39 = vmax.f32 %v531_v17, 0.0  ;;  %v536_v23 = vmax.f32 %v532_v7, 0.0  ;;  %v537_v44 = vmax.f32 %v533_v42, 0.0 }
  0xad   :  { %v538_v62 = vmax.f32 %v534_v57, 0.0  ;;  %v554_v58 = vadd.f32 %v2870_v47, %v4282_v31  ;;  %v555_v30 = vadd.f32 %v2870_v47, %v4283_v56  ;;  %v556_v6 = vadd.f32 %v2870_v47, %v4284_v51 }
  0xae   :  { %v557_v4 = vadd.f32 %v2870_v47, %v4285_v12  ;;  %v2895_v33 = vadd.f32 %v497_v50, %v2768_v37  ;;  %v540_v20 = vmul.f32 %v2867_v5, %v535_v39  ;;  %v541_v45 = vmul.f32 %v2867_v5, %v536_v23  ;;  %v4291_v39 = vld [vmem:[#allocation61_spill] sm:$0xff]  ;;  %v4293_v12 = vld [vmem:[#allocation64_spill] sm:$0xff] }
  0xaf   :  { %v542_v26 = vmul.f32 %v2867_v5, %v537_v44  ;;  %v2901_v48 = vadd.f32 %v517_v59, %v2770_v35  ;;  %v2904_v22 = vadd.f32 %v518_v24, %v2772_v21  ;;  %v2907_v17 = vadd.f32 %v519_v54, %v2793_v36  ;;  %v4290_v54 = vld [vmem:[#allocation60_spill] sm:$0xff] }
  0xb0   :  { %v2910_v37 = vadd.f32 %v520_v34, %v2801_v11  ;;  %v558_v50 = vmax.f32 %v554_v58, 0.0  ;;  %v559_v46 = vmax.f32 %v555_v30, 0.0  ;;  %v560_v7 = vmax.f32 %v556_v6, 0.0 }
  0xb1   :  { %v561_v10 = vmax.f32 %v557_v4, 0.0  ;;  %v543_v35 = vmul.f32 %v2867_v5, %v538_v62  ;;  %v2918_v21 = vadd.f32 %v540_v20, %v2820_v38  ;;  %v2921_v42 = vstv %s2860_s20  ;;  %v4289_v38 = vld [vmem:[#allocation59_spill] sm:$0xff]  ;;  %v4294_v20 = vld [vmem:[#allocation65_spill] sm:$0xff]  ;;  %s3302_s20 = sld [smem:[#allocation3 + $0x1e]] }
  0xb2   :  { %4286 = vst [vmem:[#allocation107_spill] sm:$0xff] %v2921_v42  ;;  %v2924_v36 = vstv %s2847_s4  ;;  %v2929_v11 = vadd.f32 %v541_v45, %v2822_v29  ;;  %v2932_v13 = vadd.f32 %v542_v26, %v2824_v53  ;;  %v2935_v57 = vstv %s2872_s21  ;;  %v4292_v29 = vld [vmem:[#allocation63_spill] sm:$0xff]  ;;  %v4295_v26 = vld [vmem:[#allocation66_spill] sm:$0xff]  ;;  %s3286_s4 = sld [smem:[#allocation7 + $0x1d]] }
  0xb3   :  { %4287 = vst [vmem:[#allocation108_spill] sm:$0xff] %v2935_v57  ;;  %v2938_v59 = vstv %s2849_s19  ;;  %v577_v24 = vadd.f32 %v2924_v36, %v4289_v38  ;;  %v578_v34 = vadd.f32 %v2924_v36, %v4290_v54  ;;  %v579_v23 = vadd.f32 %v2924_v36, %v4291_v39  ;;  %s3292_s19 = sld [smem:[#allocation9 + $0x1d]] }
  0xb4   :  { %4288 = vst [vmem:[#allocation109_spill] sm:$0xff] %v2938_v59  ;;  %v580_v44 = vadd.f32 %v2924_v36, %v4292_v29  ;;  %v563_v53 = vmul.f32 %v2921_v42, %v558_v50  ;;  %v564_v62 = vmul.f32 %v2921_v42, %v559_v46  ;;  %v565_v31 = vmul.f32 %v2921_v42, %v560_v7  ;;  %v4296_v50 = vld [vmem:[#allocation67_spill] sm:$0xff]  ;;  %s3310_s21 = sld [smem:[#allocation7 + $0x1e]] }
  0xb5   :  { %v566_v58 = vmul.f32 %v2921_v42, %v561_v10  ;;  %v581_v56 = vmax.f32 %v577_v24, 0.0  ;;  %v582_v30 = vmax.f32 %v578_v34, 0.0  ;;  %v583_v51 = vmax.f32 %v579_v23, 0.0 }
  0xb6   :  { %v584_v6 = vmax.f32 %v580_v44, 0.0  ;;  %v600_v4 = vadd.f32 %v2938_v59, %v4293_v12  ;;  %v601_v45 = vadd.f32 %v2938_v59, %v4294_v20  ;;  %v602_v38 = vadd.f32 %v2938_v59, %v4295_v26  ;;  %v4303_v12 = vld [vmem:[#allocation70_spill] sm:$0xff] }
  0xb7   :  { %v603_v46 = vadd.f32 %v2938_v59, %v4296_v50  ;;  %v2963_v7 = vadd.f32 %v543_v35, %v2826_v61  ;;  %v586_v10 = vmul.f32 %v2935_v57, %v581_v56  ;;  %v587_v24 = vmul.f32 %v2935_v57, %v582_v30 }
  0xb8   :  { %v588_v54 = vmul.f32 %v2935_v57, %v583_v51  ;;  %v2969_v34 = vadd.f32 %v563_v53, %v2839_v41  ;;  %v2972_v39 = vadd.f32 %v564_v62, %v2841_v63  ;;  %v2975_v23 = vadd.f32 %v565_v31, %v2843_v60  ;;  %v4302_v51 = vld [vmem:[#allocation69_spill] sm:$0xff] }
  0xb9   :  { %v2978_v61 = vadd.f32 %v566_v58, %v2845_v1  ;;  %v604_v35 = vmax.f32 %v600_v4, 0.0  ;;  %v605_v29 = vmax.f32 %v601_v45, 0.0  ;;  %v606_v44 = vmax.f32 %v602_v38, 0.0 }
  0xba   :  { %v607_v56 = vmax.f32 %v603_v46, 0.0  ;;  %v589_v41 = vmul.f32 %v2935_v57, %v584_v6  ;;  %v2986_v63 = vadd.f32 %v586_v10, %v2852_v28  ;;  %v2989_v53 = vstv %s2926_s24  ;;  %v4301_v28 = vld [vmem:[#allocation68_spill] sm:$0xff]  ;;  %s3380_s24 = sld [smem:[#allocation7 + $0x1f]] }
  0xbb   :  { %4297 = vst [vmem:[#allocation30_spill] sm:$0xff] %v2989_v53  ;;  %v2992_v60 = vstv %s2912_s22  ;;  %v2997_v1 = vadd.f32 %v587_v24, %v2862_v18  ;;  %v3000_v62 = vadd.f32 %v588_v54, %v2864_v15  ;;  %v3003_v31 = vstv %s2940_s25  ;;  %v4304_v18 = vld [vmem:[#allocation71_spill] sm:$0xff]  ;;  %v4305_v54 = vld [vmem:[#allocation72_spill] sm:$0xff]  ;;  %s3329_s22 = sld [smem:[#allocation3 + $0x1f]] }
  0xbc   :  { %4298 = vst [vmem:[#allocation31_spill] sm:$0xff] %v2992_v60  ;;  %4299 = vst [vmem:[#allocation43_spill] sm:$0xff] %v3003_v31  ;;  %v3006_v58 = vstv %s2914_s23  ;;  %v623_v30 = vadd.f32 %v2992_v60, %v4301_v28  ;;  %v624_v6 = vadd.f32 %v2992_v60, %v4302_v51  ;;  %v625_v4 = vadd.f32 %v2992_v60, %v4303_v12  ;;  %v4306_v51 = vld [vmem:[#allocation75_spill] sm:$0xff]  ;;  %v4307_v57 = vld [vmem:[#allocation76_spill] sm:$0xff]  ;;  %s3350_s23 = sld [smem:[#allocation9 + $0x1e]] }
  0xbd   :  { %4300 = vst [vmem:[#allocation36_spill] sm:$0xff] %v3006_v58  ;;  %v626_v20 = vadd.f32 %v2992_v60, %v4304_v18  ;;  %v609_v15 = vmul.f32 %v2989_v53, %v604_v35  ;;  %v610_v45 = vmul.f32 %v2989_v53, %v605_v29  ;;  %v611_v26 = vmul.f32 %v2989_v53, %v606_v44  ;;  %v4308_v35 = vld [vmem:[#allocation77_spill] sm:$0xff]  ;;  %v4319_v60 = vld [vmem:[#allocation87_spill] sm:$0xff]  ;;  %s3382_s25 = sld [smem:[#allocation9 + $0x1f]] }
  0xbe   :  { %v612_v38 = vmul.f32 %v2989_v53, %v607_v56  ;;  %v627_v50 = vmax.f32 %v623_v30, 0.0  ;;  %v628_v46 = vmax.f32 %v624_v6, 0.0  ;;  %v629_v10 = vmax.f32 %v625_v4, 0.0  ;;  %v4318_v53 = vld [vmem:[#allocation86_spill] sm:$0xff] }
  0xbf   :  { %v630_v24 = vmax.f32 %v626_v20, 0.0  ;;  %v646_v28 = vadd.f32 %v3006_v58, %v4305_v54  ;;  %v647_v12 = vadd.f32 %v3006_v58, %v4306_v51  ;;  %v648_v18 = vadd.f32 %v3006_v58, %v4307_v57  ;;  %v4315_v51 = vld [vmem:[#allocation81_spill] sm:$0xff] }
  0xc0   :  { %v649_v29 = vadd.f32 %v3006_v58, %v4308_v35  ;;  %v3031_v44 = vadd.f32 %v589_v41, %v2895_v33  ;;  %v632_v56 = vmul.f32 %v3003_v31, %v627_v50  ;;  %v633_v30 = vmul.f32 %v3003_v31, %v628_v46  ;;  %v4317_v58 = vld [vmem:[#allocation85_spill] sm:$0xff] }
  0xc1   :  { %v634_v6 = vmul.f32 %v3003_v31, %v629_v10  ;;  %v3037_v4 = vadd.f32 %v609_v15, %v2901_v48  ;;  %v3040_v57 = vadd.f32 %v610_v45, %v2904_v22  ;;  %v3043_v20 = vadd.f32 %v611_v26, %v2907_v17 }
  0xc2   :  { %v3046_v33 = vadd.f32 %v612_v38, %v2910_v37  ;;  %v650_v41 = vmax.f32 %v646_v28, 0.0  ;;  %v651_v50 = vmax.f32 %v647_v12, 0.0  ;;  %v652_v54 = vmax.f32 %v648_v18, 0.0 }
  0xc3   :  { %v653_v46 = vmax.f32 %v649_v29, 0.0  ;;  %v635_v48 = vmul.f32 %v3003_v31, %v630_v24  ;;  %v3052_v15 = vadd.f32 %v632_v56, %v2918_v21  ;;  %v3055_v22 = vstv %s2994_s0  ;;  %v4313_v21 = vld [vmem:[#allocation79_spill] sm:$0xff]  ;;  %v4314_v24 = vld [vmem:[#allocation80_spill] sm:$0xff] }
  0xc4   :  { %4309 = vst [vmem:[#allocation37_spill] sm:$0xff] %v3055_v22  ;;  %v3058_v45 = vstv %s2980_s26  ;;  %v3063_v17 = vadd.f32 %v633_v30, %v2929_v11  ;;  %v3066_v37 = vadd.f32 %v634_v6, %v2932_v13  ;;  %v3069_v26 = vstv %s3008_s27  ;;  %v4316_v11 = vld [vmem:[#allocation84_spill] sm:$0xff] }
  0xc5   :  { %4310 = vst [vmem:[#allocation32_spill] sm:$0xff] %v3058_v45  ;;  %4311 = vst [vmem:[#allocation35_spill] sm:$0xff] %v3069_v26  ;;  %v3072_v38 = vstv %s2982_s1  ;;  %v669_v10 = vadd.f32 %v3058_v45, %v4313_v21  ;;  %v670_v28 = vadd.f32 %v3058_v45, %v4314_v24  ;;  %v671_v12 = vadd.f32 %v3058_v45, %v4315_v51 }
  0xc6   :  { %4312 = vst [vmem:[#allocation40_spill] sm:$0xff] %v3072_v38  ;;  %v672_v18 = vadd.f32 %v3058_v45, %v4316_v11  ;;  %v655_v13 = vmul.f32 %v3055_v22, %v650_v41  ;;  %v656_v35 = vmul.f32 %v3055_v22, %v651_v50  ;;  %v657_v29 = vmul.f32 %v3055_v22, %v652_v54  ;;  %v4320_v41 = vld [vmem:[#allocation88_spill] sm:$0xff] }
  0xc7   :  { %v658_v56 = vmul.f32 %v3055_v22, %v653_v46  ;;  %v673_v30 = vmax.f32 %v669_v10, 0.0  ;;  %v674_v6 = vmax.f32 %v670_v28, 0.0  ;;  %v675_v21 = vmax.f32 %v671_v12, 0.0 }
  0xc8   :  { %v676_v31 = vmax.f32 %v672_v18, 0.0  ;;  %v692_v24 = vadd.f32 %v3072_v38, %v4317_v58  ;;  %v693_v51 = vadd.f32 %v3072_v38, %v4318_v53  ;;  %v694_v11 = vadd.f32 %v3072_v38, %v4319_v60 }
  0xc9   :  { %v695_v50 = vadd.f32 %v3072_v38, %v4320_v41  ;;  %v3099_v54 = vadd.f32 %v635_v48, %v2963_v7  ;;  %v678_v46 = vmul.f32 %v3069_v26, %v673_v30  ;;  %v679_v58 = vmul.f32 %v3069_v26, %v674_v6 }
  0xca   :  { %v680_v10 = vmul.f32 %v3069_v26, %v675_v21  ;;  %v3105_v53 = vadd.f32 %v655_v13, %v2969_v34  ;;  %v3108_v60 = vadd.f32 %v656_v35, %v2972_v39  ;;  %v3111_v28 = vadd.f32 %v657_v29, %v2975_v23  ;;  %v3139_v29 = vld [vmem:[#allocation10 + $0x8] sm:$0xff] }
  0xcb   :  { %v3114_v7 = vadd.f32 %v658_v56, %v2978_v61  ;;  %v696_v48 = vmax.f32 %v692_v24, 0.0  ;;  %v697_v12 = vmax.f32 %v693_v51, 0.0  ;;  %v698_v18 = vmax.f32 %v694_v11, 0.0  ;;  %v4325_v56 = vld [vmem:[#allocation91_spill] sm:$0xff]  ;;  %v4326_v24 = vld [vmem:[#allocation92_spill] sm:$0xff] }
  0xcc   :  { %v699_v30 = vmax.f32 %v695_v50, 0.0  ;;  %v681_v6 = vmul.f32 %v3069_v26, %v676_v31  ;;  %v3120_v34 = vadd.f32 %v678_v46, %v2986_v63  ;;  %v3123_v13 = vstv %s3060_s29  ;;  %v4324_v31 = vld [vmem:[#allocation82_spill] sm:$0xff] }
  0xcd   :  { %4321 = vst [vmem:[#allocation44_spill] sm:$0xff] %v3123_v13  ;;  %v3126_v39 = vstv %s3048_s28  ;;  %v3131_v23 = vadd.f32 %v679_v58, %v2997_v1  ;;  %v3134_v61 = vadd.f32 %v680_v10, %v3000_v62  ;;  %v3137_v35 = vstv %s3074_s30  ;;  %v4327_v1 = vld [vmem:[#allocation93_spill] sm:$0xff]  ;;  %v4328_v62 = vld [vmem:[#allocation94_spill] sm:$0xff] }
  0xce   :  { %4322 = vst [vmem:[#allocation45_spill] sm:$0xff] %v3126_v39  ;;  %4323 = vst [vmem:[#allocation46_spill] sm:$0xff] %v3137_v35  ;;  %v734_v63 = vmul.f32 %v3139_v29, %v4324_v31  ;;  %v715_v21 = vadd.f32 %v3126_v39, %v4325_v56  ;;  %v716_v51 = vadd.f32 %v3126_v39, %v4326_v24  ;;  %v3264_v45 = vstv %s3186_s14 }
  0xcf   :  { %v717_v11 = vadd.f32 %v3126_v39, %v4327_v1  ;;  %v718_v41 = vadd.f32 %v3126_v39, %v4328_v62  ;;  %v701_v50 = vmul.f32 %v3123_v13, %v696_v48  ;;  %v702_v46 = vmul.f32 %v3123_v13, %v697_v12  ;;  %v3164_v62 = vld [vmem:[#allocation10 + $0x10] sm:$0xff]  ;;  %v3168_v39 = vld [vmem:[#allocation10 + $0x18] sm:$0xff] }
  0xd0   :  { %v703_v58 = vmul.f32 %v3123_v13, %v698_v18  ;;  %v704_v10 = vmul.f32 %v3123_v13, %v699_v30  ;;  %v719_v56 = vmax.f32 %v715_v21, 0.0  ;;  %v720_v26 = vmax.f32 %v716_v51, 0.0 }
  0xd1   :  { %v721_v24 = vmax.f32 %v717_v11, 0.0  ;;  %v722_v38 = vmax.f32 %v718_v41, 0.0  ;;  %v3162_v1 = vadd.f32 %v681_v6, %v3031_v44  ;;  %v735_v48 = vmul.f32 %v3164_v62, %v4324_v31  ;;  %v4330_v6 = vld [vmem:[#allocation95_spill] sm:$0xff] }
  0xd2   :  { %v736_v12 = vmul.f32 %v3168_v39, %v4324_v31  ;;  %v3173_v18 = vstv %s3096_s6  ;;  %v724_v30 = vmul.f32 %v3137_v35, %v719_v56  ;;  %v725_v21 = vmul.f32 %v3137_v35, %v720_v26 }
  0xd3   :  { %4329 = vst [vmem:[#allocation47_spill] sm:$0xff] %v3173_v18  ;;  %v726_v51 = vmul.f32 %v3137_v35, %v721_v24  ;;  %v727_v44 = vmul.f32 %v3137_v35, %v722_v38  ;;  %v738_v11 = vadd.f32 %v3173_v18, %v4330_v6  ;;  %v739_v41 = vadd.f32 %v3173_v18, %v734_v63 }
  0xd4   :  { %v740_v13 = vadd.f32 %v3173_v18, %v735_v48  ;;  %v741_v31 = vadd.f32 %v3173_v18, %v736_v12  ;;  %v3189_v26 = vadd.f32 %v701_v50, %v3037_v4  ;;  %v3192_v38 = vadd.f32 %v702_v46, %v3040_v57 }
  0xd5   :  { %v3195_v56 = vadd.f32 %v703_v58, %v3043_v20  ;;  %v3198_v63 = vadd.f32 %v704_v10, %v3046_v33  ;;  %v742_v24 = vmax.f32 %v738_v11, 0.0  ;;  %v743_v48 = vmax.f32 %v739_v41, 0.0  ;;  %v3228_v10 = vld [vmem:[#allocation10] sm:$0xff] }
  0xd6   :  { %v744_v12 = vmax.f32 %v740_v13, 0.0  ;;  %v3203_v6 = vstv %s3128_s8  ;;  %v3208_v4 = vadd.f32 %v724_v30, %v3052_v15  ;;  %v3211_v57 = vadd.f32 %v725_v21, %v3063_v17 }
  0xd7   :  { %4331 = vst [vmem:[#allocation48_spill] sm:$0xff] %v3203_v6  ;;  %v3214_v20 = vadd.f32 %v726_v51, %v3066_v37  ;;  %v3217_v33 = vstv %s3116_s7  ;;  %v3220_v50 = vadd.f32 %v727_v44, %v3099_v54  ;;  %v745_v13 = vmax.f32 %v741_v31, 0.0 }
  0xd8   :  { %4332 = vst [vmem:[#allocation49_spill] sm:$0xff] %v3217_v33  ;;  %v3223_v46 = vstv %s3153_s11  ;;  %v3226_v58 = vstv %s3143_s10  ;;  %v756_v15 = vmul.f32 %v3228_v10, %v3217_v33  ;;  %v757_v17 = vmul.f32 %v3139_v29, %v3217_v33 }
  0xd9   :  { %4333 = vst [vmem:[#allocation50_spill] sm:$0xff] %v3223_v46  ;;  %4334 = vst [vmem:[#allocation51_spill] sm:$0xff] %v3226_v58  ;;  %v758_v37 = vmul.f32 %v3164_v62, %v3217_v33  ;;  %v759_v54 = vmul.f32 %v3168_v39, %v3217_v33  ;;  %v747_v31 = vmul.f32 %v3203_v6, %v742_v24  ;;  %v3242_v51 = vstv %s3159_s12 }
  0xda   :  { %v748_v30 = vmul.f32 %v3203_v6, %v743_v48  ;;  %v749_v21 = vmul.f32 %v3203_v6, %v744_v12  ;;  %4335 = vst [vmem:[#allocation52_spill] sm:$0xff] %v3242_v51  ;;  %v761_v44 = vadd.f32 %v3223_v46, %v756_v15  ;;  %v762_v11 = vadd.f32 %v3223_v46, %v757_v17 }
  0xdb   :  { %v763_v41 = vadd.f32 %v3223_v46, %v758_v37  ;;  %v764_v35 = vadd.f32 %v3223_v46, %v759_v54  ;;  %v779_v24 = vmul.f32 %v3228_v10, %v3226_v58  ;;  %v780_v48 = vmul.f32 %v3139_v29, %v3226_v58 }
  0xdc   :  { %v781_v12 = vmul.f32 %v3164_v62, %v3226_v58  ;;  %v782_v15 = vmul.f32 %v3168_v39, %v3226_v58  ;;  %v765_v17 = vmax.f32 %v761_v44, 0.0  ;;  %v766_v33 = vmax.f32 %v762_v11, 0.0 }
  0xdd   :  { %v767_v37 = vmax.f32 %v763_v41, 0.0  ;;  %v768_v18 = vmax.f32 %v764_v35, 0.0  ;;  %v750_v54 = vmul.f32 %v3203_v6, %v745_v13  ;;  %v3258_v46 = vadd.f32 %v747_v31, %v3105_v53 }
  0xde   :  { %v3261_v22 = vadd.f32 %v748_v30, %v3108_v60  ;;  %v3269_v59 = vadd.f32 %v749_v21, %v3111_v28  ;;  %v3272_v58 = vstv %s3205_s16  ;;  %v3275_v44 = vstv %s3179_s13 }
  0xdf   :  { %4336 = vst [vmem:[#allocation55_spill] sm:$0xff] %v3272_v58  ;;  %4337 = vst [vmem:[#allocation56_spill] sm:$0xff] %v3275_v44  ;;  %v3278_v35 = vstv %s3200_s15  ;;  %v784_v53 = vadd.f32 %v3264_v45, %v779_v24  ;;  %v785_v60 = vadd.f32 %v3264_v45, %v780_v48  ;;  %v786_v13 = vadd.f32 %v3264_v45, %v781_v12 }
  0xe0   :  { %4338 = vst [vmem:[#allocation57_spill] sm:$0xff] %v3278_v35  ;;  %v787_v31 = vadd.f32 %v3264_v45, %v782_v15  ;;  %v770_v28 = vmul.f32 %v3242_v51, %v765_v17  ;;  %v771_v30 = vmul.f32 %v3242_v51, %v766_v33  ;;  %v772_v21 = vmul.f32 %v3242_v51, %v767_v37 }
  0xe1   :  { %v773_v11 = vmul.f32 %v3242_v51, %v768_v18  ;;  %v788_v41 = vmax.f32 %v784_v53, 0.0  ;;  %v789_v6 = vmax.f32 %v785_v60, 0.0  ;;  %v790_v42 = vmax.f32 %v786_v13, 0.0 }
  0xe2   :  { %v791_v24 = vmax.f32 %v787_v31, 0.0  ;;  %v802_v48 = vmul.f32 %v3228_v10, %v3275_v44  ;;  %v803_v12 = vmul.f32 %v3139_v29, %v3275_v44  ;;  %v804_v15 = vmul.f32 %v3164_v62, %v3275_v44 }
  0xe3   :  { %v805_v33 = vmul.f32 %v3168_v39, %v3275_v44  ;;  %v3305_v18 = vadd.f32 %v750_v54, %v3114_v7  ;;  %v793_v17 = vmul.f32 %v3272_v58, %v788_v41  ;;  %v794_v37 = vmul.f32 %v3272_v58, %v789_v6 }
  0xe4   :  { %v795_v53 = vmul.f32 %v3272_v58, %v790_v42  ;;  %v807_v60 = vadd.f32 %v3278_v35, %v802_v48  ;;  %v808_v13 = vadd.f32 %v3278_v35, %v803_v12  ;;  %v809_v31 = vadd.f32 %v3278_v35, %v804_v15 }
  0xe5   :  { %v810_v51 = vadd.f32 %v3278_v35, %v805_v33  ;;  %v3317_v7 = vadd.f32 %v770_v28, %v3120_v34  ;;  %v3320_v6 = vadd.f32 %v771_v30, %v3131_v23  ;;  %v3323_v42 = vadd.f32 %v772_v21, %v3134_v61 }
  0xe6   :  { %v3326_v54 = vadd.f32 %v773_v11, %v3162_v1  ;;  %v796_v41 = vmul.f32 %v3272_v58, %v791_v24  ;;  %v811_v48 = vmax.f32 %v807_v60, 0.0  ;;  %v812_v12 = vmax.f32 %v808_v13, 0.0 }
  0xe7   :  { %v813_v15 = vmax.f32 %v809_v31, 0.0  ;;  %v3332_v34 = vadd.f32 %v793_v17, %v3189_v26  ;;  %v3335_v23 = vadd.f32 %v794_v37, %v3192_v38  ;;  %v3338_v28 = vstv %s3280_s18 }
  0xe8   :  { %4339 = vst [vmem:[#allocation59_spill] sm:$0xff] %v3338_v28  ;;  %v3341_v61 = vstv %s3266_s17  ;;  %v3344_v1 = vadd.f32 %v795_v53, %v3195_v56  ;;  %v814_v30 = vmax.f32 %v810_v51, 0.0  ;;  %v816_v21 = vmul.f32 %v3338_v28, %v811_v48 }
  0xe9   :  { %4340 = vst [vmem:[#allocation60_spill] sm:$0xff] %v3341_v61  ;;  %v3348_v11 = vstv %s3286_s4  ;;  %v825_v26 = vmul.f32 %v3228_v10, %v3341_v61  ;;  %v826_v38 = vmul.f32 %v3139_v29, %v3341_v61  ;;  %v827_v24 = vmul.f32 %v3164_v62, %v3341_v61 }
  0xea   :  { %4341 = vst [vmem:[#allocation61_spill] sm:$0xff] %v3348_v11  ;;  %v828_v56 = vmul.f32 %v3168_v39, %v3341_v61  ;;  %v3361_v51 = vadd.f32 %v796_v41, %v3198_v63  ;;  %v817_v33 = vmul.f32 %v3338_v28, %v812_v12  ;;  %v818_v17 = vmul.f32 %v3338_v28, %v813_v15 }
  0xeb   :  { %v3366_v37 = vstv %s3292_s19  ;;  %v830_v53 = vadd.f32 %v3348_v11, %v825_v26  ;;  %v831_v60 = vadd.f32 %v3348_v11, %v826_v38  ;;  %v832_v13 = vadd.f32 %v3348_v11, %v827_v24 }
  0xec   :  { %v833_v31 = vadd.f32 %v3348_v11, %v828_v56  ;;  %v819_v48 = vmul.f32 %v3338_v28, %v814_v30  ;;  %v820_v61 = vadd.f32 %v816_v21, %v3208_v4  ;;  %v3375_v63 = vstv %s3302_s20 }
  0xed   :  { %4342 = vst [vmem:[#allocation63_spill] sm:$0xff] %v3375_v63  ;;  %v3378_v41 = vstv %s3310_s21  ;;  %v834_v12 = vmax.f32 %v830_v53, 0.0  ;;  %v835_v15 = vmax.f32 %v831_v60, 0.0  ;;  %v836_v26 = vmax.f32 %v832_v13, 0.0 }
  0xee   :  { %v837_v58 = vmax.f32 %v833_v31, 0.0  ;;  %v848_v38 = vmul.f32 %v3228_v10, %v3375_v63  ;;  %v849_v4 = vmul.f32 %v3139_v29, %v3375_v63  ;;  %v850_v30 = vmul.f32 %v3164_v62, %v3375_v63 }
  0xef   :  { %v851_v21 = vmul.f32 %v3168_v39, %v3375_v63  ;;  %v821_v24 = vadd.f32 %v817_v33, %v3211_v57  ;;  %v839_v56 = vmul.f32 %v3366_v37, %v834_v12  ;;  %v840_v53 = vmul.f32 %v3366_v37, %v835_v15 }
  0xf0   :  { %v3396_v60 = vstv %s3329_s22  ;;  %v853_v13 = vadd.f32 %v3378_v41, %v848_v38  ;;  %v854_v31 = vadd.f32 %v3378_v41, %v849_v4  ;;  %v855_v28 = vadd.f32 %v3378_v41, %v850_v30 }
  0xf1   :  { %v856_v11 = vadd.f32 %v3378_v41, %v851_v21  ;;  %v841_v35 = vmul.f32 %v3366_v37, %v836_v26  ;;  %v842_v63 = vmul.f32 %v3366_v37, %v837_v58  ;;  %v843_v57 = vadd.f32 %v839_v56, %v3258_v46 }
  0xf2   :  { %v3406_v33 = vstv %s3350_s23  ;;  %v857_v12 = vmax.f32 %v853_v13, 0.0  ;;  %v858_v15 = vmax.f32 %v854_v31, 0.0  ;;  %v859_v44 = vmax.f32 %v855_v28, 0.0 }
  0xf3   :  { %v860_v38 = vmax.f32 %v856_v11, 0.0  ;;  %v871_v4 = vmul.f32 %v3228_v10, %v3396_v60  ;;  %v872_v30 = vmul.f32 %v3139_v29, %v3396_v60  ;;  %v873_v26 = vmul.f32 %v3164_v62, %v3396_v60 }
  0xf4   :  { %v874_v46 = vmul.f32 %v3168_v39, %v3396_v60  ;;  %v844_v58 = vadd.f32 %v840_v53, %v3261_v22  ;;  %v862_v21 = vmul.f32 %v3406_v33, %v857_v12  ;;  %v863_v28 = vmul.f32 %v3406_v33, %v858_v15 }
  0xf5   :  { %v864_v11 = vmul.f32 %v3406_v33, %v859_v44  ;;  %v822_v56 = vadd.f32 %v818_v17, %v3214_v20  ;;  %v823_v10 = vadd.f32 %v819_v48, %v3220_v50  ;;  %v845_v29 = vadd.f32 %v841_v35, %v3269_v59  ;;  %v3435_v50 = vld [vmem:[#allocation10 + $0x20] sm:$0xff]  ;;  %v3437_v59 = vld [vmem:[#allocation10 + $0x28] sm:$0xff] }
  0xf6   :  { %v3424_v13 = vstv %s3380_s24  ;;  %v846_v62 = vadd.f32 %v842_v63, %v3305_v18  ;;  %v865_v39 = vmul.f32 %v3406_v33, %v860_v38  ;;  %v3429_v31 = vstv %s3382_s25  ;;  %v3442_v38 = vld [vmem:[#allocation10 + $0x30] sm:$0xff] }
  0xf7   :  { %v893_v22 = vadd.f32 %v843_v57, %v820_v61  ;;  %v876_v53 = vadd.f32 %v3424_v13, %v871_v4  ;;  %v877_v12 = vadd.f32 %v3424_v13, %v872_v30  ;;  %v878_v44 = vadd.f32 %v3424_v13, %v873_v26  ;;  %v4343_v26 = vld [vmem:[#allocation16_spill] sm:$0xff] }
  0xf8   :  { %v879_v20 = vadd.f32 %v3424_v13, %v874_v46  ;;  %v866_v35 = vadd.f32 %v862_v21, %v3317_v7  ;;  %v867_v18 = vadd.f32 %v863_v28, %v3320_v6  ;;  %v868_v17 = vadd.f32 %v864_v11, %v3323_v42 }
  0xf9   :  { %v894_v48 = vadd.f32 %v844_v58, %v821_v24  ;;  %v880_v61 = vmax.f32 %v876_v53, 0.0  ;;  %v881_v63 = vmax.f32 %v877_v12, 0.0  ;;  %v882_v57 = vmax.f32 %v878_v44, 0.0  ;;  %v4345_v44 = vld [vmem:[#allocation83_spill] sm:$0xff] }
  0xfa   :  { %v883_v15 = vmax.f32 %v879_v20, 0.0  ;;  %v869_v4 = vadd.f32 %v865_v39, %v3326_v54  ;;  %v895_v30 = vadd.f32 %v845_v29, %v822_v56  ;;  %v921_v46 = vmul.f32 %v3435_v50, %v4343_v26  ;;  %v4344_v54 = vld [vmem:[#allocation17_spill] sm:$0xff] }
  0xfb   :  { %v922_v7 = vmul.f32 %v3437_v59, %v4343_v26  ;;  %v885_v6 = vmul.f32 %v3429_v31, %v880_v61  ;;  %v886_v42 = vmul.f32 %v3429_v31, %v881_v63  ;;  %v887_v24 = vmul.f32 %v3429_v31, %v882_v57 }
  0xfc   :  { %v888_v58 = vmul.f32 %v3429_v31, %v883_v15  ;;  %v896_v21 = vadd.f32 %v846_v62, %v823_v10  ;;  %v923_v28 = vmul.f32 %v3442_v38, %v4343_v26  ;;  %v933_v11 = vmul.f32 %v3435_v50, %v4344_v54 }
  0xfd   :  { %v934_v56 = vmul.f32 %v3437_v59, %v4344_v54  ;;  %v889_v29 = vadd.f32 %v885_v6, %v3332_v34  ;;  %v890_v39 = vadd.f32 %v886_v42, %v3335_v23  ;;  %v891_v53 = vadd.f32 %v887_v24, %v3344_v1  ;;  %v4347_v1 = vld [vmem:[#allocation89_spill] sm:$0xff] }
  0xfe   :  { %v892_v12 = vadd.f32 %v888_v58, %v3361_v51  ;;  %v924_v20 = vadd.f32 %v921_v46, %v4345_v44  ;;  %v925_v10 = vadd.f32 %v922_v7, %v4345_v44  ;;  %v935_v62 = vmul.f32 %v3442_v38, %v4344_v54 }
  0xff   :  { %v897_v61 = vadd.f32 %v889_v29, %v866_v35  ;;  %v898_v63 = vadd.f32 %v890_v39, %v867_v18  ;;  %v899_v57 = vadd.f32 %v891_v53, %v868_v17  ;;  %v3470_v34 = vstv %s3942_s3  ;;  %v4348_v17 = vld [vmem:[#allocation18_spill] sm:$0xff]  ;;  %s1620_s3 = smov [#allocation11]  }
 0x100   :  { %v900_v15 = vadd.f32 %v892_v12, %v869_v4  ;;  %4346 = vst [vmem:[#allocation64_spill] sm:$0xff] %v3470_v34  ;;  %v926_v23 = vadd.f32 %v923_v28, %v4345_v44  ;;  %v936_v51 = vadd.f32 %v933_v11, %v4347_v1  ;;  %v937_v26 = vadd.f32 %v934_v56, %v4347_v1  ;;  %s1412_s0 = sshll.u32 %s1620_s3, 4  ;;  %s1413_s0 = int_to_ptr.vmem [resolvable:$true] %s1412_s0 }
 0x101   :  { %v901_v46 = vadd.f32 %v897_v61, %v893_v22  ;;  %v902_v7 = vadd.f32 %v898_v63, %v894_v48  ;;  %v903_v6 = vadd.f32 %v899_v57, %v895_v30  ;;  %v927_v24 = vmax.f32 %v924_v20, 0.0  ;;  %v4349_v20 = vld [vmem:[#allocation90_spill] sm:$0xff]  ;;  %v4350_v61 = vld [vmem:[#allocation19_spill] sm:$0xff]  ;;  %s1586_s27 = scalar_lea.vmem %s1413_s0, 896  ;;  %p1591_p7 = scmp.lt.s32.totalorder %s1413_s0, %s1413_s0 }
 0x102   :  { %v904_v42 = vadd.f32 %v900_v15, %v896_v21  ;;  %v928_v35 = vmax.f32 %v925_v10, 0.0  ;;  %v938_v18 = vadd.f32 %v935_v62, %v4347_v1  ;;  %v945_v4 = vmul.f32 %v3435_v50, %v4348_v17  ;;  %p1587_p6 = scmp.ne.s32.totalorder %s1413_s0, %s1586_s27  ;;  %p1592_p8 = scmp.lt.s32.totalorder %s1586_s27, %s1586_s27 }
 0x103   :  { %v906_v58 = vadd.f32 %v3470_v34, %v901_v46  ;;  %v907_v54 = vadd.f32 %v3470_v34, %v902_v7  ;;  %v908_v28 = vadd.f32 %v3470_v34, %v903_v6  ;;  %v929_v56 = vmax.f32 %v926_v23, 0.0  ;;  %v4351_v23 = vld [vmem:[#allocation20_spill] sm:$0xff] }
 0x104   :  { %v909_v11 = vadd.f32 %v3470_v34, %v904_v42  ;;  %v939_v22 = vmax.f32 %v936_v51, 0.0  ;;  %v940_v48 = vmax.f32 %v937_v26, 0.0  ;;  %v946_v30 = vmul.f32 %v3437_v59, %v4348_v17  ;;  %v4352_v51 = vld [vmem:[#allocation110_spill] sm:$0xff]  ;;  %p1593_p9 = por %p1592_p8, %p1591_p7 }
 0x105   :  { %v910_v21 = vmax.f32 %v906_v58, 0.0  ;;  %v911_v29 = vmax.f32 %v907_v54, 0.0  ;;  %v912_v39 = vmax.f32 %v908_v28, 0.0  ;;  %v941_v12 = vmax.f32 %v938_v18, 0.0  ;;  %v4354_v28 = vld [vmem:[#allocation39_spill] sm:$0xff] }
 0x106   :  { %v913_v53 = vmax.f32 %v909_v11, 0.0  ;;  %v947_v44 = vmul.f32 %v3442_v38, %v4348_v17  ;;  %v948_v10 = vadd.f32 %v945_v4, %v4349_v20  ;;  %v949_v62 = vadd.f32 %v946_v30, %v4349_v20  ;;  %v4353_v17 = vld [vmem:[#allocation96_spill] sm:$0xff]  ;;  %v4355_v30 = vld [vmem:[#allocation97_spill] sm:$0xff]  ;;  %p1594_p10 = pnand %p1593_p9, %p1587_p6 }
 0x107   :  { %914 = vst [vmem:[#allocation11] sm:$0xff] %v910_v21  ;;  %915 = vst [vmem:[#allocation11 + $0x8] sm:$0xff] %v911_v29  ;;  %v957_v63 = vmul.f32 %v3435_v50, %v4350_v61  ;;  %v958_v57 = vmul.f32 %v3437_v59, %v4350_v61  ;;  %v959_v15 = vmul.f32 %v3442_v38, %v4350_v61 }
 0x108   :  { %916 = vst [vmem:[#allocation11 + $0x10] sm:$0xff] %v912_v39  ;;  %917 = vst [vmem:[#allocation11 + $0x18] sm:$0xff] %v913_v53  ;;  %v969_v1 = vmul.f32 %v3435_v50, %v4351_v23  ;;  %v930_v26 = vmul.f32 %v927_v24, %v4352_v51  ;;  %v931_v46 = vmul.f32 %v928_v35, %v4352_v51  ;;  %v951_v42 = vmax.f32 %v948_v10, 0.0 }
 0x109   :  { %v950_v7 = vadd.f32 %v947_v44, %v4349_v20  ;;  %v970_v6 = vmul.f32 %v3437_v59, %v4351_v23  ;;  %v952_v18 = vmax.f32 %v949_v62, 0.0  ;;  %v960_v4 = vadd.f32 %v957_v63, %v4353_v17 }
 0x10a   :  { %v971_v58 = vmul.f32 %v3442_v38, %v4351_v23  ;;  %v932_v54 = vmul.f32 %v929_v56, %v4352_v51  ;;  %v942_v11 = vmul.f32 %v939_v22, %v4354_v28  ;;  %v961_v24 = vadd.f32 %v958_v57, %v4353_v17  ;;  %v4356_v56 = vld [vmem:[#allocation21_spill] sm:$0xff]  ;;  %v4357_v51 = vld [vmem:[#allocation98_spill] sm:$0xff] }
 0x10b   :  { %v972_v35 = vadd.f32 %v969_v1, %v4355_v30  ;;  %v943_v21 = vmul.f32 %v940_v48, %v4354_v28  ;;  %v3510_v29 = vmul.f32 %v941_v12, %v4354_v28  ;;  %v962_v39 = vadd.f32 %v959_v15, %v4353_v17 }
 0x10c   :  { %v973_v53 = vadd.f32 %v970_v6, %v4355_v30  ;;  %v953_v44 = vmax.f32 %v950_v7, 0.0  ;;  %v974_v20 = vadd.f32 %v971_v58, %v4355_v30  ;;  %v984_v22 = vmul.f32 %v3435_v50, %v4356_v56  ;;  %v4358_v6 = vld [vmem:[#allocation22_spill] sm:$0xff] }
 0x10d   :  { %v975_v10 = vmax.f32 %v972_v35, 0.0  ;;  %v3518_v62 = vmul.f32 %v951_v42, %v2582_v8  ;;  %v3521_v61 = vmul.f32 %v952_v18, %v2582_v8  ;;  %v963_v48 = vmax.f32 %v960_v4, 0.0  ;;  %v4359_v4 = vld [vmem:[#allocation41_spill] sm:$0xff] }
 0x10e   :  { %v976_v12 = vmax.f32 %v973_v53, 0.0  ;;  %v964_v63 = vmax.f32 %v961_v24, 0.0  ;;  %v977_v57 = vmax.f32 %v974_v20, 0.0  ;;  %v985_v15 = vmul.f32 %v3437_v59, %v4356_v56  ;;  %v4360_v53 = vld [vmem:[#allocation99_spill] sm:$0xff] }
 0x10f   :  { %v986_v23 = vmul.f32 %v3442_v38, %v4356_v56  ;;  %v965_v1 = vmax.f32 %v962_v39, 0.0  ;;  %v987_v7 = vadd.f32 %v984_v22, %v4357_v51  ;;  %v999_v42 = vmul.f32 %v3435_v50, %v4358_v6 }
 0x110   :  { %v1000_v18 = vmul.f32 %v3437_v59, %v4358_v6  ;;  %v956_v17 = vmul.f32 %v953_v44, %v2582_v8  ;;  %v978_v58 = vmul.f32 %v975_v10, %v4359_v4  ;;  %v988_v28 = vadd.f32 %v985_v15, %v4357_v51 }
 0x111   :  { %v989_v24 = vadd.f32 %v986_v23, %v4357_v51  ;;  %v979_v30 = vmul.f32 %v976_v12, %v4359_v4  ;;  %v990_v35 = vmax.f32 %v987_v7, 0.0  ;;  %v1001_v39 = vmul.f32 %v3442_v38, %v4358_v6  ;;  %v4361_v23 = vld [vmem:[#allocation23_spill] sm:$0xff] }
 0x112   :  { %v1002_v20 = vadd.f32 %v999_v42, %v4360_v53  ;;  %v980_v56 = vmul.f32 %v977_v57, %v4359_v4  ;;  %v991_v22 = vmax.f32 %v988_v28, 0.0  ;;  %v1003_v8 = vadd.f32 %v1000_v18, %v4360_v53 }
 0x113   :  { %v992_v34 = vmax.f32 %v989_v24, 0.0  ;;  %v966_v44 = vmul.f32 %v963_v48, %v2601_v32  ;;  %v993_v10 = vmul.f32 %v990_v35, %v2607_v9  ;;  %v1004_v15 = vadd.f32 %v1001_v39, %v4360_v53 }
 0x114   :  { %v1014_v12 = vmul.f32 %v3435_v50, %v4361_v23  ;;  %v967_v51 = vmul.f32 %v964_v63, %v2601_v32  ;;  %v968_v7 = vmul.f32 %v965_v1, %v2601_v32  ;;  %v1005_v6 = vmax.f32 %v1002_v20, 0.0  ;;  %v4362_v63 = vld [vmem:[#allocation100_spill] sm:$0xff] }
 0x115   :  { %v1015_v57 = vmul.f32 %v3437_v59, %v4361_v23  ;;  %v981_v42 = vadd.f32 %v978_v58, %v930_v26  ;;  %v3551_v4 = vadd.f32 %v979_v30, %v931_v46  ;;  %v1006_v18 = vmax.f32 %v1003_v8, 0.0  ;;  %v4363_v30 = vld [vmem:[#allocation24_spill] sm:$0xff]  ;;  %v4364_v8 = vld [vmem:[#allocation101_spill] sm:$0xff] }
 0x116   :  { %v1016_v48 = vmul.f32 %v3442_v38, %v4361_v23  ;;  %v3555_v28 = vadd.f32 %v980_v56, %v932_v54  ;;  %v994_v24 = vmul.f32 %v991_v22, %v2607_v9  ;;  %v995_v35 = vmul.f32 %v992_v34, %v2607_v9  ;;  %v4365_v23 = vld [vmem:[#allocation25_spill] sm:$0xff] }
 0x117   :  { %v1017_v39 = vadd.f32 %v1014_v12, %v4362_v63  ;;  %v3560_v32 = vadd.f32 %v993_v10, %v942_v11  ;;  %v1007_v1 = vmax.f32 %v1004_v15, 0.0  ;;  %v1018_v53 = vadd.f32 %v1015_v57, %v4362_v63 }
 0x118   :  { %v1019_v26 = vadd.f32 %v1016_v48, %v4362_v63  ;;  %v1008_v46 = vmul.f32 %v1005_v6, %v2663_v14  ;;  %v1029_v54 = vmul.f32 %v3435_v50, %v4363_v30  ;;  %v1030_v20 = vmul.f32 %v3437_v59, %v4363_v30 }
 0x119   :  { %v1020_v58 = vmax.f32 %v1017_v39, 0.0  ;;  %v1009_v9 = vmul.f32 %v1006_v18, %v2663_v14  ;;  %v1021_v34 = vmax.f32 %v1018_v53, 0.0  ;;  %v1031_v11 = vmul.f32 %v3442_v38, %v4363_v30 }
 0x11a   :  { %v1022_v56 = vmax.f32 %v1019_v26, 0.0  ;;  %v997_v22 = vadd.f32 %v994_v24, %v943_v21  ;;  %v1032_v10 = vadd.f32 %v1029_v54, %v4364_v8  ;;  %v1033_v15 = vadd.f32 %v1030_v20, %v4364_v8 }
 0x11b   :  { %v1044_v12 = vmul.f32 %v3435_v50, %v4365_v23  ;;  %v998_v6 = vadd.f32 %v995_v35, %v3510_v29  ;;  %v1010_v57 = vmul.f32 %v1007_v1, %v2663_v14  ;;  %v1034_v48 = vadd.f32 %v1031_v11, %v4364_v8  ;;  %v4366_v14 = vld [vmem:[#allocation102_spill] sm:$0xff] }
 0x11c   :  { %v1045_v18 = vmul.f32 %v3437_v59, %v4365_v23  ;;  %v1023_v63 = vmul.f32 %v1020_v58, %v2666_v0  ;;  %v1024_v21 = vmul.f32 %v1021_v34, %v2666_v0  ;;  %v1035_v24 = vmax.f32 %v1032_v10, 0.0  ;;  %v4367_v11 = vld [vmem:[#allocation26_spill] sm:$0xff] }
 0x11d   :  { %v1046_v39 = vmul.f32 %v3442_v38, %v4365_v23  ;;  %v1011_v53 = vadd.f32 %v1008_v46, %v3518_v62  ;;  %v1012_v26 = vadd.f32 %v1009_v9, %v3521_v61  ;;  %v1025_v29 = vmul.f32 %v1022_v56, %v2666_v0 }
 0x11e   :  { %v1047_v35 = vadd.f32 %v1044_v12, %v4366_v14  ;;  %v1036_v1 = vmax.f32 %v1033_v15, 0.0  ;;  %v1037_v30 = vmax.f32 %v1034_v48, 0.0  ;;  %v1048_v54 = vadd.f32 %v1045_v18, %v4366_v14  ;;  %v4368_v15 = vld [vmem:[#allocation103_spill] sm:$0xff] }
 0x11f   :  { %v1049_v58 = vadd.f32 %v1046_v39, %v4366_v14  ;;  %v1013_v20 = vadd.f32 %v1010_v57, %v956_v17  ;;  %v1059_v8 = vmul.f32 %v3435_v50, %v4367_v11  ;;  %v1060_v62 = vmul.f32 %v3437_v59, %v4367_v11  ;;  %v4369_v48 = vld [vmem:[#allocation27_spill] sm:$0xff] }
 0x120   :  { %v1050_v34 = vmax.f32 %v1047_v35, 0.0  ;;  %v3595_v46 = vadd.f32 %v1023_v63, %v966_v44  ;;  %v3597_v61 = vadd.f32 %v1024_v21, %v967_v51  ;;  %v1038_v0 = vmul.f32 %v1035_v24, %v2689_v16 }
 0x121   :  { %v1051_v9 = vmax.f32 %v1048_v54, 0.0  ;;  %v3600_v56 = vadd.f32 %v1025_v29, %v968_v7  ;;  %v1052_v10 = vmax.f32 %v1049_v58, 0.0  ;;  %v1061_v17 = vmul.f32 %v3442_v38, %v4367_v11  ;;  %v4371_v11 = vld [vmem:[#allocation28_spill] sm:$0xff] }
 0x122   :  { %v1062_v23 = vadd.f32 %v1059_v8, %v4368_v15  ;;  %v1039_v12 = vmul.f32 %v1036_v1, %v2689_v16  ;;  %v1040_v57 = vmul.f32 %v1037_v30, %v2689_v16  ;;  %v1063_v44 = vadd.f32 %v1060_v62, %v4368_v15  ;;  %v4370_v1 = vld [vmem:[#allocation104_spill] sm:$0xff] }
 0x123   :  { %v1074_v51 = vmul.f32 %v3435_v50, %v4369_v48  ;;  %v1053_v18 = vmul.f32 %v1050_v34, %v2700_v27  ;;  %v1064_v7 = vadd.f32 %v1061_v17, %v4368_v15  ;;  %v1075_v21 = vmul.f32 %v3437_v59, %v4369_v48  ;;  %v4372_v15 = vld [vmem:[#allocation105_spill] sm:$0xff] }
 0x124   :  { %v1065_v63 = vmax.f32 %v1062_v23, 0.0  ;;  %v1041_v24 = vadd.f32 %v1038_v0, %v981_v42  ;;  %v1054_v39 = vmul.f32 %v1051_v9, %v2700_v27  ;;  %v1066_v29 = vmax.f32 %v1063_v44, 0.0 }
 0x125   :  { %v1076_v16 = vmul.f32 %v3442_v38, %v4369_v48  ;;  %v1055_v14 = vmul.f32 %v1052_v10, %v2700_v27  ;;  %v1067_v35 = vmax.f32 %v1064_v7, 0.0  ;;  %v1077_v30 = vadd.f32 %v1074_v51, %v4370_v1 }
 0x126   :  { %v1078_v54 = vadd.f32 %v1075_v21, %v4370_v1  ;;  %v1042_v58 = vadd.f32 %v1039_v12, %v3551_v4  ;;  %v1089_v42 = vmul.f32 %v3435_v50, %v4371_v11  ;;  %v1090_v8 = vmul.f32 %v3437_v59, %v4371_v11 }
 0x127   :  { %v1079_v34 = vadd.f32 %v1076_v16, %v4370_v1  ;;  %v1043_v62 = vadd.f32 %v1040_v57, %v3555_v28  ;;  %v1056_v0 = vadd.f32 %v1053_v18, %v3560_v32  ;;  %v1068_v27 = vmul.f32 %v1065_v63, %v2731_v2  ;;  %v4373_v18 = vld [vmem:[#allocation29_spill] sm:$0xff] }
 0x128   :  { %v1069_v9 = vmul.f32 %v1066_v29, %v2731_v2  ;;  %v1070_v10 = vmul.f32 %v1067_v35, %v2731_v2  ;;  %v1080_v17 = vmax.f32 %v1077_v30, 0.0  ;;  %v1091_v4 = vmul.f32 %v3442_v38, %v4371_v11  ;;  %v4374_v35 = vld [vmem:[#allocation106_spill] sm:$0xff] }
 0x129   :  { %v1092_v23 = vadd.f32 %v1089_v42, %v4372_v15  ;;  %v1057_v12 = vadd.f32 %v1054_v39, %v997_v22  ;;  %v3634_v44 = vadd.f32 %v1055_v14, %v998_v6  ;;  %v1081_v48 = vmax.f32 %v1078_v54, 0.0 }
 0x12a   :  { %v1093_v28 = vadd.f32 %v1090_v8, %v4372_v15  ;;  %v1082_v57 = vmax.f32 %v1079_v34, 0.0  ;;  %v1094_v32 = vadd.f32 %v1091_v4, %v4372_v15  ;;  %v1104_v7 = vmul.f32 %v3435_v50, %v4373_v18 }
 0x12b   :  { %v1095_v51 = vmax.f32 %v1092_v23, 0.0  ;;  %v3640_v2 = vadd.f32 %v1068_v27, %v1011_v53  ;;  %v3642_v63 = vadd.f32 %v1069_v9, %v1012_v26  ;;  %v1105_v22 = vmul.f32 %v3437_v59, %v4373_v18  ;;  %v4375_v26 = vld [vmem:[#allocation33_spill] sm:$0xff] }
 0x12c   :  { %v1096_v21 = vmax.f32 %v1093_v28, 0.0  ;;  %v3646_v6 = vadd.f32 %v1070_v10, %v1013_v20  ;;  %v1083_v39 = vmul.f32 %v1080_v17, %v2734_v52  ;;  %v1097_v29 = vmax.f32 %v1094_v32, 0.0  ;;  %v4376_v28 = vld [vmem:[#allocation34_spill] sm:$0xff] }
 0x12d   :  { %v1106_v16 = vmul.f32 %v3442_v38, %v4373_v18  ;;  %v1084_v14 = vmul.f32 %v1081_v48, %v2734_v52  ;;  %v1107_v1 = vadd.f32 %v1104_v7, %v4374_v35  ;;  %v1108_v53 = vadd.f32 %v1105_v22, %v4374_v35 }
 0x12e   :  { %v1119_v30 = vmul.f32 %v3435_v50, %v4375_v26  ;;  %v1085_v54 = vmul.f32 %v1082_v57, %v2734_v52  ;;  %v1098_v20 = vmul.f32 %v1095_v51, %v2757_v55  ;;  %v1120_v11 = vmul.f32 %v3437_v59, %v4375_v26 }
 0x12f   :  { %v1109_v34 = vadd.f32 %v1106_v16, %v4374_v35  ;;  %v1099_v42 = vmul.f32 %v1096_v21, %v2757_v55  ;;  %v1100_v8 = vmul.f32 %v1097_v29, %v2757_v55  ;;  %v1110_v27 = vmax.f32 %v1107_v1, 0.0 }
 0x130   :  { %v1121_v9 = vmul.f32 %v3442_v38, %v4375_v26  ;;  %v1111_v10 = vmax.f32 %v1108_v53, 0.0  ;;  %v1122_v4 = vadd.f32 %v1119_v30, %v2523_v40  ;;  %v1123_v52 = vadd.f32 %v1120_v11, %v2523_v40  ;;  %v4378_v11 = vld [vmem:[#allocation42_spill] sm:$0xff] }
 0x131   :  { %v1112_v17 = vmax.f32 %v1109_v34, 0.0  ;;  %v1086_v15 = vadd.f32 %v1083_v39, %v3595_v46  ;;  %v1087_v23 = vadd.f32 %v1084_v14, %v3597_v61  ;;  %v1134_v57 = vmul.f32 %v3435_v50, %v4376_v28 }
 0x132   :  { %v1124_v48 = vadd.f32 %v1121_v9, %v2523_v40  ;;  %v1088_v55 = vadd.f32 %v1085_v54, %v3600_v56  ;;  %v1113_v32 = vmul.f32 %v1110_v27, %v2789_v43  ;;  %v1125_v51 = vmax.f32 %v1122_v4, 0.0 }
 0x133   :  { %v1135_v18 = vmul.f32 %v3437_v59, %v4376_v28  ;;  %v1101_v7 = vadd.f32 %v1098_v20, %v1041_v24  ;;  %v3676_v21 = vadd.f32 %v1099_v42, %v1042_v58  ;;  %v1126_v22 = vmax.f32 %v1123_v52, 0.0  ;;  %v4377_v24 = vld [vmem:[#allocation38_spill] sm:$0xff] }
 0x134   :  { %v1136_v46 = vmul.f32 %v3442_v38, %v4376_v28  ;;  %v3680_v61 = vadd.f32 %v1100_v8, %v1043_v62  ;;  %v1114_v40 = vmul.f32 %v1111_v10, %v2789_v43  ;;  %v1115_v39 = vmul.f32 %v1112_v17, %v2789_v43 }
 0x135   :  { %v1137_v56 = vadd.f32 %v1134_v57, %v2818_v25  ;;  %v1127_v29 = vmax.f32 %v1124_v48, 0.0  ;;  %v1138_v16 = vadd.f32 %v1135_v18, %v2818_v25  ;;  %v1149_v58 = vmul.f32 %v3435_v50, %v4377_v24 }
 0x136   :  { %v1139_v14 = vadd.f32 %v1136_v46, %v2818_v25  ;;  %v1116_v35 = vadd.f32 %v1113_v32, %v1056_v0  ;;  %v1128_v1 = vmul.f32 %v1125_v51, %v2815_v19  ;;  %v1150_v62 = vmul.f32 %v3437_v59, %v4377_v24 }
 0x137   :  { %v1140_v53 = vmax.f32 %v1137_v56, 0.0  ;;  %v1129_v26 = vmul.f32 %v1126_v22, %v2815_v19  ;;  %v1141_v43 = vmax.f32 %v1138_v16, 0.0  ;;  %v1151_v54 = vmul.f32 %v3442_v38, %v4377_v24  ;;  %v4379_v22 = vld [vmem:[#allocation53_spill] sm:$0xff]  ;;  %v4380_v24 = vld [vmem:[#allocation54_spill] sm:$0xff] }
 0x138   :  { %v1142_v30 = vmax.f32 %v1139_v14, 0.0  ;;  %v1117_v20 = vadd.f32 %v1114_v40, %v1057_v12  ;;  %v1152_v25 = vadd.f32 %v1149_v58, %v2858_v49  ;;  %v1153_v34 = vadd.f32 %v1150_v62, %v2858_v49  ;;  %v4381_v58 = vld [vmem:[#allocation107_spill] sm:$0xff] }
 0x139   :  { %v1164_v0 = vmul.f32 %v3435_v50, %v4378_v11  ;;  %v1118_v42 = vadd.f32 %v1115_v39, %v3634_v44  ;;  %v1130_v8 = vmul.f32 %v1127_v29, %v2815_v19  ;;  %v1154_v27 = vadd.f32 %v1151_v54, %v2858_v49 }
 0x13a   :  { %v1165_v9 = vmul.f32 %v3437_v59, %v4378_v11  ;;  %v1143_v10 = vmul.f32 %v1140_v53, %v2855_v3  ;;  %v1144_v12 = vmul.f32 %v1141_v43, %v2855_v3  ;;  %v1155_v17 = vmax.f32 %v1152_v25, 0.0 }
 0x13b   :  { %v1166_v4 = vmul.f32 %v3442_v38, %v4378_v11  ;;  %v1131_v52 = vadd.f32 %v1128_v1, %v3640_v2  ;;  %v1132_v48 = vadd.f32 %v1129_v26, %v3642_v63  ;;  %v1145_v44 = vmul.f32 %v1142_v30, %v2855_v3 }
 0x13c   :  { %v1167_v19 = vadd.f32 %v1164_v0, %v2870_v47  ;;  %v1156_v49 = vmax.f32 %v1153_v34, 0.0  ;;  %v1157_v28 = vmax.f32 %v1154_v27, 0.0  ;;  %v1168_v57 = vadd.f32 %v1165_v9, %v2870_v47  ;;  %v4382_v34 = vld [vmem:[#allocation109_spill] sm:$0xff]  ;;  %v4383_v27 = vld [vmem:[#allocation58_spill] sm:$0xff] }
 0x13d   :  { %v1169_v32 = vadd.f32 %v1166_v4, %v2870_v47  ;;  %v1133_v51 = vadd.f32 %v1130_v8, %v3646_v6  ;;  %v1179_v46 = vmul.f32 %v3435_v50, %v4379_v22  ;;  %v1180_v2 = vmul.f32 %v3437_v59, %v4379_v22 }
 0x13e   :  { %v1170_v18 = vmax.f32 %v1167_v19, 0.0  ;;  %v3719_v63 = vadd.f32 %v1143_v10, %v1086_v15  ;;  %v3721_v3 = vadd.f32 %v1144_v12, %v1087_v23  ;;  %v1158_v40 = vmul.f32 %v1155_v17, %v2867_v5  ;;  %v4384_v17 = vld [vmem:[#allocation108_spill] sm:$0xff] }
 0x13f   :  { %v1171_v39 = vmax.f32 %v1168_v57, 0.0  ;;  %v3724_v56 = vadd.f32 %v1145_v44, %v1088_v55  ;;  %v1172_v29 = vmax.f32 %v1169_v32, 0.0  ;;  %v1181_v47 = vmul.f32 %v3442_v38, %v4379_v22 }
 0x140   :  { %v1182_v6 = vadd.f32 %v1179_v46, %v2924_v36  ;;  %v1159_v16 = vmul.f32 %v1156_v49, %v2867_v5  ;;  %v1160_v14 = vmul.f32 %v1157_v28, %v2867_v5  ;;  %v1183_v15 = vadd.f32 %v1180_v2, %v2924_v36  ;;  %v4385_v28 = vld [vmem:[#allocation31_spill] sm:$0xff] }
 0x141   :  { %v1194_v23 = vmul.f32 %v3435_v50, %v4380_v24  ;;  %v1173_v1 = vmul.f32 %v1170_v18, %v4381_v58  ;;  %v1184_v55 = vadd.f32 %v1181_v47, %v2924_v36  ;;  %v1195_v62 = vmul.f32 %v3437_v59, %v4380_v24 }
 0x142   :  { %v1185_v53 = vmax.f32 %v1182_v6, 0.0  ;;  %v1161_v26 = vadd.f32 %v1158_v40, %v1101_v7  ;;  %v1174_v43 = vmul.f32 %v1171_v39, %v4381_v58  ;;  %v1186_v30 = vmax.f32 %v1183_v15, 0.0  ;;  %v4386_v40 = vld [vmem:[#allocation62_spill] sm:$0xff] }
 0x143   :  { %v1196_v5 = vmul.f32 %v3442_v38, %v4380_v24  ;;  %v1175_v54 = vmul.f32 %v1172_v29, %v4381_v58  ;;  %v1187_v25 = vmax.f32 %v1184_v55, 0.0  ;;  %v1197_v11 = vadd.f32 %v1194_v23, %v4382_v34  ;;  %v4388_v58 = vld [vmem:[#allocation36_spill] sm:$0xff] }
 0x144   :  { %v1198_v0 = vadd.f32 %v1195_v62, %v4382_v34  ;;  %v1162_v36 = vadd.f32 %v1159_v16, %v3676_v21  ;;  %v1209_v7 = vmul.f32 %v3435_v50, %v4383_v27  ;;  %v1210_v9 = vmul.f32 %v3437_v59, %v4383_v27  ;;  %v4387_v16 = vld [vmem:[#allocation30_spill] sm:$0xff]  ;;  %v4390_v62 = vld [vmem:[#allocation43_spill] sm:$0xff] }
 0x145   :  { %v1199_v8 = vadd.f32 %v1196_v5, %v4382_v34  ;;  %v1163_v10 = vadd.f32 %v1160_v14, %v3680_v61  ;;  %v1176_v12 = vadd.f32 %v1173_v1, %v1116_v35  ;;  %v1188_v4 = vmul.f32 %v1185_v53, %v4384_v17 }
 0x146   :  { %v1189_v44 = vmul.f32 %v1186_v30, %v4384_v17  ;;  %v1190_v19 = vmul.f32 %v1187_v25, %v4384_v17  ;;  %v1200_v49 = vmax.f32 %v1197_v11, 0.0  ;;  %v1211_v21 = vmul.f32 %v3442_v38, %v4383_v27 }
 0x147   :  { %v1212_v57 = vadd.f32 %v1209_v7, %v4385_v28  ;;  %v1177_v32 = vadd.f32 %v1174_v43, %v1117_v20  ;;  %v3757_v18 = vadd.f32 %v1175_v54, %v1118_v42  ;;  %v1201_v22 = vmax.f32 %v1198_v0, 0.0 }
 0x148   :  { %v1213_v46 = vadd.f32 %v1210_v9, %v4385_v28  ;;  %v1202_v61 = vmax.f32 %v1199_v8, 0.0  ;;  %v1214_v35 = vadd.f32 %v1211_v21, %v4385_v28  ;;  %v1224_v39 = vmul.f32 %v3435_v50, %v4386_v40  ;;  %v4391_v8 = vld [vmem:[#allocation32_spill] sm:$0xff]  ;;  %v4393_v21 = vld [vmem:[#allocation37_spill] sm:$0xff] }
 0x149   :  { %v1215_v2 = vmax.f32 %v1212_v57, 0.0  ;;  %v3763_v29 = vadd.f32 %v1188_v4, %v1131_v52  ;;  %v3765_v47 = vadd.f32 %v1189_v44, %v1132_v48  ;;  %v1225_v20 = vmul.f32 %v3437_v59, %v4386_v40  ;;  %v4389_v48 = vld [vmem:[#allocation73_spill] sm:$0xff]  ;;  %v4392_v44 = vld [vmem:[#allocation74_spill] sm:$0xff] }
 0x14a   :  { %v1216_v6 = vmax.f32 %v1213_v46, 0.0  ;;  %v3769_v42 = vadd.f32 %v1190_v19, %v1133_v51  ;;  %v1203_v14 = vmul.f32 %v1200_v49, %v4387_v16  ;;  %v1217_v15 = vmax.f32 %v1214_v35, 0.0 }
 0x14b   :  { %v1226_v24 = vmul.f32 %v3442_v38, %v4386_v40  ;;  %v1204_v23 = vmul.f32 %v1201_v22, %v4387_v16  ;;  %v1227_v1 = vadd.f32 %v1224_v39, %v4388_v58  ;;  %v1228_v52 = vadd.f32 %v1225_v20, %v4388_v58 }
 0x14c   :  { %v1239_v55 = vmul.f32 %v3435_v50, %v4389_v48  ;;  %v1205_v53 = vmul.f32 %v1202_v61, %v4387_v16  ;;  %v1218_v51 = vmul.f32 %v1215_v2, %v4390_v62  ;;  %v1240_v30 = vmul.f32 %v3437_v59, %v4389_v48 }
 0x14d   :  { %v1229_v43 = vadd.f32 %v1226_v24, %v4388_v58  ;;  %v1219_v5 = vmul.f32 %v1216_v6, %v4390_v62  ;;  %v1220_v54 = vmul.f32 %v1217_v15, %v4390_v62  ;;  %v1230_v25 = vmax.f32 %v1227_v1, 0.0  ;;  %v4396_v15 = vld [vmem:[#allocation35_spill] sm:$0xff] }
 0x14e   :  { %v1241_v34 = vmul.f32 %v3442_v38, %v4389_v48  ;;  %v1231_v11 = vmax.f32 %v1228_v52, 0.0  ;;  %v1242_v27 = vadd.f32 %v1239_v55, %v4391_v8  ;;  %v1243_v7 = vadd.f32 %v1240_v30, %v4391_v8 }
 0x14f   :  { %v1232_v0 = vmax.f32 %v1229_v43, 0.0  ;;  %v1206_v9 = vadd.f32 %v1203_v14, %v3719_v63  ;;  %v1207_v17 = vadd.f32 %v1204_v23, %v3721_v3  ;;  %v1254_v19 = vmul.f32 %v3435_v50, %v4392_v44 }
 0x150   :  { %v1244_v4 = vadd.f32 %v1241_v34, %v4391_v8  ;;  %v1208_v49 = vadd.f32 %v1205_v53, %v3724_v56  ;;  %v1233_v28 = vmul.f32 %v1230_v25, %v4393_v21  ;;  %v1245_v57 = vmax.f32 %v1242_v27, 0.0  ;;  %v4394_v56 = vld [vmem:[#allocation40_spill] sm:$0xff]  ;;  %v4397_v53 = vld [vmem:[#allocation45_spill] sm:$0xff] }
 0x151   :  { %v1255_v22 = vmul.f32 %v3437_v59, %v4392_v44  ;;  %v1221_v46 = vadd.f32 %v1218_v51, %v1161_v26  ;;  %v3799_v61 = vadd.f32 %v1219_v5, %v1162_v36  ;;  %v1246_v35 = vmax.f32 %v1243_v7, 0.0  ;;  %v4395_v26 = vld [vmem:[#allocation78_spill] sm:$0xff]  ;;  %v4399_v34 = vld [vmem:[#allocation44_spill] sm:$0xff] }
 0x152   :  { %v1256_v63 = vmul.f32 %v3442_v38, %v4392_v44  ;;  %v3803_v3 = vadd.f32 %v1220_v54, %v1163_v10  ;;  %v1234_v2 = vmul.f32 %v1231_v11, %v4393_v21  ;;  %v1235_v40 = vmul.f32 %v1232_v0, %v4393_v21 }
 0x153   :  { %v1257_v39 = vadd.f32 %v1254_v19, %v4394_v56  ;;  %v1247_v6 = vmax.f32 %v1244_v4, 0.0  ;;  %v1258_v20 = vadd.f32 %v1255_v22, %v4394_v56  ;;  %v1269_v36 = vmul.f32 %v3435_v50, %v4395_v26  ;;  %v4400_v4 = vld [vmem:[#allocation47_spill] sm:$0xff] }
 0x154   :  { %v1259_v16 = vadd.f32 %v1256_v63, %v4394_v56  ;;  %v3812_v14 = vadd.f32 %v1233_v28, %v1176_v12  ;;  %v1248_v24 = vmul.f32 %v1245_v57, %v4396_v15  ;;  %v1270_v23 = vmul.f32 %v3437_v59, %v4395_v26  ;;  %v4398_v12 = vld [vmem:[#allocation82_spill] sm:$0xff] }
 0x155   :  { %v1260_v10 = vmax.f32 %v1257_v39, 0.0  ;;  %v1249_v58 = vmul.f32 %v1246_v35, %v4396_v15  ;;  %v1261_v1 = vmax.f32 %v1258_v20, 0.0  ;;  %v1271_v48 = vmul.f32 %v3442_v38, %v4395_v26  ;;  %v4401_v35 = vld [vmem:[#allocation46_spill] sm:$0xff] }
 0x156   :  { %v1262_v52 = vmax.f32 %v1259_v16, 0.0  ;;  %v1237_v55 = vadd.f32 %v1234_v2, %v1177_v32  ;;  %v1272_v62 = vadd.f32 %v1269_v36, %v4397_v53  ;;  %v1273_v51 = vadd.f32 %v1270_v23, %v4397_v53  ;;  %v4402_v2 = vld [vmem:[#allocation49_spill] sm:$0xff]  ;;  %v4403_v36 = vld [vmem:[#allocation50_spill] sm:$0xff]  ;;  %v4404_v23 = vld [vmem:[#allocation51_spill] sm:$0xff] }
 0x157   :  { %v1284_v43 = vmul.f32 %v3435_v50, %v4398_v12  ;;  %v1238_v30 = vadd.f32 %v1235_v40, %v3757_v18  ;;  %v1250_v5 = vmul.f32 %v1247_v6, %v4396_v15  ;;  %v1274_v54 = vadd.f32 %v1271_v48, %v4397_v53 }
 0x158   :  { %v1285_v25 = vmul.f32 %v3437_v59, %v4398_v12  ;;  %v1263_v11 = vmul.f32 %v1260_v10, %v4399_v34  ;;  %v1264_v32 = vmul.f32 %v1261_v1, %v4399_v34  ;;  %v1275_v0 = vmax.f32 %v1272_v62, 0.0 }
 0x159   :  { %v1286_v8 = vmul.f32 %v3442_v38, %v4398_v12  ;;  %v1251_v27 = vadd.f32 %v1248_v24, %v3763_v29  ;;  %v1252_v7 = vadd.f32 %v1249_v58, %v3765_v47  ;;  %v1265_v18 = vmul.f32 %v1262_v52, %v4399_v34  ;;  %v4405_v52 = vld [vmem:[#allocation48_spill] sm:$0xff] }
 0x15a   :  { %v1287_v44 = vadd.f32 %v1284_v43, %v4400_v4  ;;  %v1276_v19 = vmax.f32 %v1273_v51, 0.0  ;;  %v1277_v21 = vmax.f32 %v1274_v54, 0.0  ;;  %v1288_v28 = vadd.f32 %v1285_v25, %v4400_v4  ;;  %v4406_v34 = vld [vmem:[#allocation56_spill] sm:$0xff] }
 0x15b   :  { %v1289_v57 = vadd.f32 %v1286_v8, %v4400_v4  ;;  %v1253_v22 = vadd.f32 %v1250_v5, %v3769_v42  ;;  %v1278_v63 = vmul.f32 %v1275_v0, %v4401_v35  ;;  %v1299_v40 = vmul.f32 %v3435_v50, %v4402_v2  ;;  %v4407_v0 = vld [vmem:[#allocation52_spill] sm:$0xff] }
 0x15c   :  { %v1300_v29 = vmul.f32 %v3437_v59, %v4402_v2  ;;  %v1266_v47 = vadd.f32 %v1263_v11, %v1206_v9  ;;  %v1267_v56 = vadd.f32 %v1264_v32, %v1207_v17  ;;  %v1290_v39 = vmax.f32 %v1287_v44, 0.0 }
 0x15d   :  { %v1291_v6 = vmax.f32 %v1288_v28, 0.0  ;;  %v3845_v20 = vadd.f32 %v1265_v18, %v1208_v49  ;;  %v1292_v16 = vmax.f32 %v1289_v57, 0.0  ;;  %v1301_v26 = vmul.f32 %v3442_v38, %v4402_v2 }
 0x15e   :  { %v1302_v42 = vadd.f32 %v1299_v40, %v4403_v36  ;;  %v1279_v15 = vmul.f32 %v1276_v19, %v4401_v35  ;;  %v1280_v24 = vmul.f32 %v1277_v21, %v4401_v35  ;;  %v1303_v10 = vadd.f32 %v1300_v29, %v4403_v36  ;;  %v4409_v29 = vld [vmem:[#allocation55_spill] sm:$0xff] }
 0x15f   :  { %v1314_v9 = vmul.f32 %v3435_v50, %v4404_v23  ;;  %v3855_v17 = vadd.f32 %v1278_v63, %v1221_v46  ;;  %v1304_v49 = vadd.f32 %v1301_v26, %v4403_v36  ;;  %v1315_v1 = vmul.f32 %v3437_v59, %v4404_v23 }
 0x160   :  { %v1305_v58 = vmax.f32 %v1302_v42, 0.0  ;;  %v1293_v48 = vmul.f32 %v1290_v39, %v4405_v52  ;;  %v1294_v53 = vmul.f32 %v1291_v6, %v4405_v52  ;;  %v1306_v62 = vmax.f32 %v1303_v10, 0.0 }
 0x161   :  { %v1316_v51 = vmul.f32 %v3442_v38, %v4404_v23  ;;  %v1295_v12 = vmul.f32 %v1292_v16, %v4405_v52  ;;  %v1307_v43 = vmax.f32 %v1304_v49, 0.0  ;;  %v1317_v46 = vadd.f32 %v1314_v9, %v3264_v45  ;;  %v4410_v16 = vld [vmem:[#allocation60_spill] sm:$0xff]  ;;  %v4411_v23 = vld [vmem:[#allocation61_spill] sm:$0xff] }
 0x162   :  { %v1318_v5 = vadd.f32 %v1315_v1, %v3264_v45  ;;  %v3868_v54 = vadd.f32 %v1279_v15, %v3799_v61  ;;  %v1329_v11 = vmul.f32 %v3435_v50, %v4406_v34  ;;  %v1330_v32 = vmul.f32 %v3437_v59, %v4406_v34 }
 0x163   :  { %v1319_v25 = vadd.f32 %v1316_v51, %v3264_v45  ;;  %v1308_v8 = vmul.f32 %v1305_v58, %v4407_v0  ;;  %v1309_v18 = vmul.f32 %v1306_v62, %v4407_v0  ;;  %v1320_v4 = vmax.f32 %v1317_v46, 0.0  ;;  %v4408_v45 = vld [vmem:[#allocation57_spill] sm:$0xff]  ;;  %v4412_v58 = vld [vmem:[#allocation63_spill] sm:$0xff] }
 0x164   :  { %v1321_v44 = vmax.f32 %v1318_v5, 0.0  ;;  %v1283_v19 = vadd.f32 %v1280_v24, %v3803_v3  ;;  %v1310_v21 = vmul.f32 %v1307_v43, %v4407_v0  ;;  %v1331_v61 = vmul.f32 %v3442_v38, %v4406_v34 }
 0x165   :  { %v1332_v28 = vadd.f32 %v1329_v11, %v4408_v45  ;;  %v1296_v57 = vadd.f32 %v1293_v48, %v3812_v14  ;;  %v1297_v35 = vadd.f32 %v1294_v53, %v1237_v55  ;;  %v1298_v63 = vadd.f32 %v1295_v12, %v1238_v30  ;;  %v4413_v12 = vld [vmem:[#allocation59_spill] sm:$0xff] }
 0x166   :  { %v1333_v2 = vadd.f32 %v1330_v32, %v4408_v45  ;;  %v1322_v40 = vmax.f32 %v1319_v25, 0.0  ;;  %v1323_v39 = vmul.f32 %v1320_v4, %v4409_v29  ;;  %v1334_v6 = vadd.f32 %v1331_v61, %v4408_v45 }
 0x167   :  { %v1344_v3 = vmul.f32 %v3435_v50, %v4410_v16  ;;  %v1311_v26 = vadd.f32 %v1308_v8, %v1251_v27  ;;  %v1312_v36 = vadd.f32 %v1309_v18, %v1252_v7  ;;  %v1324_v42 = vmul.f32 %v1321_v44, %v4409_v29 }
 0x168   :  { %v1345_v15 = vmul.f32 %v3437_v59, %v4410_v16  ;;  %v1313_v14 = vadd.f32 %v1310_v21, %v1253_v22  ;;  %v1335_v55 = vmax.f32 %v1332_v28, 0.0  ;;  %v1336_v30 = vmax.f32 %v1333_v2, 0.0 }
 0x169   :  { %v1346_v24 = vmul.f32 %v3442_v38, %v4410_v16  ;;  %v1337_v10 = vmax.f32 %v1334_v6, 0.0  ;;  %v1347_v9 = vadd.f32 %v1344_v3, %v4411_v23  ;;  %v1359_v27 = vmul.f32 %v3435_v50, %v4412_v58 }
 0x16a   :  { %v1348_v49 = vadd.f32 %v1345_v15, %v4411_v23  ;;  %v1325_v7 = vmul.f32 %v1322_v40, %v4409_v29  ;;  %v1326_v1 = vadd.f32 %v1323_v39, %v1266_v47  ;;  %v1360_v22 = vmul.f32 %v3437_v59, %v4412_v58 }
 0x16b   :  { %v1349_v52 = vadd.f32 %v1346_v24, %v4411_v23  ;;  %v1327_v48 = vadd.f32 %v1324_v42, %v1267_v56  ;;  %v1350_v53 = vmax.f32 %v1347_v9, 0.0  ;;  %v1361_v51 = vmul.f32 %v3442_v38, %v4412_v58  ;;  %v4414_v58 = vld [vmem:[#allocation64_spill] sm:$0xff] }
 0x16c   :  { %v1351_v62 = vmax.f32 %v1348_v49, 0.0  ;;  %v1338_v43 = vmul.f32 %v1335_v55, %v4413_v12  ;;  %v1362_v5 = vadd.f32 %v1359_v27, %v3378_v41  ;;  %v1363_v25 = vadd.f32 %v1360_v22, %v3378_v41 }
 0x16d   :  { %v1352_v46 = vmax.f32 %v1349_v52, 0.0  ;;  %v1339_v47 = vmul.f32 %v1336_v30, %v4413_v12  ;;  %v1340_v34 = vmul.f32 %v1337_v10, %v4413_v12  ;;  %v1364_v11 = vadd.f32 %v1361_v51, %v3378_v41 }
 0x16e   :  { %v1374_v56 = vmul.f32 %v3435_v50, %v3396_v60  ;;  %v1353_v32 = vmul.f32 %v1350_v53, %v3366_v37  ;;  %v1365_v0 = vmax.f32 %v1362_v5, 0.0  ;;  %v1366_v8 = vmax.f32 %v1363_v25, 0.0 }
 0x16f   :  { %v1375_v18 = vmul.f32 %v3437_v59, %v3396_v60  ;;  %v1354_v4 = vmul.f32 %v1351_v62, %v3366_v37  ;;  %v1355_v44 = vmul.f32 %v1352_v46, %v3366_v37  ;;  %v1367_v21 = vmax.f32 %v1364_v11, 0.0 }
 0x170   :  { %v1376_v61 = vmul.f32 %v3442_v38, %v3396_v60  ;;  %v1328_v41 = vadd.f32 %v1325_v7, %v3845_v20  ;;  %v1341_v45 = vadd.f32 %v1338_v43, %v3855_v17  ;;  %v1368_v50 = vmul.f32 %v1365_v0, %v3406_v33 }
 0x171   :  { %v1377_v28 = vadd.f32 %v1374_v56, %v3424_v13  ;;  %v1369_v2 = vmul.f32 %v1366_v8, %v3406_v33  ;;  %v1370_v59 = vmul.f32 %v1367_v21, %v3406_v33  ;;  %v1378_v40 = vadd.f32 %v1375_v18, %v3424_v13 }
 0x172   :  { %v1379_v37 = vadd.f32 %v1376_v61, %v3424_v13  ;;  %v1342_v29 = vadd.f32 %v1339_v47, %v3868_v54  ;;  %v1343_v39 = vadd.f32 %v1340_v34, %v1283_v19  ;;  %v1356_v60 = vadd.f32 %v1353_v32, %v1296_v57 }
 0x173   :  { %v1380_v38 = vmax.f32 %v1377_v28, 0.0  ;;  %v1357_v20 = vadd.f32 %v1354_v4, %v1297_v35  ;;  %v1358_v6 = vadd.f32 %v1355_v44, %v1298_v63  ;;  %v1381_v17 = vmax.f32 %v1378_v40, 0.0 }
 0x174   :  { %v1382_v16 = vmax.f32 %v1379_v37, 0.0  ;;  %v1371_v3 = vadd.f32 %v1368_v50, %v1311_v26  ;;  %v1372_v15 = vadd.f32 %v1369_v2, %v1312_v36  ;;  %v1373_v55 = vadd.f32 %v1370_v59, %v1313_v14 }
 0x175   :  { %v1383_v42 = vmul.f32 %v1380_v38, %v3429_v31  ;;  %v1384_v33 = vmul.f32 %v1381_v17, %v3429_v31  ;;  %v1389_v13 = vadd.f32 %v1356_v60, %v1341_v45  ;;  %v1390_v19 = vadd.f32 %v1357_v20, %v1342_v29 }
 0x176   :  { %v1385_v30 = vmul.f32 %v1382_v16, %v3429_v31  ;;  %v1391_v57 = vadd.f32 %v1358_v6, %v1343_v39 }
 0x177   :  { %v1386_v24 = vadd.f32 %v1383_v42, %v1326_v1  ;;  %v1387_v10 = vadd.f32 %v1384_v33, %v1327_v48 }
 0x178   :  { %v1388_v54 = vadd.f32 %v1385_v30, %v1328_v41 }
 0x179   :  { %v1392_v23 = vadd.f32 %v1386_v24, %v1371_v3  ;;  %v1393_v35 = vadd.f32 %v1387_v10, %v1372_v15 }
 0x17a   :  { %v1394_v63 = vadd.f32 %v1388_v54, %v1373_v55 }
 0x17b   :  { %v1395_v9 = vadd.f32 %v1392_v23, %v1389_v13  ;;  %v1396_v49 = vadd.f32 %v1393_v35, %v1390_v19 }
 0x17c   :  { %v1397_v26 = vadd.f32 %v1394_v63, %v1391_v57 }
 0x17d   :  { %v1398_v27 = vadd.f32 %v1395_v9, %v4414_v58  ;;  %v1399_v36 = vadd.f32 %v1396_v49, %v4414_v58 }
 0x17e   :  { %v1400_v31 = vadd.f32 %v1397_v26, %v4414_v58 }
 0x17f   :  { %v1401_v14 = vmax.f32 %v1398_v27, 0.0  ;;  %v1402_v7 = vmax.f32 %v1399_v36, 0.0 }
 0x180   :  { %v1403_v1 = vmax.f32 %v1400_v31, 0.0 }
 0x181   :  { %1404 = vst [vmem:[#allocation11 + $0x20] sm:$0xff] %v1401_v14  ;;  %1405 = vst [vmem:[#allocation11 + $0x28] sm:$0xff] %v1402_v7 }
 0x182   :  { %1406 = vst [vmem:[#allocation11 + $0x30] sm:$0xff] %v1403_v1 }
 0x183   :  { %1597 = shalt.err (!%p1594_p10)
}
 0x184   :  { %1418 = dma.vmem_to_hbm [thread:$0]  %s1413_s0, 896, %s3944_s5, [#allocation5], %s1618_s2, %s1618_s2, %s1619_s9  }
 0x185   :  { %1612 = dma.done.wait [#allocation5], 896  }
 0x186   :  { %1613 = vsyncadd [#allocation5], 4294966400 }
 0x187   :  { %1422 = vsyncpa [#allocation4], 1 }
 0x188   :  { %1423 = vsyncpa [#allocation5], 1 }
 0x189   :  { %1424 = vsyncpa [#allocation6], 1 }
 0x18a   :  { %1425 = vsyncpa [#allocation8], 1 }

</bundles_post_ra>
